<compile_context>
chip_gen: v7x
topology: tpu7x:2x2x1
jax: 0.10.0
libtpu: 0.0.40
codegen_flags: <defaults>
</compile_context>

<pallas_src>
import functools

import jax
import jax.numpy as jnp
from jax.experimental import pallas as pl
from jax.experimental.pallas import tpu as pltpu


MXU_DTYPE = jnp.bfloat16       # MXU operand dtype (accumulation stays f32)
ACT_DTYPE = jnp.bfloat16       # dtype of qkv / attention intermediates in HBM


def _pick_tile(dim, candidates):
    """Largest-first: first candidate that divides `dim`; else the full dim."""
    for c in candidates:
        if c <= dim and dim % c == 0:
            return c
    return dim


def _vmem_limit(block_bytes, scratch_bytes=0):
    """Explicit scoped-VMEM request: double-buffered blocks + scratch + headroom,
    clamped to stay within v7x's 64 MiB physical VMEM."""
    need = 2 * block_bytes + scratch_bytes + 2 * 1024 * 1024
    return int(min(max(need, 8 * 1024 * 1024), 64 * 1024 * 1024))


# ----------------------------- GroupNorm statistics (N-tiled) -----------------
def gn_stats_kernel(x_ref, ag_ref, ab_ref, g_ref, b_ref, stats_ref,
                    s1_sc, s2_sc, *, eps, inv_count):
    i = pl.program_id(1)

    @pl.when(i == 0)
    def _():
        s1_sc[...] = jnp.zeros_like(s1_sc)
        s2_sc[...] = jnp.zeros_like(s2_sc)

    x = x_ref[0].astype(jnp.float32)                       # (tn, C)
    s1_sc[...] += jnp.sum(x, axis=0, keepdims=True)        # (1, C)
    s2_sc[...] += jnp.sum(x * x, axis=0, keepdims=True)    # (1, C)

    @pl.when(i == pl.num_programs(1) - 1)
    def _():
        # Per-group mean / E[x^2] via (C, G) one-hot matmul, broadcast back with (G, C).
        # NOTE: var = E[x^2] - mean^2 (single-pass); fine for normalized activations.
        mean_g = jnp.dot(s1_sc[...], ag_ref[...],
                         preferred_element_type=jnp.float32) * inv_count   # (1, G)
        ex2_g = jnp.dot(s2_sc[...], ag_ref[...],
                        preferred_element_type=jnp.float32) * inv_count
        var_g = ex2_g - mean_g * mean_g
        inv_g = jax.lax.rsqrt(var_g + eps)
        mean_c = jnp.dot(mean_g, ab_ref[...], preferred_element_type=jnp.float32)
        inv_c = jnp.dot(inv_g, ab_ref[...], preferred_element_type=jnp.float32)
        scale = inv_c * g_ref[...]                          # (1, C) folded gamma
        shift = b_ref[...] - mean_c * scale                 # (1, C) folded beta
        stats_ref[0] = jnp.concatenate([scale, shift], axis=0)   # (2, C)


def group_norm_stats(x_tok, gamma, beta, *, num_groups=32, eps=1e-6):
    """x_tok: (B, N, C) -> per-batch (2, C) fused (scale, shift) for the normalize step."""
    B, N, C = x_tok.shape
    G = num_groups
    cg = C // G
    gid = jnp.arange(C) // cg
    ag = (gid[:, None] == jnp.arange(G)[None, :]).astype(jnp.float32)   # (C, G) group sum
    ab = ag.T                                                            # (G, C) broadcast
    tn = _pick_tile(N, (2048, 1024, 512, 256, 128))
    xb = jnp.dtype(x_tok.dtype).itemsize
    blk = tn * C * xb + (C * G + G * C + 4 * C + 2 * C) * 4
    return pl.pallas_call(
        functools.partial(gn_stats_kernel, eps=eps, inv_count=1.0 / float(N * cg)),
        out_shape=jax.ShapeDtypeStruct((B, 2, C), jnp.float32),
        grid_spec=pltpu.PrefetchScalarGridSpec(
            num_scalar_prefetch=0,
            grid=(B, N // tn),
            in_specs=[
                pl.BlockSpec((1, tn, C), lambda b, i: (b, i, 0)),
                pl.BlockSpec((C, G), lambda b, i: (0, 0)),
                pl.BlockSpec((G, C), lambda b, i: (0, 0)),
                pl.BlockSpec((1, C), lambda b, i: (0, 0)),
                pl.BlockSpec((1, C), lambda b, i: (0, 0)),
            ],
            out_specs=pl.BlockSpec((1, 2, C), lambda b, i: (b, 0, 0)),
            scratch_shapes=[pltpu.VMEM((1, C), jnp.float32),
                            pltpu.VMEM((1, C), jnp.float32)],
        ),
        compiler_params=pltpu.CompilerParams(
            dimension_semantics=("parallel", "arbitrary"),
            vmem_limit_bytes=_vmem_limit(blk, 8 * C)),
    )(x_tok, ag, ab,
      gamma.reshape(1, C).astype(jnp.float32),
      beta.reshape(1, C).astype(jnp.float32))


# ----------------------------- Fused normalize + qkv projection ----------------
def norm_qkv_kernel(x_ref, s_ref, w_ref, b_ref, o_ref):
    x = x_ref[0].astype(jnp.float32)                        # (tm, C)
    st = s_ref[0]                                           # (2, C): [scale; shift]
    xn = x * st[0:1, :] + st[1:2, :]                        # GroupNorm (affine fused)
    acc = jnp.dot(xn.astype(MXU_DTYPE), w_ref[...],
                  preferred_element_type=jnp.float32)       # (tm, 3C)
    o_ref[0] = (acc + b_ref[...]).astype(o_ref.dtype)


def norm_qkv(x_tok, stats, w_qkv, b_qkv):
    B, N, C = x_tok.shape
    C3 = w_qkv.shape[1]
    tm = _pick_tile(N, (512, 256, 128))
    xb = jnp.dtype(x_tok.dtype).itemsize
    ob = jnp.dtype(ACT_DTYPE).itemsize
    blk = tm * C * xb + 2 * C * 4 + C * C3 * 2 + C3 * 4 + tm * C3 * ob
    return pl.pallas_call(
        norm_qkv_kernel,
        out_shape=jax.ShapeDtypeStruct((B, N, C3), ACT_DTYPE),
        grid_spec=pltpu.PrefetchScalarGridSpec(
            num_scalar_prefetch=0,
            grid=(B, N // tm),
            in_specs=[
                pl.BlockSpec((1, tm, C), lambda b, i: (b, i, 0)),
                pl.BlockSpec((1, 2, C), lambda b, i: (b, 0, 0)),
                pl.BlockSpec((C, C3), lambda b, i: (0, 0)),
                pl.BlockSpec((1, C3), lambda b, i: (0, 0)),
            ],
            out_specs=pl.BlockSpec((1, tm, C3), lambda b, i: (b, i, 0)),
        ),
        compiler_params=pltpu.CompilerParams(
            dimension_semantics=("parallel", "parallel"),
            vmem_limit_bytes=_vmem_limit(blk)),
    )(x_tok, stats, w_qkv.astype(MXU_DTYPE), b_qkv.reshape(1, C3).astype(jnp.float32))


# ----------------------------- Flash attention (single head) -------------------
def flash_attn_kernel(q_ref, k_ref, v_ref, o_ref, m_sc, l_sc, acc_sc):
    kv = pl.program_id(2)

    @pl.when(kv == 0)
    def _():
        m_sc[...] = jnp.full_like(m_sc, -jnp.inf)
        l_sc[...] = jnp.zeros_like(l_sc)
        acc_sc[...] = jnp.zeros_like(acc_sc)

    # Softmax scale is pre-folded into the q projection weights — no per-step rescale.
    q = q_ref[0].astype(MXU_DTYPE)                          # (tq, C)
    k = k_ref[0].astype(MXU_DTYPE)                          # (tk, C)
    s = jax.lax.dot_general(q, k, (((1,), (1,)), ((), ())),
                            preferred_element_type=jnp.float32)      # (tq, tk)

    m_new = jnp.maximum(m_sc[...], s.max(axis=-1, keepdims=True))
    alpha = jnp.exp(m_sc[...] - m_new)
    p = jnp.exp(s - m_new)
    l_sc[...] = alpha * l_sc[...] + p.sum(axis=-1, keepdims=True)
    acc_sc[...] = alpha * acc_sc[...] + jnp.dot(
        p.astype(MXU_DTYPE), v_ref[0].astype(MXU_DTYPE),
        preferred_element_type=jnp.float32)
    m_sc[...] = m_new

    @pl.when(kv == pl.num_programs(2) - 1)
    def _():
        o_ref[0] = (acc_sc[...] * pl.reciprocal(l_sc[...], approx=True)).astype(o_ref.dtype)


def _attention(q_arr, k_arr, v_arr, C, cblk=(0, 0, 0)):
    """Single-head attention over N tokens.  The three operands may all be the same
    fused (B, N, 3C) qkv array; `cblk` gives each operand's channel-block index."""
    B, N = q_arr.shape[0], q_arr.shape[1]
    itemsize = jnp.dtype(q_arr.dtype).itemsize
    tq = _pick_tile(N, (512, 256, 128))
    # Prefer a fully-resident KV (single kv step -> no online-softmax rescales) when the
    # double-buffered footprint stays within budget; otherwise large kv tiles.
    if 4 * N * C * itemsize <= 16 * 1024 * 1024:
        tk = N
    else:
        tk = _pick_tile(N, (2048, 1024, 512, 256, 128))
    qc, kc, vc = cblk
    blk = (2 * tq * C + 2 * tk * C) * itemsize
    scratch = 4 * (tq * C + 2 * tq)
    return pl.pallas_call(
        flash_attn_kernel,
        out_shape=jax.ShapeDtypeStruct((B, N, C), q_arr.dtype),
        grid_spec=pltpu.PrefetchScalarGridSpec(
            num_scalar_prefetch=0,
            grid=(B, N // tq, N // tk),
            in_specs=[
                pl.BlockSpec((1, tq, C), lambda b, qi, ki: (b, qi, qc)),
                pl.BlockSpec((1, tk, C), lambda b, qi, ki: (b, ki, kc)),
                pl.BlockSpec((1, tk, C), lambda b, qi, ki: (b, ki, vc)),
            ],
            out_specs=pl.BlockSpec((1, tq, C), lambda b, qi, ki: (b, qi, 0)),
            scratch_shapes=[
                pltpu.VMEM((tq, 1), jnp.float32),   # running max m
                pltpu.VMEM((tq, 1), jnp.float32),   # running denom l
                pltpu.VMEM((tq, C), jnp.float32),   # output accumulator
            ],
        ),
        compiler_params=pltpu.CompilerParams(
            dimension_semantics=("parallel", "parallel", "arbitrary"),
            vmem_limit_bytes=_vmem_limit(blk, scratch)),
    )(q_arr, k_arr, v_arr)


# ----------------------------- proj_out (bias + residual fused) ----------------
def linear_bias_residual_kernel(x_ref, w_ref, b_ref, r_ref, o_ref, acc_ref):
    @pl.when(pl.program_id(2) == 0)
    def _():
        acc_ref[...] = jnp.zeros_like(acc_ref)

    acc_ref[...] += jnp.dot(x_ref[...].astype(MXU_DTYPE), w_ref[...],
                            preferred_element_type=jnp.float32)

    @pl.when(pl.program_id(2) == pl.num_programs(2) - 1)
    def _():
        o_ref[...] = (acc_ref[...] + b_ref[...]
                      + r_ref[...].astype(jnp.float32)).astype(o_ref.dtype)


def linear_bias_residual(x, w, b, residual, out_dtype):
    """x: (M, K), w: (K, N), b: (N,), residual: (M, N) added in the matmul epilogue."""
    M, K = x.shape
    _, Nn = w.shape
    tm = _pick_tile(M, (512, 256, 128))
    tn = _pick_tile(Nn, (512, 256, 128))
    tk = _pick_tile(K, (512, 256, 128))
    grid = (M // tm, Nn // tn, K // tk)
    blk = (tm * tk * jnp.dtype(x.dtype).itemsize + tk * tn * 2 + tn * 4
           + tm * tn * jnp.dtype(residual.dtype).itemsize
           + tm * tn * jnp.dtype(out_dtype).itemsize)
    return pl.pallas_call(
        linear_bias_residual_kernel,
        out_shape=jax.ShapeDtypeStruct((M, Nn), out_dtype),
        grid_spec=pltpu.PrefetchScalarGridSpec(
            num_scalar_prefetch=0,
            grid=grid,
            in_specs=[
                pl.BlockSpec((tm, tk), lambda i, j, k: (i, k)),
                pl.BlockSpec((tk, tn), lambda i, j, k: (k, j)),
                pl.BlockSpec((1, tn), lambda i, j, k: (0, j)),
                pl.BlockSpec((tm, tn), lambda i, j, k: (i, j)),
            ],
            out_specs=pl.BlockSpec((tm, tn), lambda i, j, k: (i, j)),
            scratch_shapes=[pltpu.VMEM((tm, tn), jnp.float32)],
        ),
        compiler_params=pltpu.CompilerParams(
            dimension_semantics=("parallel", "parallel", "arbitrary"),
            vmem_limit_bytes=_vmem_limit(blk, tm * tn * 4)),
    )(x, w.astype(MXU_DTYPE), b.reshape(1, Nn).astype(jnp.float32), residual)


# ----------------------------- Module composition -----------------------------
def spatial_self_attention(x, params, *, num_groups=32, eps=1e-6):
    """x: (B, C, H, W) -> (B, C, H, W), matching SpatialSelfAttention.forward."""
    B, C, H, W = x.shape
    N = H * W
    # TODO(synk): hoist the NCHW<->NHWC transposes out of the per-layer path if the
    # surrounding network can stay channels-last (each is a full HBM pass in XLA).
    x_tok = jnp.transpose(x, (0, 2, 3, 1)).reshape(B, N, C)          # 'b c h w -> b (h w) c'

    # Fold the attention softmax scale into the q-projection weight/bias columns.
    scale = float(C) ** -0.5
    w_qkv = jnp.concatenate([params["w_qkv"][:, :C] * scale,
                             params["w_qkv"][:, C:]], axis=1)
    b_qkv = jnp.concatenate([params["b_qkv"][:C] * scale,
                             params["b_qkv"][C:]], axis=0)

    # Pass 1: N-tiled GroupNorm statistics -> per-channel fused (scale, shift).
    stats = group_norm_stats(x_tok, params["norm_g"], params["norm_b"],
                             num_groups=num_groups, eps=eps)

    # Pass 2: fused normalize + qkv projection (normalized activation never hits HBM).
    qkv = norm_qkv(x_tok, stats, w_qkv, b_qkv)                        # (B, N, 3C) bf16

    # Single-head spatial attention, reading q/k/v straight out of the fused tensor.
    if C % 128 == 0:
        attn_out = _attention(qkv, qkv, qkv, C, cblk=(0, 1, 2))
    else:
        # Lane-aligned channel-block indexing needs C % 128 == 0; slice otherwise.
        q, k, v = qkv[..., :C], qkv[..., C:2 * C], qkv[..., 2 * C:]
        attn_out = _attention(q, k, v, C)

    # proj_out 1x1 conv with bias + residual (x) fused into the matmul epilogue.
    out_tok = linear_bias_residual(attn_out.reshape(B * N, C), params["w_o"],
                                   params["b_o"], x_tok.reshape(B * N, C),
                                   out_dtype=x.dtype)
    return out_tok.reshape(B, H, W, C).transpose(0, 3, 1, 2)          # back to 'b c h w'


# ----------------------------- Parameter init ---------------------------------
def init_params(key, C):
    ks = jax.random.split(key, 10)

    def w(k, shape, scale=0.05):
        return jax.random.normal(k, shape, jnp.float32) * scale

    w_q, w_k, w_v = w(ks[0], (C, C)), w(ks[1], (C, C)), w(ks[2], (C, C))
    b_q, b_k, b_v = w(ks[3], (C,)), w(ks[4], (C,)), w(ks[5], (C,))
    return {
        "norm_g": 1.0 + w(ks[6], (C,), 0.1),
        "norm_b": w(ks[7], (C,), 0.1),
        "w_qkv": jnp.concatenate([w_q, w_k, w_v], axis=1),   # (C, 3C)
        "b_qkv": jnp.concatenate([b_q, b_k, b_v], axis=0),   # (3C,)
        "w_o": w(ks[8], (C, C)),
        "b_o": w(ks[9], (C,)),
    }


# ----------------------------- Pure-JAX reference ------------------------------
def reference_forward(x, params, *, num_groups=32, eps=1e-6):
    B, C, H, W = x.shape
    cg = C // num_groups
    xg = x.reshape(B, num_groups, cg, H, W)
    mean = jnp.mean(xg, axis=(2, 3, 4), keepdims=True)
    var = jnp.mean((xg - mean) ** 2, axis=(2, 3, 4), keepdims=True)
    xn = ((xg - mean) / jnp.sqrt(var + eps)).reshape(B, C, H, W)
    xn = xn * params["norm_g"][None, :, None, None] + params["norm_b"][None, :, None, None]

    t = xn.transpose(0, 2, 3, 1).reshape(B, H * W, C)
    qkv = t @ params["w_qkv"] + params["b_qkv"]
    q, k, v = qkv[..., :C], qkv[..., C:2 * C], qkv[..., 2 * C:]
    sim = jnp.einsum("bic,bjc->bij", q, k) * (float(C) ** -0.5)
    attn = jax.nn.softmax(sim, axis=-1)
    h_ = jnp.einsum("bij,bjc->bic", attn, v)
    o = h_ @ params["w_o"] + params["b_o"]
    return x + o.reshape(B, H, W, C).transpose(0, 3, 1, 2)


# ----------------------------- Main --------------------------------------------
if __name__ == "__main__":
    # C must be a multiple of 32 (GroupNorm); 128 also exercises the lane-aligned
    # fused-qkv attention path and keeps lanes fully utilized.
    B, C, H, W = 2, 128, 16, 16
    key = jax.random.PRNGKey(0)
    kx, kp = jax.random.split(key)
    x = jax.random.normal(kx, (B, C, H, W), jnp.float32)
    params = init_params(kp, C)

    fwd = jax.jit(spatial_self_attention)
    out = fwd(x, params)
    jax.block_until_ready(out)
    assert out.shape == (B, C, H, W)

    ref = reference_forward(x, params)
    err = float(jnp.max(jnp.abs(out - ref)))
    # bf16 MXU operands + bf16 qkv/attention intermediates (per perf review) relax strict
    # parity vs the f32 reference; tolerance sized accordingly (structural bugs are O(1)).
    assert err < 3e-2, f"max abs err {err}"
    print("KERNEL_OK")
</pallas_src>

<mosaic_0001>
module attributes {stable_mosaic.version = 11 : i64} {
  func.func @gn_stats_kernel(%arg0: i32, %arg1: i32, %arg2: memref<1x256x128xf32, #tpu.memory_space<vmem>>, %arg3: memref<128x32xf32, #tpu.memory_space<vmem>>, %arg4: memref<32x128xf32, #tpu.memory_space<vmem>>, %arg5: memref<1x128xf32, #tpu.memory_space<vmem>>, %arg6: memref<1x128xf32, #tpu.memory_space<vmem>>, %arg7: memref<1x2x128xf32, #tpu.memory_space<vmem>>, %arg8: memref<1x128xf32, #tpu.memory_space<vmem>>, %arg9: memref<1x128xf32, #tpu.memory_space<vmem>>) attributes {dimension_semantics = [#tpu.dimension_semantics<parallel>, #tpu.dimension_semantics<arbitrary>], iteration_bounds = array<i64: 2, 1>, scalar_prefetch = 0 : i64, scratch_operands = 2 : i64, tpu.core_type = #tpu.core_type<tc>, window_params = [{transform_indices = @transform_0, window_bounds = array<i64: 1, 256, 128>}, {pipeline_mode = #tpu.pipeline_mode<synchronous>, transform_indices = @transform_1, window_bounds = array<i64: 128, 32>}, {pipeline_mode = #tpu.pipeline_mode<synchronous>, transform_indices = @transform_2, window_bounds = array<i64: 32, 128>}, {pipeline_mode = #tpu.pipeline_mode<synchronous>, transform_indices = @transform_3, window_bounds = array<i64: 1, 128>}, {pipeline_mode = #tpu.pipeline_mode<synchronous>, transform_indices = @transform_4, window_bounds = array<i64: 1, 128>}, {transform_indices = @transform_5, window_bounds = array<i64: 1, 2, 128>}]} {
    %c0_i32 = arith.constant 0 : i32
    %0 = arith.cmpi eq, %arg1, %c0_i32 : i32
    %1 = arith.extui %0 : i1 to i32
    %c0_i32_0 = arith.constant 0 : i32
    %2 = arith.cmpi ne, %1, %c0_i32_0 : i32
    scf.if %2 {
      %cst_14 = arith.constant 0.000000e+00 : f32
      %19 = vector.broadcast %cst_14 : f32 to vector<1x128xf32>
      %c0_15 = arith.constant 0 : index
      %c0_16 = arith.constant 0 : index
      %20 = vector.load %arg8[%c0_15, %c0_16] : memref<1x128xf32, #tpu.memory_space<vmem>>, vector<1x128xf32>
      tpu.vector_store %arg8[%c0_15, %c0_16], %19 {strides = array<i32>} : memref<1x128xf32, #tpu.memory_space<vmem>>, vector<1x128xf32>,
      %cst_17 = arith.constant 0.000000e+00 : f32
      %21 = vector.broadcast %cst_17 : f32 to vector<1x128xf32>
      %c0_18 = arith.constant 0 : index
      %c0_19 = arith.constant 0 : index
      %22 = vector.load %arg9[%c0_18, %c0_19] : memref<1x128xf32, #tpu.memory_space<vmem>>, vector<1x128xf32>
      tpu.vector_store %arg9[%c0_18, %c0_19], %21 {strides = array<i32>} : memref<1x128xf32, #tpu.memory_space<vmem>>, vector<1x128xf32>,
    } else {
    }
    %c0 = arith.constant 0 : index
    %c0_1 = arith.constant 0 : index
    %c0_2 = arith.constant 0 : index
    %3 = vector.load %arg2[%c0, %c0_1, %c0_2] : memref<1x256x128xf32, #tpu.memory_space<vmem>>, vector<1x256x128xf32>
    %4 = vector.shape_cast %3 : vector<1x256x128xf32> to vector<256x128xf32>
    %c0_3 = arith.constant 0 : index
    %c0_4 = arith.constant 0 : index
    %5 = vector.load %arg8[%c0_3, %c0_4] : memref<1x128xf32, #tpu.memory_space<vmem>>, vector<1x128xf32>
    %cst = arith.constant dense<0.000000e+00> : vector<128xf32>
    %6 = vector.multi_reduction <add>, %4, %cst [0] : vector<256x128xf32> to vector<128xf32>
    %7 = vector.shape_cast %6 : vector<128xf32> to vector<1x128xf32>
    %8 = arith.addf %5, %7 : vector<1x128xf32>
    %c0_5 = arith.constant 0 : index
    %c0_6 = arith.constant 0 : index
    %9 = vector.load %arg8[%c0_5, %c0_6] : memref<1x128xf32, #tpu.memory_space<vmem>>, vector<1x128xf32>
    tpu.vector_store %arg8[%c0_5, %c0_6], %8 {strides = array<i32>} : memref<1x128xf32, #tpu.memory_space<vmem>>, vector<1x128xf32>,
    %c0_7 = arith.constant 0 : index
    %c0_8 = arith.constant 0 : index
    %10 = vector.load %arg9[%c0_7, %c0_8] : memref<1x128xf32, #tpu.memory_space<vmem>>, vector<1x128xf32>
    %11 = arith.mulf %4, %4 : vector<256x128xf32>
    %cst_9 = arith.constant dense<0.000000e+00> : vector<128xf32>
    %12 = vector.multi_reduction <add>, %11, %cst_9 [0] : vector<256x128xf32> to vector<128xf32>
    %13 = vector.shape_cast %12 : vector<128xf32> to vector<1x128xf32>
    %14 = arith.addf %10, %13 : vector<1x128xf32>
    %c0_10 = arith.constant 0 : index
    %c0_11 = arith.constant 0 : index
    %15 = vector.load %arg9[%c0_10, %c0_11] : memref<1x128xf32, #tpu.memory_space<vmem>>, vector<1x128xf32>
    tpu.vector_store %arg9[%c0_10, %c0_11], %14 {strides = array<i32>} : memref<1x128xf32, #tpu.memory_space<vmem>>, vector<1x128xf32>,
    %c0_i32_12 = arith.constant 0 : i32
    %16 = arith.cmpi eq, %arg1, %c0_i32_12 : i32
    %17 = arith.extui %16 : i1 to i32
    %c0_i32_13 = arith.constant 0 : i32
    %18 = arith.cmpi ne, %17, %c0_i32_13 : i32
    scf.if %18 {
      %c0_14 = arith.constant 0 : index
      %c0_15 = arith.constant 0 : index
      %19 = vector.load %arg8[%c0_14, %c0_15] : memref<1x128xf32, #tpu.memory_space<vmem>>, vector<1x128xf32>
      %c0_16 = arith.constant 0 : index
      %c0_17 = arith.constant 0 : index
      %20 = vector.load %arg3[%c0_16, %c0_17] : memref<128x32xf32, #tpu.memory_space<vmem>>, vector<128x32xf32>
      %cst_18 = arith.constant dense<0.000000e+00> : vector<1x32xf32>
      %21 = tpu.matmul %19, %20, %cst_18 {dimension_numbers = #tpu.dot_dimension_numbers<[1], [0], [0], [1], [0, 0, 1, 1], [], []>} : vector<1x128xf32>, vector<128x32xf32>, vector<1x32xf32> -> vector<1x32xf32>
      %cst_19 = arith.constant 9.765625E-4 : f32
      %22 = vector.broadcast %cst_19 : f32 to vector<1x32xf32>
      %23 = arith.mulf %21, %22 : vector<1x32xf32>
      %c0_20 = arith.constant 0 : index
      %c0_21 = arith.constant 0 : index
      %24 = vector.load %arg9[%c0_20, %c0_21] : memref<1x128xf32, #tpu.memory_space<vmem>>, vector<1x128xf32>
      %c0_22 = arith.constant 0 : index
      %c0_23 = arith.constant 0 : index
      %25 = vector.load %arg3[%c0_22, %c0_23] : memref<128x32xf32, #tpu.memory_space<vmem>>, vector<128x32xf32>
      %cst_24 = arith.constant dense<0.000000e+00> : vector<1x32xf32>
      %26 = tpu.matmul %24, %25, %cst_24 {dimension_numbers = #tpu.dot_dimension_numbers<[1], [0], [0], [1], [0, 0, 1, 1], [], []>} : vector<1x128xf32>, vector<128x32xf32>, vector<1x32xf32> -> vector<1x32xf32>
      %cst_25 = arith.constant 9.765625E-4 : f32
      %27 = vector.broadcast %cst_25 : f32 to vector<1x32xf32>
      %28 = arith.mulf %26, %27 : vector<1x32xf32>
      %29 = arith.mulf %23, %23 : vector<1x32xf32>
      %30 = arith.subf %28, %29 : vector<1x32xf32>
      %cst_26 = arith.constant 9.99999997E-7 : f32
      %31 = vector.broadcast %cst_26 : f32 to vector<1x32xf32>
      %32 = arith.addf %30, %31 : vector<1x32xf32>
      %33 = math.rsqrt %32 : vector<1x32xf32>
      %c0_27 = arith.constant 0 : index
      %c0_28 = arith.constant 0 : index
      %34 = vector.load %arg4[%c0_27, %c0_28] : memref<32x128xf32, #tpu.memory_space<vmem>>, vector<32x128xf32>
      %cst_29 = arith.constant dense<0.000000e+00> : vector<1x128xf32>
      %35 = tpu.matmul %23, %34, %cst_29 {dimension_numbers = #tpu.dot_dimension_numbers<[1], [0], [0], [1], [0, 0, 1, 1], [], []>} : vector<1x32xf32>, vector<32x128xf32>, vector<1x128xf32> -> vector<1x128xf32>
      %c0_30 = arith.constant 0 : index
      %c0_31 = arith.constant 0 : index
      %36 = vector.load %arg4[%c0_30, %c0_31] : memref<32x128xf32, #tpu.memory_space<vmem>>, vector<32x128xf32>
      %cst_32 = arith.constant dense<0.000000e+00> : vector<1x128xf32>
      %37 = tpu.matmul %33, %36, %cst_32 {dimension_numbers = #tpu.dot_dimension_numbers<[1], [0], [0], [1], [0, 0, 1, 1], [], []>} : vector<1x32xf32>, vector<32x128xf32>, vector<1x128xf32> -> vector<1x128xf32>
      %c0_33 = arith.constant 0 : index
      %c0_34 = arith.constant 0 : index
      %38 = vector.load %arg5[%c0_33, %c0_34] : memref<1x128xf32, #tpu.memory_space<vmem>>, vector<1x128xf32>
      %39 = arith.mulf %37, %38 : vector<1x128xf32>
      %c0_35 = arith.constant 0 : index
      %c0_36 = arith.constant 0 : index
      %40 = vector.load %arg6[%c0_35, %c0_36] : memref<1x128xf32, #tpu.memory_space<vmem>>, vector<1x128xf32>
      %41 = arith.mulf %35, %39 : vector<1x128xf32>
      %42 = arith.subf %40, %41 : vector<1x128xf32>
      %43 = tpu.concatenate %39, %42 in 0 : vector<1x128xf32>, vector<1x128xf32> -> vector<2x128xf32>
      %c0_37 = arith.constant 0 : index
      %c0_38 = arith.constant 0 : index
      %c0_39 = arith.constant 0 : index
      %44 = vector.load %arg7[%c0_37, %c0_38, %c0_39] : memref<1x2x128xf32, #tpu.memory_space<vmem>>, vector<1x2x128xf32>
      %45 = vector.shape_cast %44 : vector<1x2x128xf32> to vector<2x128xf32>
      %46 = vector.shape_cast %43 : vector<2x128xf32> to vector<1x2x128xf32>
      tpu.vector_store %arg7[%c0_37, %c0_38, %c0_39], %46 {strides = array<i32>} : memref<1x2x128xf32, #tpu.memory_space<vmem>>, vector<1x2x128xf32>,
    } else {
    }
    return
  }
  func.func @transform_0(%arg0: i32, %arg1: i32) -> (i32, i32, i32) {
    %c0_i32 = arith.constant 0 : i32
    %c0_i32_0 = arith.constant 0 : i32
    return %arg0, %arg1, %c0_i32 : i32, i32, i32
  }
  func.func @transform_1(%arg0: i32, %arg1: i32) -> (i32, i32) {
    %c0_i32 = arith.constant 0 : i32
    %c0_i32_0 = arith.constant 0 : i32
    %c0_i32_1 = arith.constant 0 : i32
    return %c0_i32, %c0_i32_0 : i32, i32
  }
  func.func @transform_2(%arg0: i32, %arg1: i32) -> (i32, i32) {
    %c0_i32 = arith.constant 0 : i32
    %c0_i32_0 = arith.constant 0 : i32
    %c0_i32_1 = arith.constant 0 : i32
    return %c0_i32, %c0_i32_0 : i32, i32
  }
  func.func @transform_3(%arg0: i32, %arg1: i32) -> (i32, i32) {
    %c0_i32 = arith.constant 0 : i32
    %c0_i32_0 = arith.constant 0 : i32
    %c0_i32_1 = arith.constant 0 : i32
    return %c0_i32, %c0_i32_0 : i32, i32
  }
  func.func @transform_4(%arg0: i32, %arg1: i32) -> (i32, i32) {
    %c0_i32 = arith.constant 0 : i32
    %c0_i32_0 = arith.constant 0 : i32
    %c0_i32_1 = arith.constant 0 : i32
    return %c0_i32, %c0_i32_0 : i32, i32
  }
  func.func @transform_5(%arg0: i32, %arg1: i32) -> (i32, i32, i32) {
    %c0_i32 = arith.constant 0 : i32
    %c0_i32_0 = arith.constant 0 : i32
    %c0_i32_1 = arith.constant 0 : i32
    return %arg0, %c0_i32, %c0_i32_0 : i32, i32, i32
  }
}

module attributes {stable_mosaic.version = 11 : i64} {
  func.func @norm_qkv_kernel(%arg0: i32, %arg1: i32, %arg2: memref<1x256x128xf32, #tpu.memory_space<vmem>>, %arg3: memref<1x2x128xf32, #tpu.memory_space<vmem>>, %arg4: memref<128x384xbf16, #tpu.memory_space<vmem>>, %arg5: memref<1x384xf32, #tpu.memory_space<vmem>>, %arg6: memref<1x256x384xbf16, #tpu.memory_space<vmem>>) attributes {dimension_semantics = [#tpu.dimension_semantics<parallel>, #tpu.dimension_semantics<parallel>], iteration_bounds = array<i64: 2, 1>, scalar_prefetch = 0 : i64, scratch_operands = 0 : i64, tpu.core_type = #tpu.core_type<tc>, window_params = [{transform_indices = @transform_0, window_bounds = array<i64: 1, 256, 128>}, {transform_indices = @transform_1, window_bounds = array<i64: 1, 2, 128>}, {pipeline_mode = #tpu.pipeline_mode<synchronous>, transform_indices = @transform_2, window_bounds = array<i64: 128, 384>}, {pipeline_mode = #tpu.pipeline_mode<synchronous>, transform_indices = @transform_3, window_bounds = array<i64: 1, 384>}, {transform_indices = @transform_4, window_bounds = array<i64: 1, 256, 384>}]} {
    %c0 = arith.constant 0 : index
    %c0_0 = arith.constant 0 : index
    %c0_1 = arith.constant 0 : index
    %0 = vector.load %arg2[%c0, %c0_0, %c0_1] : memref<1x256x128xf32, #tpu.memory_space<vmem>>, vector<1x256x128xf32>
    %1 = vector.shape_cast %0 : vector<1x256x128xf32> to vector<256x128xf32>
    %c0_2 = arith.constant 0 : index
    %c0_3 = arith.constant 0 : index
    %c0_4 = arith.constant 0 : index
    %2 = vector.load %arg3[%c0_2, %c0_3, %c0_4] : memref<1x2x128xf32, #tpu.memory_space<vmem>>, vector<1x2x128xf32>
    %3 = vector.shape_cast %2 : vector<1x2x128xf32> to vector<2x128xf32>
    %4 = vector.extract_strided_slice %3 {offsets = [0, 0], sizes = [1, 128], strides = [1, 1]} : vector<2x128xf32> to vector<1x128xf32>
    %5 = vector.broadcast %4 : vector<1x128xf32> to vector<256x128xf32>
    %6 = arith.mulf %1, %5 : vector<256x128xf32>
    %7 = vector.extract_strided_slice %3 {offsets = [1, 0], sizes = [1, 128], strides = [1, 1]} : vector<2x128xf32> to vector<1x128xf32>
    %8 = vector.broadcast %7 : vector<1x128xf32> to vector<256x128xf32>
    %9 = arith.addf %6, %8 : vector<256x128xf32>
    %10 = arith.truncf %9 : vector<256x128xf32> to vector<256x128xbf16>
    %c0_5 = arith.constant 0 : index
    %c0_6 = arith.constant 0 : index
    %11 = vector.load %arg4[%c0_5, %c0_6] : memref<128x384xbf16, #tpu.memory_space<vmem>>, vector<128x384xbf16>
    %cst = arith.constant dense<0.000000e+00> : vector<256x384xf32>
    %12 = tpu.matmul %10, %11, %cst {dimension_numbers = #tpu.dot_dimension_numbers<[1], [0], [0], [1], [0, 0, 1, 1], [], []>} : vector<256x128xbf16>, vector<128x384xbf16>, vector<256x384xf32> -> vector<256x384xf32>
    %c0_7 = arith.constant 0 : index
    %c0_8 = arith.constant 0 : index
    %13 = vector.load %arg5[%c0_7, %c0_8] : memref<1x384xf32, #tpu.memory_space<vmem>>, vector<1x384xf32>
    %14 = vector.broadcast %13 : vector<1x384xf32> to vector<256x384xf32>
    %15 = arith.addf %12, %14 : vector<256x384xf32>
    %16 = arith.truncf %15 : vector<256x384xf32> to vector<256x384xbf16>
    %c0_9 = arith.constant 0 : index
    %c0_10 = arith.constant 0 : index
    %c0_11 = arith.constant 0 : index
    %17 = vector.load %arg6[%c0_9, %c0_10, %c0_11] : memref<1x256x384xbf16, #tpu.memory_space<vmem>>, vector<1x256x384xbf16>
    %18 = vector.shape_cast %17 : vector<1x256x384xbf16> to vector<256x384xbf16>
    %19 = vector.shape_cast %16 : vector<256x384xbf16> to vector<1x256x384xbf16>
    tpu.vector_store %arg6[%c0_9, %c0_10, %c0_11], %19 {strides = array<i32>} : memref<1x256x384xbf16, #tpu.memory_space<vmem>>, vector<1x256x384xbf16>,
    return
  }
  func.func @transform_0(%arg0: i32, %arg1: i32) -> (i32, i32, i32) {
    %c0_i32 = arith.constant 0 : i32
    %c0_i32_0 = arith.constant 0 : i32
    return %arg0, %arg1, %c0_i32 : i32, i32, i32
  }
  func.func @transform_1(%arg0: i32, %arg1: i32) -> (i32, i32, i32) {
    %c0_i32 = arith.constant 0 : i32
    %c0_i32_0 = arith.constant 0 : i32
    %c0_i32_1 = arith.constant 0 : i32
    return %arg0, %c0_i32, %c0_i32_0 : i32, i32, i32
  }
  func.func @transform_2(%arg0: i32, %arg1: i32) -> (i32, i32) {
    %c0_i32 = arith.constant 0 : i32
    %c0_i32_0 = arith.constant 0 : i32
    %c0_i32_1 = arith.constant 0 : i32
    return %c0_i32, %c0_i32_0 : i32, i32
  }
  func.func @transform_3(%arg0: i32, %arg1: i32) -> (i32, i32) {
    %c0_i32 = arith.constant 0 : i32
    %c0_i32_0 = arith.constant 0 : i32
    %c0_i32_1 = arith.constant 0 : i32
    return %c0_i32, %c0_i32_0 : i32, i32
  }
  func.func @transform_4(%arg0: i32, %arg1: i32) -> (i32, i32, i32) {
    %c0_i32 = arith.constant 0 : i32
    %c0_i32_0 = arith.constant 0 : i32
    return %arg0, %arg1, %c0_i32 : i32, i32, i32
  }
}

module attributes {stable_mosaic.version = 11 : i64} {
  func.func @flash_attn_kernel(%arg0: i32, %arg1: i32, %arg2: i32, %arg3: memref<1x256x128xbf16, #tpu.memory_space<vmem>>, %arg4: memref<1x256x128xbf16, #tpu.memory_space<vmem>>, %arg5: memref<1x256x128xbf16, #tpu.memory_space<vmem>>, %arg6: memref<1x256x128xbf16, #tpu.memory_space<vmem>>, %arg7: memref<256x1xf32, #tpu.memory_space<vmem>>, %arg8: memref<256x1xf32, #tpu.memory_space<vmem>>, %arg9: memref<256x128xf32, #tpu.memory_space<vmem>>) attributes {dimension_semantics = [#tpu.dimension_semantics<parallel>, #tpu.dimension_semantics<parallel>, #tpu.dimension_semantics<arbitrary>], iteration_bounds = array<i64: 2, 1, 1>, scalar_prefetch = 0 : i64, scratch_operands = 3 : i64, tpu.core_type = #tpu.core_type<tc>, window_params = [{transform_indices = @transform_0, window_bounds = array<i64: 1, 256, 128>}, {transform_indices = @transform_1, window_bounds = array<i64: 1, 256, 128>}, {transform_indices = @transform_2, window_bounds = array<i64: 1, 256, 128>}, {transform_indices = @transform_3, window_bounds = array<i64: 1, 256, 128>}]} {
    %c0_i32 = arith.constant 0 : i32
    %0 = arith.cmpi eq, %arg2, %c0_i32 : i32
    %1 = arith.extui %0 : i1 to i32
    %c0_i32_0 = arith.constant 0 : i32
    %2 = arith.cmpi ne, %1, %c0_i32_0 : i32
    scf.if %2 {
      %cst_28 = arith.constant 0xFF800000 : f32
      %37 = vector.broadcast %cst_28 : f32 to vector<256x1xf32>
      %c0_29 = arith.constant 0 : index
      %c0_30 = arith.constant 0 : index
      %38 = vector.load %arg7[%c0_29, %c0_30] : memref<256x1xf32, #tpu.memory_space<vmem>>, vector<256x1xf32>
      tpu.vector_store %arg7[%c0_29, %c0_30], %37 {strides = array<i32>} : memref<256x1xf32, #tpu.memory_space<vmem>>, vector<256x1xf32>,
      %cst_31 = arith.constant 0.000000e+00 : f32
      %39 = vector.broadcast %cst_31 : f32 to vector<256x1xf32>
      %c0_32 = arith.constant 0 : index
      %c0_33 = arith.constant 0 : index
      %40 = vector.load %arg8[%c0_32, %c0_33] : memref<256x1xf32, #tpu.memory_space<vmem>>, vector<256x1xf32>
      tpu.vector_store %arg8[%c0_32, %c0_33], %39 {strides = array<i32>} : memref<256x1xf32, #tpu.memory_space<vmem>>, vector<256x1xf32>,
      %cst_34 = arith.constant 0.000000e+00 : f32
      %41 = vector.broadcast %cst_34 : f32 to vector<256x128xf32>
      %c0_35 = arith.constant 0 : index
      %c0_36 = arith.constant 0 : index
      %42 = vector.load %arg9[%c0_35, %c0_36] : memref<256x128xf32, #tpu.memory_space<vmem>>, vector<256x128xf32>
      tpu.vector_store %arg9[%c0_35, %c0_36], %41 {strides = array<i32>} : memref<256x128xf32, #tpu.memory_space<vmem>>, vector<256x128xf32>,
    } else {
    }
    %c0 = arith.constant 0 : index
    %c0_1 = arith.constant 0 : index
    %c0_2 = arith.constant 0 : index
    %3 = vector.load %arg3[%c0, %c0_1, %c0_2] : memref<1x256x128xbf16, #tpu.memory_space<vmem>>, vector<1x256x128xbf16>
    %4 = vector.shape_cast %3 : vector<1x256x128xbf16> to vector<256x128xbf16>
    %c0_3 = arith.constant 0 : index
    %c0_4 = arith.constant 0 : index
    %c0_5 = arith.constant 0 : index
    %5 = vector.load %arg4[%c0_3, %c0_4, %c0_5] : memref<1x256x128xbf16, #tpu.memory_space<vmem>>, vector<1x256x128xbf16>
    %6 = vector.shape_cast %5 : vector<1x256x128xbf16> to vector<256x128xbf16>
    %cst = arith.constant dense<0.000000e+00> : vector<256x256xf32>
    %7 = tpu.matmul %4, %6, %cst {dimension_numbers = #tpu.dot_dimension_numbers<[1], [1], [0], [0], [0, 0, 1, 0], [], []>} : vector<256x128xbf16>, vector<256x128xbf16>, vector<256x256xf32> -> vector<256x256xf32>
    %c0_6 = arith.constant 0 : index
    %c0_7 = arith.constant 0 : index
    %8 = vector.load %arg7[%c0_6, %c0_7] : memref<256x1xf32, #tpu.memory_space<vmem>>, vector<256x1xf32>
    %cst_8 = arith.constant dense<0xFF800000> : vector<256xf32>
    %9 = vector.multi_reduction <maximumf>, %7, %cst_8 [1] : vector<256x256xf32> to vector<256xf32>
    %10 = vector.shape_cast %9 : vector<256xf32> to vector<256x1xf32>
    %11 = arith.maximumf %8, %10 : vector<256x1xf32>
    %c0_9 = arith.constant 0 : index
    %c0_10 = arith.constant 0 : index
    %12 = vector.load %arg7[%c0_9, %c0_10] : memref<256x1xf32, #tpu.memory_space<vmem>>, vector<256x1xf32>
    %13 = arith.subf %12, %11 : vector<256x1xf32>
    %14 = math.exp %13 : vector<256x1xf32>
    %15 = vector.broadcast %11 : vector<256x1xf32> to vector<256x256xf32>
    %16 = arith.subf %7, %15 : vector<256x256xf32>
    %17 = math.exp %16 : vector<256x256xf32>
    %c0_11 = arith.constant 0 : index
    %c0_12 = arith.constant 0 : index
    %18 = vector.load %arg8[%c0_11, %c0_12] : memref<256x1xf32, #tpu.memory_space<vmem>>, vector<256x1xf32>
    %19 = arith.mulf %14, %18 : vector<256x1xf32>
    %cst_13 = arith.constant dense<0.000000e+00> : vector<256xf32>
    %20 = vector.multi_reduction <add>, %17, %cst_13 [1] : vector<256x256xf32> to vector<256xf32>
    %21 = vector.shape_cast %20 : vector<256xf32> to vector<256x1xf32>
    %22 = arith.addf %19, %21 : vector<256x1xf32>
    %c0_14 = arith.constant 0 : index
    %c0_15 = arith.constant 0 : index
    %23 = vector.load %arg8[%c0_14, %c0_15] : memref<256x1xf32, #tpu.memory_space<vmem>>, vector<256x1xf32>
    tpu.vector_store %arg8[%c0_14, %c0_15], %22 {strides = array<i32>} : memref<256x1xf32, #tpu.memory_space<vmem>>, vector<256x1xf32>,
    %c0_16 = arith.constant 0 : index
    %c0_17 = arith.constant 0 : index
    %24 = vector.load %arg9[%c0_16, %c0_17] : memref<256x128xf32, #tpu.memory_space<vmem>>, vector<256x128xf32>
    %25 = vector.broadcast %14 : vector<256x1xf32> to vector<256x128xf32>
    %26 = arith.mulf %25, %24 : vector<256x128xf32>
    %27 = arith.truncf %17 : vector<256x256xf32> to vector<256x256xbf16>
    %c0_18 = arith.constant 0 : index
    %c0_19 = arith.constant 0 : index
    %c0_20 = arith.constant 0 : index
    %28 = vector.load %arg5[%c0_18, %c0_19, %c0_20] : memref<1x256x128xbf16, #tpu.memory_space<vmem>>, vector<1x256x128xbf16>
    %29 = vector.shape_cast %28 : vector<1x256x128xbf16> to vector<256x128xbf16>
    %cst_21 = arith.constant dense<0.000000e+00> : vector<256x128xf32>
    %30 = tpu.matmul %27, %29, %cst_21 {dimension_numbers = #tpu.dot_dimension_numbers<[1], [0], [0], [1], [0, 0, 1, 1], [], []>} : vector<256x256xbf16>, vector<256x128xbf16>, vector<256x128xf32> -> vector<256x128xf32>
    %31 = arith.addf %26, %30 : vector<256x128xf32>
    %c0_22 = arith.constant 0 : index
    %c0_23 = arith.constant 0 : index
    %32 = vector.load %arg9[%c0_22, %c0_23] : memref<256x128xf32, #tpu.memory_space<vmem>>, vector<256x128xf32>
    tpu.vector_store %arg9[%c0_22, %c0_23], %31 {strides = array<i32>} : memref<256x128xf32, #tpu.memory_space<vmem>>, vector<256x128xf32>,
    %c0_24 = arith.constant 0 : index
    %c0_25 = arith.constant 0 : index
    %33 = vector.load %arg7[%c0_24, %c0_25] : memref<256x1xf32, #tpu.memory_space<vmem>>, vector<256x1xf32>
    tpu.vector_store %arg7[%c0_24, %c0_25], %11 {strides = array<i32>} : memref<256x1xf32, #tpu.memory_space<vmem>>, vector<256x1xf32>,
    %c0_i32_26 = arith.constant 0 : i32
    %34 = arith.cmpi eq, %arg2, %c0_i32_26 : i32
    %35 = arith.extui %34 : i1 to i32
    %c0_i32_27 = arith.constant 0 : i32
    %36 = arith.cmpi ne, %35, %c0_i32_27 : i32
    scf.if %36 {
      %c0_28 = arith.constant 0 : index
      %c0_29 = arith.constant 0 : index
      %37 = vector.load %arg9[%c0_28, %c0_29] : memref<256x128xf32, #tpu.memory_space<vmem>>, vector<256x128xf32>
      %c0_30 = arith.constant 0 : index
      %c0_31 = arith.constant 0 : index
      %38 = vector.load %arg8[%c0_30, %c0_31] : memref<256x1xf32, #tpu.memory_space<vmem>>, vector<256x1xf32>
      %39 = tpu.reciprocal %38 {approx = true} : vector<256x1xf32> -> vector<256x1xf32>
      %40 = vector.broadcast %39 : vector<256x1xf32> to vector<256x128xf32>
      %41 = arith.mulf %37, %40 : vector<256x128xf32>
      %42 = arith.truncf %41 : vector<256x128xf32> to vector<256x128xbf16>
      %c0_32 = arith.constant 0 : index
      %c0_33 = arith.constant 0 : index
      %c0_34 = arith.constant 0 : index
      %43 = vector.load %arg6[%c0_32, %c0_33, %c0_34] : memref<1x256x128xbf16, #tpu.memory_space<vmem>>, vector<1x256x128xbf16>
      %44 = vector.shape_cast %43 : vector<1x256x128xbf16> to vector<256x128xbf16>
      %45 = vector.shape_cast %42 : vector<256x128xbf16> to vector<1x256x128xbf16>
      tpu.vector_store %arg6[%c0_32, %c0_33, %c0_34], %45 {strides = array<i32>} : memref<1x256x128xbf16, #tpu.memory_space<vmem>>, vector<1x256x128xbf16>,
    } else {
    }
    return
  }
  func.func @transform_0(%arg0: i32, %arg1: i32, %arg2: i32) -> (i32, i32, i32) {
    %c0_i32 = arith.constant 0 : i32
    %c0_i32_0 = arith.constant 0 : i32
    return %arg0, %arg1, %c0_i32 : i32, i32, i32
  }
  func.func @transform_1(%arg0: i32, %arg1: i32, %arg2: i32) -> (i32, i32, i32) {
    %c1_i32 = arith.constant 1 : i32
    %c0_i32 = arith.constant 0 : i32
    return %arg0, %arg2, %c1_i32 : i32, i32, i32
  }
  func.func @transform_2(%arg0: i32, %arg1: i32, %arg2: i32) -> (i32, i32, i32) {
    %c2_i32 = arith.constant 2 : i32
    %c0_i32 = arith.constant 0 : i32
    return %arg0, %arg2, %c2_i32 : i32, i32, i32
  }
  func.func @transform_3(%arg0: i32, %arg1: i32, %arg2: i32) -> (i32, i32, i32) {
    %c0_i32 = arith.constant 0 : i32
    %c0_i32_0 = arith.constant 0 : i32
    return %arg0, %arg1, %c0_i32 : i32, i32, i32
  }
}

module attributes {stable_mosaic.version = 11 : i64} {
  func.func @linear_bias_residual_kernel(%arg0: i32, %arg1: i32, %arg2: i32, %arg3: memref<512x128xbf16, #tpu.memory_space<vmem>>, %arg4: memref<128x128xbf16, #tpu.memory_space<vmem>>, %arg5: memref<1x128xf32, #tpu.memory_space<vmem>>, %arg6: memref<512x128xf32, #tpu.memory_space<vmem>>, %arg7: memref<512x128xf32, #tpu.memory_space<vmem>>, %arg8: memref<512x128xf32, #tpu.memory_space<vmem>>) attributes {dimension_semantics = [#tpu.dimension_semantics<parallel>, #tpu.dimension_semantics<parallel>, #tpu.dimension_semantics<arbitrary>], iteration_bounds = array<i64: 1, 1, 1>, scalar_prefetch = 0 : i64, scratch_operands = 1 : i64, tpu.core_type = #tpu.core_type<tc>, window_params = [{transform_indices = @transform_0, window_bounds = array<i64: 512, 128>}, {transform_indices = @transform_1, window_bounds = array<i64: 128, 128>}, {transform_indices = @transform_2, window_bounds = array<i64: 1, 128>}, {transform_indices = @transform_3, window_bounds = array<i64: 512, 128>}, {transform_indices = @transform_4, window_bounds = array<i64: 512, 128>}]} {
    %c0_i32 = arith.constant 0 : i32
    %0 = arith.cmpi eq, %arg2, %c0_i32 : i32
    %1 = arith.extui %0 : i1 to i32
    %c0_i32_0 = arith.constant 0 : i32
    %2 = arith.cmpi ne, %1, %c0_i32_0 : i32
    scf.if %2 {
      %cst_10 = arith.constant 0.000000e+00 : f32
      %12 = vector.broadcast %cst_10 : f32 to vector<512x128xf32>
      %c0_11 = arith.constant 0 : index
      %c0_12 = arith.constant 0 : index
      %13 = vector.load %arg8[%c0_11, %c0_12] : memref<512x128xf32, #tpu.memory_space<vmem>>, vector<512x128xf32>
      tpu.vector_store %arg8[%c0_11, %c0_12], %12 {strides = array<i32>} : memref<512x128xf32, #tpu.memory_space<vmem>>, vector<512x128xf32>,
    } else {
    }
    %c0 = arith.constant 0 : index
    %c0_1 = arith.constant 0 : index
    %3 = vector.load %arg8[%c0, %c0_1] : memref<512x128xf32, #tpu.memory_space<vmem>>, vector<512x128xf32>
    %c0_2 = arith.constant 0 : index
    %c0_3 = arith.constant 0 : index
    %4 = vector.load %arg3[%c0_2, %c0_3] : memref<512x128xbf16, #tpu.memory_space<vmem>>, vector<512x128xbf16>
    %c0_4 = arith.constant 0 : index
    %c0_5 = arith.constant 0 : index
    %5 = vector.load %arg4[%c0_4, %c0_5] : memref<128x128xbf16, #tpu.memory_space<vmem>>, vector<128x128xbf16>
    %cst = arith.constant dense<0.000000e+00> : vector<512x128xf32>
    %6 = tpu.matmul %4, %5, %cst {dimension_numbers = #tpu.dot_dimension_numbers<[1], [0], [0], [1], [0, 0, 1, 1], [], []>} : vector<512x128xbf16>, vector<128x128xbf16>, vector<512x128xf32> -> vector<512x128xf32>
    %7 = arith.addf %3, %6 : vector<512x128xf32>
    %c0_6 = arith.constant 0 : index
    %c0_7 = arith.constant 0 : index
    %8 = vector.load %arg8[%c0_6, %c0_7] : memref<512x128xf32, #tpu.memory_space<vmem>>, vector<512x128xf32>
    tpu.vector_store %arg8[%c0_6, %c0_7], %7 {strides = array<i32>} : memref<512x128xf32, #tpu.memory_space<vmem>>, vector<512x128xf32>,
    %c0_i32_8 = arith.constant 0 : i32
    %9 = arith.cmpi eq, %arg2, %c0_i32_8 : i32
    %10 = arith.extui %9 : i1 to i32
    %c0_i32_9 = arith.constant 0 : i32
    %11 = arith.cmpi ne, %10, %c0_i32_9 : i32
    scf.if %11 {
      %c0_10 = arith.constant 0 : index
      %c0_11 = arith.constant 0 : index
      %12 = vector.load %arg8[%c0_10, %c0_11] : memref<512x128xf32, #tpu.memory_space<vmem>>, vector<512x128xf32>
      %c0_12 = arith.constant 0 : index
      %c0_13 = arith.constant 0 : index
      %13 = vector.load %arg5[%c0_12, %c0_13] : memref<1x128xf32, #tpu.memory_space<vmem>>, vector<1x128xf32>
      %14 = vector.broadcast %13 : vector<1x128xf32> to vector<512x128xf32>
      %15 = arith.addf %12, %14 : vector<512x128xf32>
      %c0_14 = arith.constant 0 : index
      %c0_15 = arith.constant 0 : index
      %16 = vector.load %arg6[%c0_14, %c0_15] : memref<512x128xf32, #tpu.memory_space<vmem>>, vector<512x128xf32>
      %17 = arith.addf %15, %16 : vector<512x128xf32>
      %c0_16 = arith.constant 0 : index
      %c0_17 = arith.constant 0 : index
      %18 = vector.load %arg7[%c0_16, %c0_17] : memref<512x128xf32, #tpu.memory_space<vmem>>, vector<512x128xf32>
      tpu.vector_store %arg7[%c0_16, %c0_17], %17 {strides = array<i32>} : memref<512x128xf32, #tpu.memory_space<vmem>>, vector<512x128xf32>,
    } else {
    }
    return
  }
  func.func @transform_0(%arg0: i32, %arg1: i32, %arg2: i32) -> (i32, i32) {
    %c0_i32 = arith.constant 0 : i32
    return %arg0, %arg2 : i32, i32
  }
  func.func @transform_1(%arg0: i32, %arg1: i32, %arg2: i32) -> (i32, i32) {
    %c0_i32 = arith.constant 0 : i32
    return %arg2, %arg1 : i32, i32
  }
  func.func @transform_2(%arg0: i32, %arg1: i32, %arg2: i32) -> (i32, i32) {
    %c0_i32 = arith.constant 0 : i32
    %c0_i32_0 = arith.constant 0 : i32
    return %c0_i32, %arg1 : i32, i32
  }
  func.func @transform_3(%arg0: i32, %arg1: i32, %arg2: i32) -> (i32, i32) {
    %c0_i32 = arith.constant 0 : i32
    return %arg0, %arg1 : i32, i32
  }
  func.func @transform_4(%arg0: i32, %arg1: i32, %arg2: i32) -> (i32, i32) {
    %c0_i32 = arith.constant 0 : i32
    return %arg0, %arg1 : i32, i32
  }
}

</mosaic_0001>

<bundles_post_ra>
// kernel: spatial_self_attention.4
= control target key start
LH: loop header
LB: loop body
LE: loop exit
PB: predicated region body
PF: predicated region fallthrough
CT: control target
= control target key end

     0   :  { %10 = vsyncpa [#allocation5], 0  ;;  %s1463_s0 = inlined_call_operand.hbm [shape: f32[2,256,128], index: 0, kind: input, shape index: {}]   ;;  %s1464_s1 = inlined_call_operand.vmem [shape: f32[128,32], index: 1, kind: input, shape index: {}]   ;;  %s1465_s2 = inlined_call_operand.vmem [shape: f32[32,128], index: 2, kind: input, shape index: {}]   ;;  %s1466_s3 = inlined_call_operand.vmem [shape: f32[1,128], index: 3, kind: input, shape index: {}]   ;;  %s1467_s4 = inlined_call_operand.vmem [shape: f32[1,128], index: 4, kind: input, shape index: {}]   ;;  %s1468_s5 = inlined_call_operand.vmem [shape: f32[2,2,128], index: 5, kind: output, shape index: {}]  }
   0x1   :  { %12 = vsyncpa [#allocation5 + $0x1], 0  ;;  %s1209_s18 = smov 0   ;;  %s1211_s19 = smov 0  }
   0x2   :  { %s1213_s20 = smov 0   ;;  %s1215_s21 = smov 0  }
   0x3   :  { %s1217_s22 = smov 0   ;;  %s1219_s23 = smov 0  }
   0x4 LB: > { %s818_s24 = sadd.s32 4294967295, %s1171_s23   ;;  %s30_s25 = sadd.s32 1, %s1167_s22  ;;  %s1171_s23 = sphi %s1219_s23, %s18_s23   ;;  %s1167_s22 = sphi %s1217_s22, %s1476_s22   ;;  %s1163_s21 = sphi %s1215_s21, %s1475_s21   ;;  %s1159_s20 = sphi %s1213_s20, %s1474_s20   ;;  %s1155_s19 = sphi %s1211_s19, %s1473_s19   ;;  %s1151_s18 = sphi %s1209_s18, %s1472_s18  }
   0x5   : > { %p32_p0 = scmp.ge.s32.totalorder %s30_s25, 2  ;;  %s39_s26 = sadd.s32 1, %s1159_s20 }
   0x6   : > { %p46_p1 = scmp.ne.s32.totalorder %s1159_s20, %s1155_s19  ;;  %p47_p2 = scmp.eq.s32.totalorder %s1171_s23, 0 }
   0x7   : > { %s1478_s25 = smov (%p32_p0, %s30_s25), 0  ;;  %p52_p4 = scmp.ne.s32.totalorder %s1155_s19, %s1151_s18 }
   0x8   : > { %p1245_p3 = por %p47_p2, %p46_p1  ;;  %s34_s28 = ssub.s32 %s1167_s22, %s1478_s25 }
   0x9   : > { %p53_p5 = scmp.eq.s32.totalorder %s818_s24, 0  ;;  %p37_p6 = scmp.eq.s32.totalorder %s34_s28, 0 }
   0xa   : > { %p1035_p8 = scmp.lt.s32.totalorder %s1171_s23, 2  ;;  %s198_s6 = sand.u32 1, %s1159_s20  }
   0xb   : > { %p1252_p7 = por %p53_p5, %p52_p4  ;;  %s832_s7 = sshll.u32 %s1167_s22, 12 }
   0xc   : > { %s1258_s30 = scalar_select %p37_p6, %s1159_s20, %s39_s26  }
   0xd   : > { %s822_s8 = sshll.u32 %s198_s6, 8  ;;  %s1265_s11 = scalar_lea.hbm %s1463_s0, %s832_s7 }
   0xe   : > { %s202_s12 = scalar_lea.vmem [#allocation4], %s822_s8  ;;  %p1269_p9 = pnand %p1035_p8, %p1245_p3 }
   0xf   : > { %s211_s13 = sshll.u32 %s202_s12, 4  ;;  %s1275_s15 = scalar_lea.sflag [#allocation5], %s198_s6  ;;  %s1273_s13 = int_to_ptr.vmem [resolvable:$true] %s211_s13 }
  0x10   : > { %s1091_s16 = scalar_lea.hbm %s1265_s11, 4096  ;;  %p1093_p11 = pneg %p1269_p9 }
  0x11   : > { %p1092_p10 = scmp.ne.s32.totalorder %s1265_s11, %s1091_s16  ;;  %s1096_s24 = scalar_lea.hbm %s1463_s0, 8192 }
  0x12   : > { %p1097_p0 = scmp.lt.u32.totalorder %s1265_s11, %s1463_s0  ;;  %p1098_p1 = scmp.lt.u32.totalorder %s1096_s24, %s1091_s16 }
  0x13   : > { %p1094_p12 = pnand %p1093_p11, %p1092_p10  ;;  %p1100_p3 = scmp.lt.u32.totalorder %s1091_s16, %s1265_s11 }
  0x14   : > { %p1099_p2 = por %p1098_p1, %p1097_p0 }
  0x15   : > { %p1095_p13 = pneg %p1094_p12 }
  0x16   : > { %p1101_p4 = por %p1100_p3, %p1099_p2 }
  0x18   : > { %p1102_p5 = pnand %p1101_p4, %p1095_p13 }
  0x1a   : > { %1105 = shalt.err (!%p1102_p5)
}
  0x1b   : > { %s1106_s28 = scalar_lea.vmem %s1273_s13, 4096  ;;  %s1173_s6 = smov [#allocation4]  }
  0x1c   : > { %p1107_p6 = scmp.ne.s32.totalorder %s1273_s13, %s1106_s28  ;;  %s1111_s7 = sshll.u32 %s1173_s6, 4  ;;  %s1112_s7 = int_to_ptr.vmem [resolvable:$false] %s1111_s7 }
  0x1d   : > { %s1113_s8 = scalar_lea.vmem %s1112_s7, 8192  ;;  %p1114_p12 = scmp.lt.s32.totalorder %s1273_s13, %s1112_s7 }
  0x1e   : > { %p1109_p8 = pnand %p1107_p6, %p1093_p11  ;;  %p1115_p0 = scmp.lt.s32.totalorder %s1113_s8, %s1106_s28 }
  0x20   : > { %p1110_p10 = pneg %p1109_p8  ;;  %p1116_p1 = por %p1115_p0, %p1114_p12 }
  0x22   : > { %p1117_p2 = pnand %p1116_p1, %p1110_p10 }
  0x24   : > { %1120 = shalt.err (!%p1117_p2)
}
  0x25   : > { %s1174_s9 = smov 128   ;;  %s1175_s10 = smov 8  }
  0x26   : > { %1034 = dma.hbm_to_vmem [thread:$0]  (!%p1269_p9), %s1265_s11, 4096, %s1273_s13, %s1275_s15, %s1174_s9, %s1174_s9, %s1175_s10  }
  0x27   : > { %p825_p11 = scmp.ge.s32.totalorder %s1171_s23, 1  ;;  %p219_p13 = scmp.lt.s32.totalorder %s1171_s23, 3 }
  0x29   : > { %p220_p3 = pnand %p825_p11, %p219_p13 }
  0x2a   : > { %s225_s12 = sand.u32 (!%p220_p3), 1, %s1155_s19  }
  0x2b   : > { %223 = sbr.rel (%p220_p3) target bundleno = 592 (0x250), region = 40  ;;  %s826_s16 = sshll.u32 (!%p220_p3), %s225_s12, 8 }
  0x2c   : > { %s226_s17 = scalar_lea.sflag (!%p220_p3), [#allocation5], %s225_s12  ;;  %s1306_s18 = scalar_lea.vmem (!%p220_p3), [#allocation4], %s826_s16 }
  0x32   : > { %1146 = dma.done.wait (%p1252_p7), %s226_s17, 4096  }
  0x33   : > { %1148 = vsyncadd (%p1252_p7), %s226_s17, 4294963200  ;;  %v1176_v0 = vmov 0.0|0.0   ;;  %v1177_v1 = vmov 0.0   ;;  %vm1178_vm0 = vmmov 0   ;;  %v414_v2 = vld [vmem:[%s1464_s1] sm:$0xff]  ;;  %v415_v3 = vld [vmem:[%s1464_s1 + $0x8] sm:$0xff] }
  0x34   : > { %969 = vmatprep.subr.bf16.mxu0 %v1176_v0  ;;  %993 = vmatprep.subr.bf16.mxu1 %v1176_v0  ;;  %264 = vst [vmem:[#allocation2] sm:$0x1] %v1177_v1  ;;  %265 = vst [vmem:[#allocation3] sm:$0x1] %v1177_v1  ;;  %v416_v4 = vld [vmem:[%s1464_s1 + $0x10] sm:$0xff]  ;;  %v970_v5 = vpack.c.bf16 %v415_v3, %v414_v2  ;;  %v417_v6 = vld [vmem:[%s1464_s1 + $0x18] sm:$0xff] }
  0x35   : > { %909 = vmatprep.mubr.msk.f32.mxu0 %vm1178_vm0, %v1177_v1  ;;  %944 = vmatprep.mubr.msk.f32.mxu1 %vm1178_vm0, %v1177_v1  ;;  %v973_v7 = vpack.c.bf16 %v417_v6, %v416_v4  ;;  %v418_v8 = vld [vmem:[%s1464_s1 + $0x20] sm:$0xff]  ;;  %v419_v9 = vld [vmem:[%s1464_s1 + $0x28] sm:$0xff]  ;;  %v268_v12 = vld [vmem:[%s1306_s18 + $0x10] sm:$0xff]  ;;  %vm581_vm1 = vcmask 261120   ;;  %p256_p7 = scmp.lt.s32.totalorder %s1163_s21, 1  ;;  %vm739_vm2 = vcmask 1040384  }
  0x36   : > { %971 = vmatpush3.bf16.msra.mxu0 %v970_v5  ;;  %995 = vmatpush3.bf16.msra.mxu1 %v970_v5  ;;  %v266_v10 = vld [vmem:[%s1306_s18] sm:$0xff]  ;;  %v267_v11 = vld [vmem:[%s1306_s18 + $0x8] sm:$0xff]  ;;  %v976_v14 = vpack.c.bf16 %v419_v9, %v418_v8  ;;  %v269_v15 = vld [vmem:[%s1306_s18 + $0x18] sm:$0xff]  ;;  %v341_v32 = vmul.f32 %v268_v12, %v268_v12 }
  0x37   : > { %972 = vmatprep.subr.bf16.mxu0 %v1176_v0  ;;  %996 = vmatprep.subr.bf16.mxu1 %v1176_v0  ;;  %v299_v13 = vadd.f32 %v267_v11, %v266_v10  ;;  %v420_v16 = vld [vmem:[%s1464_s1 + $0x30] sm:$0xff]  ;;  %v421_v17 = vld [vmem:[%s1464_s1 + $0x38] sm:$0xff]  ;;  %v270_v19 = vld [vmem:[%s1306_s18 + $0x20] sm:$0xff]  ;;  %v339_v27 = vmul.f32 %v266_v10, %v266_v10  ;;  %v340_v28 = vmul.f32 %v267_v11, %v267_v11  ;;  %s1480_s21 = smov (!%p256_p7, %s1163_s21), 1 }
  0x38   : > { %v979_v21 = vpack.c.bf16 %v421_v17, %v420_v16  ;;  %v271_v22 = vld [vmem:[%s1306_s18 + $0x28] sm:$0xff]  ;;  %v422_v23 = vld [vmem:[%s1464_s1 + $0x40] sm:$0xff]  ;;  %v272_v26 = vld [vmem:[%s1306_s18 + $0x30] sm:$0xff]  ;;  %v342_v37 = vmul.f32 %v269_v15, %v269_v15  ;;  %v343_v42 = vmul.f32 %v270_v19, %v270_v19  ;;  %s827_s6 = sshll.u32 %s1480_s21, 1 }
  0x39   : > { %v300_v18 = vadd.f32 %v299_v13, %v268_v12  ;;  %v423_v24 = vld [vmem:[%s1464_s1 + $0x48] sm:$0xff]  ;;  %v273_v31 = vld [vmem:[%s1306_s18 + $0x38] sm:$0xff]  ;;  %v424_v33 = vld [vmem:[%s1464_s1 + $0x50] sm:$0xff]  ;;  %v371_v38 = vadd.f32 %v340_v28, %v339_v27  ;;  %v344_v48 = vmul.f32 %v271_v22, %v271_v22  ;;  %v345_v53 = vmul.f32 %v272_v26, %v272_v26  ;;  %s259_s9 = scalar_lea.vmem %s1468_s5, %s827_s6 }
  0x3a   : > { %974 = vmatpush3.bf16.msra.mxu0 %v973_v7  ;;  %998 = vmatpush3.bf16.msra.mxu1 %v973_v7  ;;  %v982_v30 = vpack.c.bf16 %v423_v24, %v422_v23  ;;  %v425_v34 = vld [vmem:[%s1464_s1 + $0x58] sm:$0xff]  ;;  %v274_v36 = vld [vmem:[%s1306_s18 + $0x40] sm:$0xff]  ;;  %v275_v41 = vld [vmem:[%s1306_s18 + $0x48] sm:$0xff]  ;;  %v346_v59 = vmul.f32 %v273_v31, %v273_v31 }
  0x3b   : > { %975 = vmatprep.subr.bf16.mxu0 %v1176_v0  ;;  %999 = vmatprep.subr.bf16.mxu1 %v1176_v0  ;;  %v301_v20 = vadd.f32 %v300_v18, %v269_v15  ;;  %v985_v40 = vpack.c.bf16 %v425_v34, %v424_v33  ;;  %v372_v43 = vadd.f32 %v371_v38, %v341_v32  ;;  %v426_v44 = vld [vmem:[%s1464_s1 + $0x60] sm:$0xff]  ;;  %v427_v45 = vld [vmem:[%s1464_s1 + $0x68] sm:$0xff]  ;;  %v276_v47 = vld [vmem:[%s1306_s18 + $0x50] sm:$0xff] }
  0x3c   : > { %v988_v51 = vpack.c.bf16 %v427_v45, %v426_v44  ;;  %v277_v52 = vld [vmem:[%s1306_s18 + $0x58] sm:$0xff]  ;;  %v428_v55 = vld [vmem:[%s1464_s1 + $0x70] sm:$0xff]  ;;  %v278_v58 = vld [vmem:[%s1306_s18 + $0x60] sm:$0xff]  ;;  %v347_v2 = vmul.f32 %v274_v36, %v274_v36  ;;  %v348_v6 = vmul.f32 %v275_v41, %v275_v41  ;;  %v349_v10 = vmul.f32 %v276_v47, %v276_v47 }
  0x3d   : > { %v302_v25 = vadd.f32 %v301_v20, %v270_v19  ;;  %v373_v49 = vadd.f32 %v372_v43, %v342_v37  ;;  %v429_v56 = vld [vmem:[%s1464_s1 + $0x78] sm:$0xff]  ;;  %v279_v63 = vld [vmem:[%s1306_s18 + $0x68] sm:$0xff]  ;;  %v282_v13 = vld [vmem:[%s1306_s18 + $0x80] sm:$0xff]  ;;  %v351_v18 = vmul.f32 %v278_v58, %v278_v58 }
  0x3e   : > { %977 = vmatpush3.bf16.msra.mxu0 %v976_v14  ;;  %1001 = vmatpush3.bf16.msra.mxu1 %v976_v14  ;;  %v991_v62 = vpack.c.bf16 %v429_v56, %v428_v55  ;;  %v280_v5 = vld [vmem:[%s1306_s18 + $0x70] sm:$0xff]  ;;  %v281_v9 = vld [vmem:[%s1306_s18 + $0x78] sm:$0xff]  ;;  %v350_v14 = vmul.f32 %v277_v52, %v277_v52  ;;  %v283_v17 = vld [vmem:[%s1306_s18 + $0x88] sm:$0xff]  ;;  %v355_v34 = vmul.f32 %v282_v13, %v282_v13 }
  0x3f   : > { %978 = vmatprep.subr.bf16.mxu0 %v1176_v0  ;;  %1002 = vmatprep.subr.bf16.mxu1 %v1176_v0  ;;  %v303_v29 = vadd.f32 %v302_v25, %v271_v22  ;;  %v374_v54 = vadd.f32 %v373_v49, %v343_v42  ;;  %v352_v22 = vmul.f32 %v279_v63, %v279_v63  ;;  %v285_v25 = vld [vmem:[%s1306_s18 + $0x98] sm:$0xff]  ;;  %v287_v33 = vld [vmem:[%s1306_s18 + $0xa8] sm:$0xff]  ;;  %v288_v37 = vld [vmem:[%s1306_s18 + $0xb0] sm:$0xff] }
  0x40   : > { %v356_v38 = vmul.f32 %v283_v17, %v283_v17  ;;  %v290_v45 = vld [vmem:[%s1306_s18 + $0xc0] sm:$0xff]  ;;  %v291_v49 = vld [vmem:[%s1306_s18 + $0xc8] sm:$0xff] }
  0x41   : > { %v304_v35 = vadd.f32 %v303_v29, %v272_v26  ;;  %v375_v60 = vadd.f32 %v374_v54, %v344_v48  ;;  %v353_v26 = vmul.f32 %v280_v5, %v280_v5  ;;  %v286_v29 = vld [vmem:[%s1306_s18 + $0xa0] sm:$0xff]  ;;  %v360_v54 = vmul.f32 %v287_v33, %v287_v33 }
  0x42   : > { %980 = vmatpush3.bf16.msra.mxu0 %v979_v21  ;;  %1004 = vmatpush3.bf16.msra.mxu1 %v979_v21  ;;  %v284_v21 = vld [vmem:[%s1306_s18 + $0x90] sm:$0xff] }
  0x43   : > { %981 = vmatprep.subr.bf16.mxu0 %v1176_v0  ;;  %1005 = vmatprep.subr.bf16.mxu1 %v1176_v0  ;;  %v305_v39 = vadd.f32 %v304_v35, %v273_v31  ;;  %v376_v3 = vadd.f32 %v375_v60, %v345_v53  ;;  %v357_v42 = vmul.f32 %v284_v21, %v284_v21  ;;  %v292_v53 = vld [vmem:[%s1306_s18 + $0xd0] sm:$0xff] }
  0x45   : > { %v306_v46 = vadd.f32 %v305_v39, %v274_v36  ;;  %v377_v7 = vadd.f32 %v376_v3, %v346_v59  ;;  %v295_v3 = vld [vmem:[%s1306_s18 + $0xe8] sm:$0xff] }
  0x46   : > { %983 = vmatpush3.bf16.msra.mxu0 %v982_v30  ;;  %1007 = vmatpush3.bf16.msra.mxu1 %v982_v30  ;;  %v354_v30 = vmul.f32 %v281_v9, %v281_v9 }
  0x47   : > { %984 = vmatprep.subr.bf16.mxu0 %v1176_v0  ;;  %1008 = vmatprep.subr.bf16.mxu1 %v1176_v0  ;;  %v307_v50 = vadd.f32 %v306_v46, %v275_v41  ;;  %v378_v11 = vadd.f32 %v377_v7, %v347_v2  ;;  %v289_v41 = vld [vmem:[%s1306_s18 + $0xb8] sm:$0xff]  ;;  %v358_v46 = vmul.f32 %v285_v25, %v285_v25  ;;  %v296_v7 = vld [vmem:[%s1306_s18 + $0xf0] sm:$0xff] }
  0x49   : > { %v308_v57 = vadd.f32 %v307_v50, %v276_v47  ;;  %v379_v15 = vadd.f32 %v378_v11, %v348_v6  ;;  %v359_v50 = vmul.f32 %v286_v29, %v286_v29  ;;  %v297_v11 = vld [vmem:[%s1306_s18 + $0xf8] sm:$0xff] }
  0x4a   : > { %986 = vmatpush3.bf16.msra.mxu0 %v985_v40  ;;  %1010 = vmatpush3.bf16.msra.mxu1 %v985_v40 }
  0x4b   : > { %987 = vmatprep.subr.bf16.mxu0 %v1176_v0  ;;  %1011 = vmatprep.subr.bf16.mxu1 %v1176_v0  ;;  %v309_v61 = vadd.f32 %v308_v57, %v277_v52  ;;  %v380_v19 = vadd.f32 %v379_v15, %v349_v10  ;;  %v293_v57 = vld [vmem:[%s1306_s18 + $0xd8] sm:$0xff] }
  0x4c   : > { %v366_v15 = vmul.f32 %v293_v57, %v293_v57 }
  0x4d   : > { %v310_v4 = vadd.f32 %v309_v61, %v278_v58  ;;  %v381_v23 = vadd.f32 %v380_v19, %v350_v14  ;;  %v361_v58 = vmul.f32 %v288_v37, %v288_v37  ;;  %v294_v61 = vld [vmem:[%s1306_s18 + $0xe0] sm:$0xff] }
  0x4e   : > { %989 = vmatpush3.bf16.msra.mxu0 %v988_v51  ;;  %1013 = vmatpush3.bf16.msra.mxu1 %v988_v51 }
  0x4f   : > { %990 = vmatprep.subr.bf16.mxu0 %v1176_v0  ;;  %1014 = vmatprep.subr.bf16.mxu1 %v1176_v0  ;;  %v311_v8 = vadd.f32 %v310_v4, %v279_v63  ;;  %v382_v27 = vadd.f32 %v381_v23, %v351_v18  ;;  %v363_v4 = vmul.f32 %v290_v45, %v290_v45 }
  0x50   : > { %v367_v18 = vmul.f32 %v294_v61, %v294_v61 }
  0x51   : > { %v312_v12 = vadd.f32 %v311_v8, %v280_v5  ;;  %v383_v31 = vadd.f32 %v382_v27, %v352_v22  ;;  %v364_v8 = vmul.f32 %v291_v49, %v291_v49  ;;  %v370_v27 = vmul.f32 %v297_v11, %v297_v11 }
  0x52   : > { %992 = vmatpush3.bf16.msra.mxu0 %v991_v62  ;;  %1016 = vmatpush3.bf16.msra.mxu1 %v991_v62  ;;  %v362_v62 = vmul.f32 %v289_v41, %v289_v41 }
  0x53   : > { %1017 = vmatprep.subr.bf16.mxu0 %v1176_v0  ;;  %1023 = vmatprep.subr.bf16.mxu1 %v1176_v0  ;;  %v313_v16 = vadd.f32 %v312_v12, %v281_v9  ;;  %v384_v35 = vadd.f32 %v383_v31, %v353_v26  ;;  %v365_v12 = vmul.f32 %v292_v53, %v292_v53 }
  0x55   : > { %v314_v20 = vadd.f32 %v313_v16, %v282_v13  ;;  %v385_v39 = vadd.f32 %v384_v35, %v354_v30 }
  0x57   : > { %v315_v24 = vadd.f32 %v314_v20, %v283_v17  ;;  %v386_v43 = vadd.f32 %v385_v39, %v355_v34  ;;  %v577_v39 = vld [vmem:[%s1465_s2] sm:$0xff] }
  0x59   : > { %v316_v28 = vadd.f32 %v315_v24, %v284_v21  ;;  %v387_v47 = vadd.f32 %v386_v43, %v356_v38  ;;  %v368_v21 = vmul.f32 %v295_v3, %v295_v3  ;;  %v369_v24 = vmul.f32 %v296_v7, %v296_v7 }
  0x5b   : > { %v317_v32 = vadd.f32 %v316_v28, %v285_v25  ;;  %v388_v51 = vadd.f32 %v387_v47, %v357_v42 }
  0x5d   : > { %v318_v36 = vadd.f32 %v317_v32, %v286_v29  ;;  %v389_v55 = vadd.f32 %v388_v51, %v358_v46  ;;  %v298_v32 = vld [vmem:[#allocation2] sm:$0x1] }
  0x5f   : > { %v319_v40 = vadd.f32 %v318_v36, %v287_v33  ;;  %v390_v59 = vadd.f32 %v389_v55, %v359_v50  ;;  %v580_v50 = vld [vmem:[%s1465_s2 + $0x18] sm:$0xff] }
  0x61   : > { %v320_v44 = vadd.f32 %v319_v40, %v288_v37  ;;  %v391_v63 = vadd.f32 %v390_v59, %v360_v54  ;;  %v578_v40 = vld [vmem:[%s1465_s2 + $0x8] sm:$0xff] }
  0x62   : > { %v1018_v43 = vpack.c.bf16 %v578_v40, %v577_v39 }
  0x63   : > { %v321_v48 = vadd.f32 %v320_v44, %v289_v41  ;;  %v392_v5 = vadd.f32 %v391_v63, %v361_v58  ;;  %v338_v44 = vld [vmem:[#allocation3] sm:$0x1]  ;;  %v728_v63 = vld [vmem:[%s1466_s3] sm:$0x1] }
  0x65   : > { %v322_v52 = vadd.f32 %v321_v48, %v290_v45  ;;  %v393_v9 = vadd.f32 %v392_v5, %v362_v62  ;;  %v734_v62 = vlaneseq }
  0x67   : > { %v323_v56 = vadd.f32 %v322_v52, %v291_v49  ;;  %v394_v13 = vadd.f32 %v393_v9, %v363_v4  ;;  %v579_v49 = vld [vmem:[%s1465_s2 + $0x10] sm:$0xff] }
  0x68   : > { %v1021_v51 = vpack.c.bf16 %v580_v50, %v579_v49 }
  0x69   : > { %v324_v60 = vadd.f32 %v323_v56, %v292_v53  ;;  %v395_v16 = vadd.f32 %v394_v13, %v364_v8 }
  0x6b   : > { %v325_v2 = vadd.f32 %v324_v60, %v293_v57  ;;  %v396_v19 = vadd.f32 %v395_v16, %v365_v12 }
  0x6d   : > { %v326_v6 = vadd.f32 %v325_v2, %v294_v61  ;;  %v397_v22 = vadd.f32 %v396_v19, %v366_v15  ;;  %v735_v2 = vshrl.u32 %v734_v62, 7 }
  0x6f   : > { %v327_v10 = vadd.f32 %v326_v6, %v295_v3  ;;  %v398_v25 = vadd.f32 %v397_v22, %v367_v18  ;;  %v730_v6 = vld [vmem:[%s1467_s4] sm:$0x1]  ;;  %v736_v8 = vsub.s32 0, %v735_v2 }
  0x71   : > { %v328_v14 = vadd.f32 %v327_v10, %v296_v7  ;;  %v399_v28 = vadd.f32 %v398_v25, %v368_v21 }
  0x73   : > { %v329_v17 = vadd.f32 %v328_v14, %v297_v11  ;;  %v400_v30 = vadd.f32 %v399_v28, %v369_v24 }
  0x75   : > { %v330_v20 = vrot.slane %v329_v17, 4  ;;  %v401_v33 = vadd.f32 %v400_v30, %v370_v27 }
  0x77   : > { %v331_v23 = vadd.f32 %v330_v20, %v329_v17  ;;  %v402_v35 = vrot.slane %v401_v33, 4 }
  0x79   : > { %v332_v26 = vrot.slane %v331_v23, 2  ;;  %v403_v37 = vadd.f32 %v402_v35, %v401_v33 }
  0x7b   : > { %v333_v29 = vadd.f32 %v332_v26, %v331_v23  ;;  %v404_v38 = vrot.slane %v403_v37, 2 }
  0x7d   : > { %v334_v31 = vrot.slane %v333_v29, 1  ;;  %v405_v41 = vadd.f32 %v404_v38, %v403_v37 }
  0x7f   : > { %v335_v34 = vadd.f32 %v334_v31, %v333_v29  ;;  %v406_v42 = vrot.slane %v405_v41, 1 }
  0x81   : > { %v336_v36 = vadd.f32 %v335_v34, %v298_v32  ;;  %v407_v45 = vadd.f32 %v406_v42, %v405_v41 }
  0x83   : > { %337 = vst [vmem:[#allocation2] sm:$0x1] %v336_v36  ;;  %v408_v47 = vadd.f32 %v407_v45, %v338_v44 }
  0x85   : > { %409 = vst [vmem:[#allocation3] sm:$0x1] %v408_v47 }
  0x8a   : > { %v413_v46 = vld [vmem:[#allocation2] sm:$0x1] }
  0x8b   : > { %910 = vmatmul.mubr.f32.vlgmr.msra.gmra.mrb[0].mxu0 %v413_v46 }
  0x8c   : > { %1019 = vmatpush3.bf16.msra.mxu0 %v1018_v43  ;;  %955 = vmatprep.mubr.msk.f32.mxu0 %vm1178_vm0, %v1177_v1  ;;  %v501_v48 = vld [vmem:[#allocation3] sm:$0x1] }
  0x8d   : > { %1020 = vmatprep.subr.bf16.mxu0 %v1176_v0  ;;  %945 = vmatmul.mubr.f32.vlgmr.msra.gmra.mrb[0].mxu1 %v501_v48 }
  0x8e   : > { %1025 = vmatpush3.bf16.msra.mxu1 %v1018_v43  ;;  %966 = vmatprep.mubr.msk.f32.mxu1 %vm1178_vm0, %v1177_v1 }
  0x8f   : > { %1026 = vmatprep.subr.bf16.mxu1 %v1176_v0 }
  0x90   : > { %1022 = vmatpush3.bf16.msra.mxu0 %v1021_v51 }
  0x92   : > { %1028 = vmatpush3.bf16.msra.mxu1 %v1021_v51 }
 0x15e   : > { %v496_v52 = vpop.f32.mrb[0].mxu0 }
 0x15f   : > { %v500_v53 = vmul.f32 0.0009765625, %v496_v52  ;;  %v911_v54 = vpop.f32.mrb[1].mxu0 }
 0x160   : > { %v568_v0 = vpop.f32.mrb[0].mxu1 }
 0x161   : > { %956 = vmatmul.mubr.msk.f32.vlgmr.msra.gmra.mrb[2].mxu0 %vm581_vm1, %v500_v53  ;;  %v573_v1 = vmul.f32 %v500_v53, %v500_v53  ;;  %v572_v55 = vmul.f32 0.0009765625, %v568_v0  ;;  %v946_v56 = vpop.f32.mrb[1].mxu1 }
 0x163   : > { %v574_v57 = vsub.f32 %v572_v55, %v573_v1 }
 0x165   : > { %v575_v58 = vadd.f32 1e-06, %v574_v57 }
 0x167   : > { %1089 = vrsqrt.f32 %v575_v58 }
 0x171   : > { %v1090_v59 = vpop.eup %1089 }
 0x172   : > { %967 = vmatmul.mubr.msk.f32.vlgmr.msra.gmra.mrb[2].mxu1 %vm581_vm1, %v1090_v59 }
 0x234   : > { %v651_v60 = vpop.f32.mrb[2].mxu0 }
 0x235   : > { %v957_v61 = vpop.f32.mrb[3].mxu0 }
 0x245   : > { %v724_v3 = vpop.f32.mrb[2].mxu1 }
 0x246   : > { %v729_v4 = vmul.f32 %v728_v63, %v724_v3  ;;  %v968_v5 = vpop.f32.mrb[3].mxu1 }
 0x248   : > { %v731_v7 = vmul.f32 %v729_v4, %v651_v60 }
 0x24a   : > { %v732_v9 = vsub.f32 %v730_v6, %v731_v7 }
 0x24c   : > { %v737_v10 = vrot.slane %v732_v9, %v736_v8 }
 0x24e   : > { %v740_v11 = vsel %vm739_vm2, %v729_v4, %v737_v10 }
 0x24f   : > { %741 = vst [vmem:[%s259_s9] sm:$0x3] %v740_v11 }
 0x250 PF: > { %s18_s23 = sadd.s32 1, %s1171_s23   ;;  %s1472_s18 = smov %s1155_s19 }
 0x251   : > { %p15_p9 = scmp.ge.s32.totalorder %s18_s23, 4   ;;  %s1473_s19 = smov %s1159_s20 }
 0x252   : > { %s1474_s20 = smov %s1258_s30  ;;  %s1475_s21 = smov %s1167_s22 }
 0x253   : > { %s1476_s22 = smov %s1478_s25  ;;  %17 = sbr.rel (!%p15_p9) target bundleno = 4 (0x4), region = 88 }
 0x25a   :  { %761 = vsyncpa [#allocation5], 1 }
 0x25b   :  { %763 = vsyncpa [#allocation5 + $0x1], 1 }

// kernel: spatial_self_attention.5
= control target key start
LH: loop header
LB: loop body
LE: loop exit
PB: predicated region body
PF: predicated region fallthrough
CT: control target
= control target key end

     0   :  { %s1758_s15 = smov 0   ;;  %s1760_s16 = smov 0   ;;  %s2214_s0 = inlined_call_operand.vmem [shape: f32[2,256,128], index: 0, kind: input, shape index: {}]   ;;  %s2215_s1 = inlined_call_operand.vmem [shape: f32[2,2,128], index: 1, kind: input, shape index: {}]   ;;  %s2216_s2 = inlined_call_operand.vmem [shape: bf16[128,384], index: 2, kind: input, shape index: {}]   ;;  %s2217_s3 = inlined_call_operand.vmem [shape: f32[1,384], index: 3, kind: input, shape index: {}]   ;;  %s2218_s4 = inlined_call_operand.vmem [shape: bf16[2,256,384], index: 4, kind: output, shape index: {}]  }
   0x1   :  { %s1762_s17 = smov 0  }
   0x2 LB: > { %s26_s18 = sadd.s32 1, %s1726_s16  ;;  %p1402_p0 = scmp.ge.s32.totalorder %s1730_s17, 1  ;;  %s1730_s17 = sphi %s1762_s17, %s14_s17   ;;  %s1726_s16 = sphi %s1760_s16, %s2220_s16   ;;  %s1722_s15 = sphi %s1758_s15, %s2219_s15  }
   0x3   : > { %p28_p1 = scmp.ge.s32.totalorder %s26_s18, 2  ;;  %p192_p2 = scmp.lt.s32.totalorder %s1730_s17, 3 }
   0x5   : > { %s2222_s18 = smov (%p28_p1, %s26_s18), 0  ;;  %p193_p3 = pnand %p1402_p0, %p192_p2 }
   0x6   : > { %v1676_v0 = vld [vmem:[%s2216_s2 + $0x4] ss:$12 sps:$4 sm:$0xff] (!%p193_p3)   ;;  %v1678_v1 = vld [vmem:[%s2216_s2] ss:$12 sps:$4 sm:$0xff] (!%p193_p3)   ;;  %v1732_v2 = vmov (!%p193_p3), 0   ;;  %p232_p4 = scmp.lt.s32.totalorder (!%p193_p3), %s1722_s15, 1  ;;  %v290_v6 = vlaneseq (!%p193_p3) }
   0x7   : > { %196 = sbr.rel (%p193_p3) target bundleno = 348 (0x15c), region = 36  ;;  %587 = vmatprep.mubr.bf16.mxu0 (!%p193_p3), %v1732_v2  ;;  %707 = vmatprep.mubr.bf16.mxu1 (!%p193_p3), %v1732_v2  ;;  %v1679_v3 = vld [vmem:[%s2216_s2 + $0x1c] ss:$12 sps:$4 sm:$0xff] (!%p193_p3)   ;;  %v1681_v4 = vld [vmem:[%s2216_s2 + $0x18] ss:$12 sps:$4 sm:$0xff] (!%p193_p3)  }
   0x8   : > { %555 = vmatprep.subr.bf16.mxu0 (!%p193_p3), %v1676_v0  ;;  %1634 = vmatprep.subr.bf16.mxu1 (!%p193_p3), %v1676_v0  ;;  %v1682_v5 = vld [vmem:[%s2216_s2 + $0x34] ss:$12 sps:$4 sm:$0xff] (!%p193_p3)   ;;  %v1684_v7 = vld [vmem:[%s2216_s2 + $0x30] ss:$12 sps:$4 sm:$0xff] (!%p193_p3)   ;;  %v1685_v8 = vld [vmem:[%s2216_s2 + $0x4c] ss:$12 sps:$4 sm:$0xff] (!%p193_p3)  }
   0x9   : > { %556 = vmatpush1.bf16.msra.mxu0 (!%p193_p3), %v1678_v1  ;;  %1642 = vmatpush1.bf16.msra.mxu1 (!%p193_p3), %v1678_v1  ;;  %v1802_v9 = vshrl.u32 (!%p193_p3), %v290_v6, 7  ;;  %v1687_v10 = vld [vmem:[%s2216_s2 + $0x48] ss:$12 sps:$4 sm:$0xff] (!%p193_p3)   ;;  %v1688_v11 = vld [vmem:[%s2216_s2 + $0x64] ss:$12 sps:$4 sm:$0xff] (!%p193_p3)  }
   0xa   : > { %557 = vmatprep.subr.bf16.mxu0 (!%p193_p3), %v1679_v3  ;;  %1635 = vmatprep.subr.bf16.mxu1 (!%p193_p3), %v1679_v3  ;;  %v1690_v13 = vld [vmem:[%s2216_s2 + $0x60] ss:$12 sps:$4 sm:$0xff] (!%p193_p3)   ;;  %v1691_v15 = vld [vmem:[%s2216_s2 + $0x7c] ss:$12 sps:$4 sm:$0xff] (!%p193_p3)   ;;  %v1693_v16 = vld [vmem:[%s2216_s2 + $0x78] ss:$12 sps:$4 sm:$0xff] (!%p193_p3)  }
   0xb   : > { %v292_v12 = vsub.s32 (!%p193_p3), 0, %v1802_v9  ;;  %v328_v17 = vsub.s32 (!%p193_p3), 1, %v1802_v9  ;;  %v1694_v23 = vld [vmem:[%s2216_s2 + $0x94] ss:$12 sps:$4 sm:$0xff] (!%p193_p3)   ;;  %v1696_v29 = vld [vmem:[%s2216_s2 + $0x90] ss:$12 sps:$4 sm:$0xff] (!%p193_p3)  }
   0xc   : > { %v1697_v30 = vld [vmem:[%s2216_s2 + $0xac] ss:$12 sps:$4 sm:$0xff] (!%p193_p3)   ;;  %v1699_v38 = vld [vmem:[%s2216_s2 + $0xa8] ss:$12 sps:$4 sm:$0xff] (!%p193_p3)  }
   0xd   : > { %558 = vmatpush1.bf16.msra.mxu0 (!%p193_p3), %v1681_v4  ;;  %1643 = vmatpush1.bf16.msra.mxu1 (!%p193_p3), %v1681_v4  ;;  %v1700_v40 = vld [vmem:[%s2216_s2 + $0x8] ss:$12 sps:$4 sm:$0xff] (!%p193_p3)   ;;  %v1701_v51 = vld [vmem:[%s2216_s2 + $0x20] ss:$12 sps:$4 sm:$0xff] (!%p193_p3)  }
   0xe   : > { %s2224_s15 = smov (!%p232_p4, %s1722_s15), 1  ;;  %559 = vmatprep.subr.bf16.mxu0 %v1682_v5  ;;  %1636 = vmatprep.subr.bf16.mxu1 %v1682_v5 }
   0xf   : > { %s1405_s7 = sshll.u32 %s2224_s15, 1  ;;  %s1497_s10 = sshll.u32 %s2224_s15, 8 }
  0x10   : > { %s244_s19 = scalar_lea.vmem %s2215_s1, %s1405_s7  ;;  %s1821_s24 = scalar_lea.vmem %s2214_s0, %s1497_s10 }
  0x11   : > { %560 = vmatpush1.bf16.msra.mxu0 %v1684_v7  ;;  %1644 = vmatpush1.bf16.msra.mxu1 %v1684_v7  ;;  %v289_v14 = vld [vmem:[%s244_s19] sm:$0x3]  ;;  %v258_v19 = vld [vmem:[%s1821_s24 + $0x8] sm:$0xff]  ;;  %v259_v31 = vld [vmem:[%s1821_s24 + $0x10] sm:$0xff]  ;;  %s1650_s7 = smul.u32 384, %s2224_s15 }
  0x12   : > { %561 = vmatprep.subr.bf16.mxu0 %v1685_v8  ;;  %1637 = vmatprep.subr.bf16.mxu1 %v1685_v8  ;;  %v257_v18 = vld [vmem:[%s1821_s24] sm:$0xff]  ;;  %v1834_v20 = vrot.slane %v289_v14, %v292_v12  ;;  %v282_v22 = vld [vmem:[%s1821_s24 + $0xc8] sm:$0xff]  ;;  %v1843_v24 = vrot.slane %v289_v14, %v328_v17  ;;  %v260_v36 = vld [vmem:[%s1821_s24 + $0x18] sm:$0xff] }
  0x13   : > { %v281_v21 = vld [vmem:[%s1821_s24 + $0xc0] sm:$0xff]  ;;  %v283_v37 = vld [vmem:[%s1821_s24 + $0xd0] sm:$0xff]  ;;  %v284_v39 = vld [vmem:[%s1821_s24 + $0xd8] sm:$0xff]  ;;  %s2043_s10 = scalar_lea.vmem %s2218_s4, %s1650_s7 }
  0x14   : > { %v294_v25 = vmul.f32 %v1834_v20, %v257_v18  ;;  %v295_v26 = vmul.f32 %v1834_v20, %v258_v19  ;;  %v318_v27 = vmul.f32 %v1834_v20, %v281_v21  ;;  %v319_v28 = vmul.f32 %v1834_v20, %v282_v22  ;;  %v275_v44 = vld [vmem:[%s1821_s24 + $0x90] sm:$0xff]  ;;  %v276_v45 = vld [vmem:[%s1821_s24 + $0x98] sm:$0xff]  ;;  %v277_v49 = vld [vmem:[%s1821_s24 + $0xa0] sm:$0xff] }
  0x15   : > { %562 = vmatpush1.bf16.msra.mxu0 %v1687_v10  ;;  %1645 = vmatpush1.bf16.msra.mxu1 %v1687_v10  ;;  %v296_v41 = vmul.f32 %v1834_v20, %v259_v31  ;;  %v297_v42 = vmul.f32 %v1834_v20, %v260_v36  ;;  %v320_v43 = vmul.f32 %v1834_v20, %v283_v37  ;;  %v278_v50 = vld [vmem:[%s1821_s24 + $0xa8] sm:$0xff]  ;;  %v261_v53 = vld [vmem:[%s1821_s24 + $0x20] sm:$0xff]  ;;  %v279_v60 = vld [vmem:[%s1821_s24 + $0xb0] sm:$0xff] }
  0x16   : > { %563 = vmatprep.subr.bf16.mxu0 %v1688_v11  ;;  %1638 = vmatprep.subr.bf16.mxu1 %v1688_v11  ;;  %v330_v32 = vadd.f32 %v1843_v24, %v294_v25  ;;  %v331_v33 = vadd.f32 %v1843_v24, %v295_v26  ;;  %v354_v34 = vadd.f32 %v1843_v24, %v318_v27  ;;  %v280_v61 = vld [vmem:[%s1821_s24 + $0xb8] sm:$0xff]  ;;  %v262_v63 = vld [vmem:[%s1821_s24 + $0x28] sm:$0xff]  ;;  %v285_v0 = vld [vmem:[%s1821_s24 + $0xe0] sm:$0xff] }
  0x17   : > { %v355_v35 = vadd.f32 %v1843_v24, %v319_v28  ;;  %v321_v48 = vmul.f32 %v1834_v20, %v284_v39  ;;  %v332_v52 = vadd.f32 %v1843_v24, %v296_v41  ;;  %v312_v54 = vmul.f32 %v1834_v20, %v275_v44  ;;  %v286_v5 = vld [vmem:[%s1821_s24 + $0xe8] sm:$0xff]  ;;  %v1702_v8 = vld [vmem:[%s2216_s2 + $0x38] ss:$12 sps:$4 sm:$0xff]   ;;  %v1703_v25 = vld [vmem:[%s2216_s2 + $0x50] ss:$12 sps:$4 sm:$0xff]  }
  0x18   : > { %v1874_v46 = vpack.c.bf16 %v331_v33, %v330_v32  ;;  %v313_v55 = vmul.f32 %v1834_v20, %v276_v45  ;;  %v333_v56 = vadd.f32 %v1843_v24, %v297_v42  ;;  %v356_v57 = vadd.f32 %v1843_v24, %v320_v43  ;;  %v263_v31 = vld [vmem:[%s1821_s24 + $0x30] sm:$0xff]  ;;  %v264_v32 = vld [vmem:[%s1821_s24 + $0x38] sm:$0xff]  ;;  %v1705_v42 = vld [vmem:[%s2216_s2 + $0x80] ss:$12 sps:$4 sm:$0xff]  }
  0x19   : > { %564 = vmatpush1.bf16.msra.mxu0 %v1690_v13  ;;  %1646 = vmatpush1.bf16.msra.mxu1 %v1690_v13  ;;  %v1876_v47 = vpack.c.bf16 %v355_v35, %v354_v34  ;;  %v314_v58 = vmul.f32 %v1834_v20, %v277_v49  ;;  %v315_v59 = vmul.f32 %v1834_v20, %v278_v50  ;;  %v287_v33 = vld [vmem:[%s1821_s24 + $0xf0] sm:$0xff]  ;;  %v288_v34 = vld [vmem:[%s1821_s24 + $0xf8] sm:$0xff]  ;;  %v265_v49 = vld [vmem:[%s1821_s24 + $0x40] sm:$0xff] }
  0x1a   : > { %565 = vmatprep.subr.bf16.mxu0 %v1691_v15  ;;  %1639 = vmatprep.subr.bf16.mxu1 %v1691_v15  ;;  %v357_v62 = vadd.f32 %v1843_v24, %v321_v48  ;;  %v348_v1 = vadd.f32 %v1843_v24, %v312_v54  ;;  %v349_v3 = vadd.f32 %v1843_v24, %v313_v55  ;;  %v1704_v35 = vld [vmem:[%s2216_s2 + $0x68] ss:$12 sps:$4 sm:$0xff]  }
  0x1b   : > { %v298_v4 = vmul.f32 %v1834_v20, %v261_v53  ;;  %v350_v6 = vadd.f32 %v1843_v24, %v314_v58  ;;  %v351_v7 = vadd.f32 %v1843_v24, %v315_v59  ;;  %v316_v11 = vmul.f32 %v1834_v20, %v279_v60  ;;  %v266_v50 = vld [vmem:[%s1821_s24 + $0x48] sm:$0xff]  ;;  %v267_v59 = vld [vmem:[%s1821_s24 + $0x50] sm:$0xff]  ;;  %v268_v60 = vld [vmem:[%s1821_s24 + $0x58] sm:$0xff] }
  0x1c   : > { %v1910_v10 = vpack.c.bf16 %v349_v3, %v348_v1  ;;  %v317_v13 = vmul.f32 %v1834_v20, %v280_v61  ;;  %v1914_v14 = vpack.c.bf16 %v333_v56, %v332_v52  ;;  %v299_v15 = vmul.f32 %v1834_v20, %v262_v63  ;;  %v1707_v56 = vld [vmem:[%s2216_s2 + $0xb0] ss:$12 sps:$4 sm:$0xff]   ;;  %v270_v3 = vld [vmem:[%s1821_s24 + $0x68] sm:$0xff] }
  0x1d   : > { %566 = vmatpush1.bf16.msra.mxu0 %v1693_v16  ;;  %1647 = vmatpush1.bf16.msra.mxu1 %v1693_v16  ;;  %v322_v16 = vmul.f32 %v1834_v20, %v285_v0  ;;  %v1918_v18 = vpack.c.bf16 %v351_v7, %v350_v6  ;;  %v1920_v19 = vpack.c.bf16 %v357_v62, %v356_v57 }
  0x1e   : > { %567 = vmatprep.subr.bf16.mxu0 %v1694_v23  ;;  %1640 = vmatprep.subr.bf16.mxu1 %v1694_v23  ;;  %v323_v21 = vmul.f32 %v1834_v20, %v286_v5  ;;  %v352_v22 = vadd.f32 %v1843_v24, %v316_v11  ;;  %v353_v23 = vadd.f32 %v1843_v24, %v317_v13  ;;  %v271_v11 = vld [vmem:[%s1821_s24 + $0x70] sm:$0xff]  ;;  %v272_v13 = vld [vmem:[%s1821_s24 + $0x78] sm:$0xff] }
  0x1f   : > { %v334_v27 = vadd.f32 %v1843_v24, %v298_v4  ;;  %v335_v28 = vadd.f32 %v1843_v24, %v299_v15  ;;  %v300_v36 = vmul.f32 %v1834_v20, %v263_v31  ;;  %v301_v37 = vmul.f32 %v1834_v20, %v264_v32  ;;  %v274_v15 = vld [vmem:[%s1821_s24 + $0x88] sm:$0xff] }
  0x20   : > { %v1928_v26 = vpack.c.bf16 %v353_v23, %v352_v22  ;;  %v325_v41 = vmul.f32 %v1834_v20, %v288_v34  ;;  %v302_v54 = vmul.f32 %v1834_v20, %v265_v49  ;;  %v303_v55 = vmul.f32 %v1834_v20, %v266_v50 }
  0x21   : > { %568 = vmatpush1.bf16.msra.mxu0 %v1696_v29  ;;  %1648 = vmatpush1.bf16.msra.mxu1 %v1696_v29  ;;  %v358_v29 = vadd.f32 %v1843_v24, %v322_v16  ;;  %v336_v43 = vadd.f32 %v1843_v24, %v300_v36  ;;  %v337_v44 = vadd.f32 %v1843_v24, %v301_v37 }
  0x22   : > { %569 = vmatprep.subr.bf16.mxu0 %v1697_v30  ;;  %1641 = vmatprep.subr.bf16.mxu1 %v1697_v30  ;;  %v359_v30 = vadd.f32 %v1843_v24, %v323_v21  ;;  %v361_v48 = vadd.f32 %v1843_v24, %v325_v41  ;;  %v338_v57 = vadd.f32 %v1843_v24, %v302_v54 }
  0x23   : > { %v365_v52 = vpack.c.bf16 %v337_v44, %v336_v43  ;;  %v339_v58 = vadd.f32 %v1843_v24, %v303_v55  ;;  %v304_v62 = vmul.f32 %v1834_v20, %v267_v59  ;;  %v305_v63 = vmul.f32 %v1834_v20, %v268_v60 }
  0x24   : > { %v1947_v39 = vpack.c.bf16 %v359_v30, %v358_v29  ;;  %v307_v6 = vmul.f32 %v1834_v20, %v270_v3  ;;  %v308_v21 = vmul.f32 %v1834_v20, %v271_v11  ;;  %v309_v22 = vmul.f32 %v1834_v20, %v272_v13 }
  0x25   : > { %570 = vmatpush1.bf16.msra.mxu0 %v1699_v38  ;;  %1649 = vmatpush1.bf16.msra.mxu1 %v1699_v38  ;;  %v364_v38 = vpack.c.bf16 %v335_v28, %v334_v27  ;;  %v366_v61 = vpack.c.bf16 %v339_v58, %v338_v57  ;;  %v340_v0 = vadd.f32 %v1843_v24, %v304_v62 }
  0x26   : > { %1586 = vmatprep.subr.bf16.mxu1 %v1700_v40  ;;  %v341_v1 = vadd.f32 %v1843_v24, %v305_v63  ;;  %v344_v27 = vadd.f32 %v1843_v24, %v308_v21  ;;  %v345_v28 = vadd.f32 %v1843_v24, %v309_v22 }
  0x28   : > { %588 = vmatmul.mubr.bf16.vlgmr.msra.gmra.mrb[0].mxu0 %v1874_v46  ;;  %708 = vmatmul.mubr.bf16.vlgmr.msra.gmra.mrb[0].mxu1 %v1876_v47  ;;  %v367_v4 = vpack.c.bf16 %v341_v1, %v340_v0  ;;  %v369_v31 = vpack.c.bf16 %v345_v28, %v344_v27 }
  0x29   : > { %1587 = vmatpush3.bf16.msra.mxu1 %v1700_v40  ;;  %597 = vmatprep.mubr.bf16.mxu0 %v1732_v2  ;;  %v324_v40 = vmul.f32 %v1834_v20, %v287_v33 }
  0x2a   : > { %1588 = vmatprep.subr.bf16.mxu1 %v1701_v51  ;;  %717 = vmatprep.mubr.bf16.mxu1 %v1732_v2 }
  0x2b   : > { %v360_v45 = vadd.f32 %v1843_v24, %v324_v40 }
  0x2d   : > { %1589 = vmatpush3.bf16.msra.mxu1 %v1701_v51  ;;  %v1706_v51 = vld [vmem:[%s2216_s2 + $0x98] ss:$12 sps:$4 sm:$0xff]   ;;  %v1966_v53 = vpack.c.bf16 %v361_v48, %v360_v45 }
  0x2e   : > { %1590 = vmatprep.subr.bf16.mxu1 %v1702_v8 }
  0x30   : > { %598 = vmatmul.mubr.bf16.gmra.mrb[4].mxu0 %v1914_v14  ;;  %718 = vmatmul.mubr.bf16.gmra.mrb[4].mxu1 %v1920_v19 }
  0x31   : > { %1591 = vmatpush3.bf16.msra.mxu1 %v1702_v8  ;;  %607 = vmatprep.mubr.bf16.mxu0 %v1732_v2  ;;  %v343_v8 = vadd.f32 %v1843_v24, %v307_v6 }
  0x32   : > { %1592 = vmatprep.subr.bf16.mxu1 %v1703_v25  ;;  %727 = vmatprep.mubr.bf16.mxu1 %v1732_v2 }
  0x35   : > { %1593 = vmatpush3.bf16.msra.mxu1 %v1703_v25  ;;  %v311_v25 = vmul.f32 %v1834_v20, %v274_v15 }
  0x36   : > { %1594 = vmatprep.subr.bf16.mxu1 %v1704_v35 }
  0x37   : > { %v347_v30 = vadd.f32 %v1843_v24, %v311_v25 }
  0x38   : > { %608 = vmatmul.mubr.bf16.gmra.mrb[8].mxu0 %v364_v38  ;;  %728 = vmatmul.mubr.bf16.gmra.mrb[8].mxu1 %v1947_v39 }
  0x39   : > { %1595 = vmatpush3.bf16.msra.mxu1 %v1704_v35  ;;  %617 = vmatprep.mubr.bf16.mxu0 %v1732_v2 }
  0x3a   : > { %1596 = vmatprep.subr.bf16.mxu1 %v1705_v42  ;;  %737 = vmatprep.mubr.bf16.mxu1 %v1732_v2 }
  0x3d   : > { %1597 = vmatpush3.bf16.msra.mxu1 %v1705_v42 }
  0x3e   : > { %1598 = vmatprep.subr.bf16.mxu1 %v1706_v51 }
  0x40   : > { %618 = vmatmul.mubr.bf16.gmra.mrb[12].mxu0 %v365_v52  ;;  %738 = vmatmul.mubr.bf16.gmra.mrb[12].mxu1 %v1966_v53 }
  0x41   : > { %1599 = vmatpush3.bf16.msra.mxu1 %v1706_v51  ;;  %627 = vmatprep.mubr.bf16.mxu0 %v1732_v2 }
  0x42   : > { %1600 = vmatprep.subr.bf16.mxu1 %v1707_v56  ;;  %1602 = vmatprep.mubr.bf16.mxu1 %v1874_v46  ;;  %v269_v46 = vld [vmem:[%s1821_s24 + $0x60] sm:$0xff] }
  0x43   : > { %v306_v5 = vmul.f32 %v1834_v20, %v269_v46 }
  0x45   : > { %1601 = vmatpush3.bf16.msra.mxu1 %v1707_v56  ;;  %v342_v7 = vadd.f32 %v1843_v24, %v306_v5 }
  0x47   : > { %v368_v16 = vpack.c.bf16 %v343_v8, %v342_v7 }
  0x48   : > { %628 = vmatmul.mubr.bf16.gmra.mrb[16].mxu0 %v366_v61  ;;  %1603 = vmatmul.mubr.bf16.vlgmr.msra.gmra.mrb[16].mxu1 %v1914_v14  ;;  %v273_v14 = vld [vmem:[%s1821_s24 + $0x80] sm:$0xff] }
  0x49   : > { %637 = vmatprep.mubr.bf16.mxu0 %v1732_v2  ;;  %1606 = vmatprep.mubr.bf16.mxu1 %v364_v38  ;;  %v310_v23 = vmul.f32 %v1834_v20, %v273_v14  ;;  %v2023_v20 = vld [vmem:[%s2217_s3] sm:$0x7] }
  0x4b   : > { %v346_v29 = vadd.f32 %v1843_v24, %v310_v23  ;;  %v2028_v24 = vrot.slane %v2023_v20, %v292_v12 }
  0x4d   : > { %v370_v32 = vpack.c.bf16 %v347_v30, %v346_v29 }
  0x50   : > { %638 = vmatmul.mubr.bf16.gmra.mrb[20].mxu0 %v367_v4  ;;  %1607 = vmatmul.mubr.bf16.gmra.mrb[20].mxu1 %v365_v52 }
  0x51   : > { %647 = vmatprep.mubr.bf16.mxu0 %v1732_v2  ;;  %1610 = vmatprep.mubr.bf16.mxu1 %v366_v61 }
  0x58   : > { %648 = vmatmul.mubr.bf16.gmra.mrb[24].mxu0 %v368_v16  ;;  %1611 = vmatmul.mubr.bf16.gmra.mrb[24].mxu1 %v367_v4 }
  0x59   : > { %657 = vmatprep.mubr.bf16.mxu0 %v1732_v2  ;;  %1614 = vmatprep.mubr.bf16.mxu1 %v368_v16 }
  0x60   : > { %658 = vmatmul.mubr.bf16.gmra.mrb[28].mxu0 %v369_v31  ;;  %1615 = vmatmul.mubr.bf16.gmra.mrb[28].mxu1 %v369_v31 }
  0x61   : > { %667 = vmatprep.mubr.bf16.mxu0 %v1732_v2  ;;  %1618 = vmatprep.mubr.bf16.mxu1 %v370_v32 }
  0x68   : > { %668 = vmatmul.mubr.bf16.gmra.mrb[32].mxu0 %v370_v32  ;;  %1619 = vmatmul.mubr.bf16.gmra.mrb[32].mxu1 %v1910_v10 }
  0x69   : > { %677 = vmatprep.mubr.bf16.mxu0 %v1732_v2  ;;  %1622 = vmatprep.mubr.bf16.mxu1 %v1918_v18 }
  0x70   : > { %678 = vmatmul.mubr.bf16.gmra.mrb[36].mxu0 %v1910_v10  ;;  %1623 = vmatmul.mubr.bf16.gmra.mrb[36].mxu1 %v1928_v26 }
  0x71   : > { %687 = vmatprep.mubr.bf16.mxu0 %v1732_v2  ;;  %1626 = vmatprep.mubr.bf16.mxu1 %v1876_v47 }
  0x78   : > { %688 = vmatmul.mubr.bf16.gmra.mrb[40].mxu0 %v1918_v18  ;;  %1627 = vmatmul.mubr.bf16.gmra.mrb[40].mxu1 %v1920_v19 }
  0x79   : > { %697 = vmatprep.mubr.bf16.mxu0 %v1732_v2  ;;  %1630 = vmatprep.mubr.bf16.mxu1 %v1947_v39  ;;  %v2033_v2 = vrot.slane %v2023_v20, %v328_v17 }
  0x80   : > { %698 = vmatmul.mubr.bf16.gmra.mrb[44].mxu0 %v1928_v26  ;;  %1631 = vmatmul.mubr.bf16.gmra.mrb[44].mxu1 %v1966_v53 }
  0xfb   : > { %v589_v47 = vpop.f32.mrb[0].mxu0  ;;  %v709_v10 = vpop.f32.mrb[0].mxu1 }
  0xfc   : > { %v590_v18 = vadd.f32 %v589_v47, %v2028_v24  ;;  %v710_v19 = vadd.f32 %v709_v10, %v2028_v24  ;;  %v591_v26 = vpop.f32.mrb[1].mxu0  ;;  %v711_v33 = vpop.f32.mrb[1].mxu1 }
  0xfd   : > { %v592_v34 = vadd.f32 %v591_v26, %v2033_v2  ;;  %v712_v35 = vadd.f32 %v711_v33, %v2033_v2  ;;  %v593_v12 = vpop.f32.mrb[2].mxu0  ;;  %v713_v36 = vpop.f32.mrb[2].mxu1 }
  0xfe   : > { %v594_v17 = vadd.f32 %v593_v12, %v2028_v24  ;;  %v714_v37 = vadd.f32 %v713_v36, %v2028_v24  ;;  %v595_v38 = vpop.f32.mrb[3].mxu0  ;;  %v715_v39 = vpop.f32.mrb[3].mxu1 }
  0xff   : > { %v1498_v40 = vpack.c.bf16 %v592_v34, %v590_v18  ;;  %v1546_v41 = vpack.c.bf16 %v712_v35, %v710_v19  ;;  %v596_v42 = vadd.f32 %v595_v38, %v2033_v2  ;;  %v716_v43 = vadd.f32 %v715_v39, %v2033_v2 }
 0x100   : > { %v422_v34 = vsub.s32 2, %v1802_v9 }
 0x101   : > { %1229 = vst [vmem:[%s2043_s10] sm:$0xff] %v1498_v40  ;;  %1277 = vst [vmem:[%s2043_s10 + $0x120] sm:$0xff] %v1546_v41  ;;  %v1500_v44 = vpack.c.bf16 %v596_v42, %v594_v17  ;;  %v1548_v45 = vpack.c.bf16 %v716_v43, %v714_v37 }
 0x103   : > { %1231 = vst [vmem:[%s2043_s10 + $0xc] sm:$0xff] %v1500_v44  ;;  %1279 = vst [vmem:[%s2043_s10 + $0x12c] sm:$0xff] %v1548_v45  ;;  %v599_v48 = vpop.f32.mrb[4].mxu0  ;;  %v719_v49 = vpop.f32.mrb[4].mxu1  ;;  %v2087_v44 = vrot.slane %v2023_v20, %v422_v34 }
 0x104   : > { %v600_v50 = vadd.f32 %v599_v48, %v2028_v24  ;;  %v720_v51 = vadd.f32 %v719_v49, %v2028_v24  ;;  %v601_v52 = vpop.f32.mrb[5].mxu0  ;;  %v721_v53 = vpop.f32.mrb[5].mxu1 }
 0x105   : > { %v602_v54 = vadd.f32 %v601_v52, %v2033_v2  ;;  %v722_v55 = vadd.f32 %v721_v53, %v2033_v2  ;;  %v603_v56 = vpop.f32.mrb[6].mxu0  ;;  %v723_v57 = vpop.f32.mrb[6].mxu1 }
 0x106   : > { %v604_v58 = vadd.f32 %v603_v56, %v2028_v24  ;;  %v724_v59 = vadd.f32 %v723_v57, %v2028_v24  ;;  %v605_v60 = vpop.f32.mrb[7].mxu0  ;;  %v725_v61 = vpop.f32.mrb[7].mxu1 }
 0x107   : > { %v1502_v62 = vpack.c.bf16 %v602_v54, %v600_v50  ;;  %v1550_v63 = vpack.c.bf16 %v722_v55, %v720_v51  ;;  %v606_v0 = vadd.f32 %v605_v60, %v2033_v2  ;;  %v726_v1 = vadd.f32 %v725_v61, %v2033_v2 }
 0x109   : > { %1233 = vst [vmem:[%s2043_s10 + $0x18] sm:$0xff] %v1502_v62  ;;  %1281 = vst [vmem:[%s2043_s10 + $0x138] sm:$0xff] %v1550_v63  ;;  %v1504_v46 = vpack.c.bf16 %v606_v0, %v604_v58  ;;  %v1552_v3 = vpack.c.bf16 %v726_v1, %v724_v59 }
 0x10b   : > { %1235 = vst [vmem:[%s2043_s10 + $0x24] sm:$0xff] %v1504_v46  ;;  %1283 = vst [vmem:[%s2043_s10 + $0x144] sm:$0xff] %v1552_v3  ;;  %v609_v4 = vpop.f32.mrb[8].mxu0  ;;  %v729_v5 = vpop.f32.mrb[8].mxu1 }
 0x10c   : > { %v610_v6 = vadd.f32 %v609_v4, %v2028_v24  ;;  %v730_v7 = vadd.f32 %v729_v5, %v2028_v24  ;;  %v611_v8 = vpop.f32.mrb[9].mxu0  ;;  %v731_v11 = vpop.f32.mrb[9].mxu1 }
 0x10d   : > { %v612_v13 = vadd.f32 %v611_v8, %v2033_v2  ;;  %v732_v14 = vadd.f32 %v731_v11, %v2033_v2  ;;  %v613_v15 = vpop.f32.mrb[10].mxu0  ;;  %v733_v16 = vpop.f32.mrb[10].mxu1 }
 0x10e   : > { %v614_v21 = vadd.f32 %v613_v15, %v2028_v24  ;;  %v734_v22 = vadd.f32 %v733_v16, %v2028_v24  ;;  %v615_v23 = vpop.f32.mrb[11].mxu0  ;;  %v735_v25 = vpop.f32.mrb[11].mxu1 }
 0x10f   : > { %v1506_v27 = vpack.c.bf16 %v612_v13, %v610_v6  ;;  %v1554_v28 = vpack.c.bf16 %v732_v14, %v730_v7  ;;  %v616_v29 = vadd.f32 %v615_v23, %v2033_v2  ;;  %v736_v30 = vadd.f32 %v735_v25, %v2033_v2 }
 0x111   : > { %1237 = vst [vmem:[%s2043_s10 + $0x30] sm:$0xff] %v1506_v27  ;;  %1285 = vst [vmem:[%s2043_s10 + $0x150] sm:$0xff] %v1554_v28  ;;  %v1508_v31 = vpack.c.bf16 %v616_v29, %v614_v21  ;;  %v1556_v32 = vpack.c.bf16 %v736_v30, %v734_v22 }
 0x113   : > { %1239 = vst [vmem:[%s2043_s10 + $0x3c] sm:$0xff] %v1508_v31  ;;  %1287 = vst [vmem:[%s2043_s10 + $0x15c] sm:$0xff] %v1556_v32  ;;  %v619_v47 = vpop.f32.mrb[12].mxu0  ;;  %v739_v10 = vpop.f32.mrb[12].mxu1 }
 0x114   : > { %v620_v18 = vadd.f32 %v619_v47, %v2028_v24  ;;  %v740_v19 = vadd.f32 %v739_v10, %v2028_v24  ;;  %v621_v26 = vpop.f32.mrb[13].mxu0  ;;  %v741_v33 = vpop.f32.mrb[13].mxu1 }
 0x115   : > { %v622_v35 = vadd.f32 %v621_v26, %v2033_v2  ;;  %v742_v12 = vadd.f32 %v741_v33, %v2033_v2  ;;  %v623_v36 = vpop.f32.mrb[14].mxu0  ;;  %v743_v17 = vpop.f32.mrb[14].mxu1 }
 0x116   : > { %v624_v37 = vadd.f32 %v623_v36, %v2028_v24  ;;  %v744_v38 = vadd.f32 %v743_v17, %v2028_v24  ;;  %v625_v39 = vpop.f32.mrb[15].mxu0  ;;  %v745_v40 = vpop.f32.mrb[15].mxu1 }
 0x117   : > { %v1510_v41 = vpack.c.bf16 %v622_v35, %v620_v18  ;;  %v1558_v42 = vpack.c.bf16 %v742_v12, %v740_v19  ;;  %v626_v43 = vadd.f32 %v625_v39, %v2033_v2  ;;  %v746_v9 = vadd.f32 %v745_v40, %v2033_v2 }
 0x119   : > { %1241 = vst [vmem:[%s2043_s10 + $0x48] sm:$0xff] %v1510_v41  ;;  %1289 = vst [vmem:[%s2043_s10 + $0x168] sm:$0xff] %v1558_v42  ;;  %v1512_v45 = vpack.c.bf16 %v626_v43, %v624_v37  ;;  %v1560_v48 = vpack.c.bf16 %v746_v9, %v744_v38 }
 0x11b   : > { %1243 = vst [vmem:[%s2043_s10 + $0x54] sm:$0xff] %v1512_v45  ;;  %1291 = vst [vmem:[%s2043_s10 + $0x174] sm:$0xff] %v1560_v48  ;;  %v629_v49 = vpop.f32.mrb[16].mxu0  ;;  %v1604_v50 = vpop.f32.mrb[16].mxu1 }
 0x11c   : > { %v630_v51 = vadd.f32 %v629_v49, %v2028_v24  ;;  %v791_v52 = vadd.f32 %v1604_v50, %v2087_v44  ;;  %v631_v53 = vpop.f32.mrb[17].mxu0  ;;  %v782_v54 = vpop.f32.mrb[17].mxu1 }
 0x11d   : > { %v632_v55 = vadd.f32 %v631_v53, %v2033_v2  ;;  %v783_v20 = vadd.f32 %v782_v54, %v2087_v44  ;;  %v633_v56 = vpop.f32.mrb[18].mxu0  ;;  %v1605_v57 = vpop.f32.mrb[18].mxu1 }
 0x11e   : > { %v1503_v58 = vpack.c.bf16 %v791_v52, %v791_v52  ;;  %v634_v59 = vadd.f32 %v633_v56, %v2028_v24  ;;  %v794_v60 = vadd.f32 %v1605_v57, %v2087_v44  ;;  %v635_v61 = vpop.f32.mrb[19].mxu0  ;;  %v785_v62 = vpop.f32.mrb[19].mxu1 }
 0x11f   : > { %v1514_v63 = vpack.c.bf16 %v632_v55, %v630_v51  ;;  %v1499_v0 = vpack.c.bf16 %v783_v20, %v783_v20  ;;  %v636_v1 = vadd.f32 %v635_v61, %v2033_v2  ;;  %v786_v46 = vadd.f32 %v785_v62, %v2087_v44 }
 0x120   : > { %1234 = vst [vmem:[%s2043_s10 + $0x20] sm:$0xf] %v1503_v58  ;;  %v1505_v3 = vpack.c.bf16 %v794_v60, %v794_v60 }
 0x121   : > { %1245 = vst [vmem:[%s2043_s10 + $0x60] sm:$0xff] %v1514_v63  ;;  %1230 = vst [vmem:[%s2043_s10 + $0x8] sm:$0xf] %v1499_v0  ;;  %v1516_v4 = vpack.c.bf16 %v636_v1, %v634_v59  ;;  %v1501_v5 = vpack.c.bf16 %v786_v46, %v786_v46 }
 0x122   : > { %1236 = vst [vmem:[%s2043_s10 + $0x2c] sm:$0xf] %v1505_v3 }
 0x123   : > { %1247 = vst [vmem:[%s2043_s10 + $0x6c] sm:$0xff] %v1516_v4  ;;  %1232 = vst [vmem:[%s2043_s10 + $0x14] sm:$0xf] %v1501_v5  ;;  %v639_v6 = vpop.f32.mrb[20].mxu0  ;;  %v1608_v7 = vpop.f32.mrb[20].mxu1 }
 0x124   : > { %v640_v8 = vadd.f32 %v639_v6, %v2028_v24  ;;  %v807_v11 = vadd.f32 %v1608_v7, %v2087_v44  ;;  %v641_v13 = vpop.f32.mrb[21].mxu0  ;;  %v798_v14 = vpop.f32.mrb[21].mxu1 }
 0x125   : > { %v642_v15 = vadd.f32 %v641_v13, %v2033_v2  ;;  %v799_v16 = vadd.f32 %v798_v14, %v2087_v44  ;;  %v643_v21 = vpop.f32.mrb[22].mxu0  ;;  %v1609_v22 = vpop.f32.mrb[22].mxu1 }
 0x126   : > { %v1511_v23 = vpack.c.bf16 %v807_v11, %v807_v11  ;;  %v644_v25 = vadd.f32 %v643_v21, %v2028_v24  ;;  %v810_v27 = vadd.f32 %v1609_v22, %v2087_v44  ;;  %v645_v28 = vpop.f32.mrb[23].mxu0  ;;  %v801_v29 = vpop.f32.mrb[23].mxu1 }
 0x127   : > { %v1518_v30 = vpack.c.bf16 %v642_v15, %v640_v8  ;;  %v1507_v31 = vpack.c.bf16 %v799_v16, %v799_v16  ;;  %v646_v32 = vadd.f32 %v645_v28, %v2033_v2  ;;  %v802_v47 = vadd.f32 %v801_v29, %v2087_v44 }
 0x128   : > { %1242 = vst [vmem:[%s2043_s10 + $0x50] sm:$0xf] %v1511_v23  ;;  %v1513_v10 = vpack.c.bf16 %v810_v27, %v810_v27 }
 0x129   : > { %1249 = vst [vmem:[%s2043_s10 + $0x78] sm:$0xff] %v1518_v30  ;;  %1238 = vst [vmem:[%s2043_s10 + $0x38] sm:$0xf] %v1507_v31  ;;  %v1520_v18 = vpack.c.bf16 %v646_v32, %v644_v25  ;;  %v1509_v19 = vpack.c.bf16 %v802_v47, %v802_v47 }
 0x12a   : > { %1244 = vst [vmem:[%s2043_s10 + $0x5c] sm:$0xf] %v1513_v10 }
 0x12b   : > { %1251 = vst [vmem:[%s2043_s10 + $0x84] sm:$0xff] %v1520_v18  ;;  %1240 = vst [vmem:[%s2043_s10 + $0x44] sm:$0xf] %v1509_v19  ;;  %v649_v26 = vpop.f32.mrb[24].mxu0  ;;  %v1612_v33 = vpop.f32.mrb[24].mxu1 }
 0x12c   : > { %v650_v34 = vadd.f32 %v649_v26, %v2028_v24  ;;  %v823_v35 = vadd.f32 %v1612_v33, %v2087_v44  ;;  %v651_v12 = vpop.f32.mrb[25].mxu0  ;;  %v814_v36 = vpop.f32.mrb[25].mxu1 }
 0x12d   : > { %v652_v17 = vadd.f32 %v651_v12, %v2033_v2  ;;  %v815_v37 = vadd.f32 %v814_v36, %v2087_v44  ;;  %v653_v38 = vpop.f32.mrb[26].mxu0  ;;  %v1613_v39 = vpop.f32.mrb[26].mxu1 }
 0x12e   : > { %v1519_v40 = vpack.c.bf16 %v823_v35, %v823_v35  ;;  %v654_v41 = vadd.f32 %v653_v38, %v2028_v24  ;;  %v826_v42 = vadd.f32 %v1613_v39, %v2087_v44  ;;  %v655_v43 = vpop.f32.mrb[27].mxu0  ;;  %v817_v9 = vpop.f32.mrb[27].mxu1 }
 0x12f   : > { %v1522_v45 = vpack.c.bf16 %v652_v17, %v650_v34  ;;  %v1515_v48 = vpack.c.bf16 %v815_v37, %v815_v37  ;;  %v656_v49 = vadd.f32 %v655_v43, %v2033_v2  ;;  %v818_v50 = vadd.f32 %v817_v9, %v2087_v44 }
 0x130   : > { %1250 = vst [vmem:[%s2043_s10 + $0x80] sm:$0xf] %v1519_v40  ;;  %v1521_v51 = vpack.c.bf16 %v826_v42, %v826_v42 }
 0x131   : > { %1253 = vst [vmem:[%s2043_s10 + $0x90] sm:$0xff] %v1522_v45  ;;  %1246 = vst [vmem:[%s2043_s10 + $0x68] sm:$0xf] %v1515_v48  ;;  %v1524_v52 = vpack.c.bf16 %v656_v49, %v654_v41  ;;  %v1517_v53 = vpack.c.bf16 %v818_v50, %v818_v50 }
 0x132   : > { %1252 = vst [vmem:[%s2043_s10 + $0x8c] sm:$0xf] %v1521_v51 }
 0x133   : > { %1255 = vst [vmem:[%s2043_s10 + $0x9c] sm:$0xff] %v1524_v52  ;;  %1248 = vst [vmem:[%s2043_s10 + $0x74] sm:$0xf] %v1517_v53  ;;  %v659_v54 = vpop.f32.mrb[28].mxu0  ;;  %v1616_v55 = vpop.f32.mrb[28].mxu1 }
 0x134   : > { %v660_v20 = vadd.f32 %v659_v54, %v2028_v24  ;;  %v839_v56 = vadd.f32 %v1616_v55, %v2087_v44  ;;  %v661_v57 = vpop.f32.mrb[29].mxu0  ;;  %v830_v58 = vpop.f32.mrb[29].mxu1 }
 0x135   : > { %v662_v59 = vadd.f32 %v661_v57, %v2033_v2  ;;  %v831_v60 = vadd.f32 %v830_v58, %v2087_v44  ;;  %v663_v61 = vpop.f32.mrb[30].mxu0  ;;  %v1617_v62 = vpop.f32.mrb[30].mxu1 }
 0x136   : > { %v1527_v63 = vpack.c.bf16 %v839_v56, %v839_v56  ;;  %v664_v0 = vadd.f32 %v663_v61, %v2028_v24  ;;  %v842_v1 = vadd.f32 %v1617_v62, %v2087_v44  ;;  %v665_v46 = vpop.f32.mrb[31].mxu0  ;;  %v833_v3 = vpop.f32.mrb[31].mxu1 }
 0x137   : > { %v1526_v4 = vpack.c.bf16 %v662_v59, %v660_v20  ;;  %v1523_v5 = vpack.c.bf16 %v831_v60, %v831_v60  ;;  %v666_v6 = vadd.f32 %v665_v46, %v2033_v2  ;;  %v834_v7 = vadd.f32 %v833_v3, %v2087_v44 }
 0x138   : > { %1258 = vst [vmem:[%s2043_s10 + $0xb0] sm:$0xf] %v1527_v63  ;;  %v1529_v8 = vpack.c.bf16 %v842_v1, %v842_v1 }
 0x139   : > { %1257 = vst [vmem:[%s2043_s10 + $0xa8] sm:$0xff] %v1526_v4  ;;  %1254 = vst [vmem:[%s2043_s10 + $0x98] sm:$0xf] %v1523_v5  ;;  %v1528_v11 = vpack.c.bf16 %v666_v6, %v664_v0  ;;  %v1525_v13 = vpack.c.bf16 %v834_v7, %v834_v7 }
 0x13a   : > { %1260 = vst [vmem:[%s2043_s10 + $0xbc] sm:$0xf] %v1529_v8 }
 0x13b   : > { %1259 = vst [vmem:[%s2043_s10 + $0xb4] sm:$0xff] %v1528_v11  ;;  %1256 = vst [vmem:[%s2043_s10 + $0xa4] sm:$0xf] %v1525_v13  ;;  %v669_v14 = vpop.f32.mrb[32].mxu0  ;;  %v1620_v15 = vpop.f32.mrb[32].mxu1 }
 0x13c   : > { %v670_v16 = vadd.f32 %v669_v14, %v2028_v24  ;;  %v855_v21 = vadd.f32 %v1620_v15, %v2087_v44  ;;  %v671_v22 = vpop.f32.mrb[33].mxu0  ;;  %v846_v23 = vpop.f32.mrb[33].mxu1 }
 0x13d   : > { %v672_v25 = vadd.f32 %v671_v22, %v2033_v2  ;;  %v847_v27 = vadd.f32 %v846_v23, %v2087_v44  ;;  %v673_v28 = vpop.f32.mrb[34].mxu0  ;;  %v1621_v29 = vpop.f32.mrb[34].mxu1 }
 0x13e   : > { %v1535_v30 = vpack.c.bf16 %v855_v21, %v855_v21  ;;  %v674_v31 = vadd.f32 %v673_v28, %v2028_v24  ;;  %v858_v32 = vadd.f32 %v1621_v29, %v2087_v44  ;;  %v675_v47 = vpop.f32.mrb[35].mxu0  ;;  %v849_v10 = vpop.f32.mrb[35].mxu1 }
 0x13f   : > { %v1530_v18 = vpack.c.bf16 %v672_v25, %v670_v16  ;;  %v1531_v19 = vpack.c.bf16 %v847_v27, %v847_v27  ;;  %v676_v26 = vadd.f32 %v675_v47, %v2033_v2  ;;  %v850_v33 = vadd.f32 %v849_v10, %v2087_v44 }
 0x140   : > { %1266 = vst [vmem:[%s2043_s10 + $0xe0] sm:$0xf] %v1535_v30  ;;  %v1537_v34 = vpack.c.bf16 %v858_v32, %v858_v32 }
 0x141   : > { %1261 = vst [vmem:[%s2043_s10 + $0xc0] sm:$0xff] %v1530_v18  ;;  %1262 = vst [vmem:[%s2043_s10 + $0xc8] sm:$0xf] %v1531_v19  ;;  %v1532_v35 = vpack.c.bf16 %v676_v26, %v674_v31  ;;  %v1533_v12 = vpack.c.bf16 %v850_v33, %v850_v33 }
 0x142   : > { %1268 = vst [vmem:[%s2043_s10 + $0xec] sm:$0xf] %v1537_v34 }
 0x143   : > { %1263 = vst [vmem:[%s2043_s10 + $0xcc] sm:$0xff] %v1532_v35  ;;  %1264 = vst [vmem:[%s2043_s10 + $0xd4] sm:$0xf] %v1533_v12  ;;  %v679_v36 = vpop.f32.mrb[36].mxu0  ;;  %v1624_v17 = vpop.f32.mrb[36].mxu1 }
 0x144   : > { %v680_v37 = vadd.f32 %v679_v36, %v2028_v24  ;;  %v871_v38 = vadd.f32 %v1624_v17, %v2087_v44  ;;  %v681_v39 = vpop.f32.mrb[37].mxu0  ;;  %v862_v40 = vpop.f32.mrb[37].mxu1 }
 0x145   : > { %v682_v41 = vadd.f32 %v681_v39, %v2033_v2  ;;  %v863_v42 = vadd.f32 %v862_v40, %v2087_v44  ;;  %v683_v43 = vpop.f32.mrb[38].mxu0  ;;  %v1625_v9 = vpop.f32.mrb[38].mxu1 }
 0x146   : > { %v1543_v45 = vpack.c.bf16 %v871_v38, %v871_v38  ;;  %v684_v48 = vadd.f32 %v683_v43, %v2028_v24  ;;  %v874_v49 = vadd.f32 %v1625_v9, %v2087_v44  ;;  %v685_v50 = vpop.f32.mrb[39].mxu0  ;;  %v865_v51 = vpop.f32.mrb[39].mxu1 }
 0x147   : > { %v1534_v52 = vpack.c.bf16 %v682_v41, %v680_v37  ;;  %v1539_v53 = vpack.c.bf16 %v863_v42, %v863_v42  ;;  %v686_v54 = vadd.f32 %v685_v50, %v2033_v2  ;;  %v866_v55 = vadd.f32 %v865_v51, %v2087_v44 }
 0x148   : > { %1274 = vst [vmem:[%s2043_s10 + $0x110] sm:$0xf] %v1543_v45  ;;  %v1545_v20 = vpack.c.bf16 %v874_v49, %v874_v49 }
 0x149   : > { %1265 = vst [vmem:[%s2043_s10 + $0xd8] sm:$0xff] %v1534_v52  ;;  %1270 = vst [vmem:[%s2043_s10 + $0xf8] sm:$0xf] %v1539_v53  ;;  %v1536_v56 = vpack.c.bf16 %v686_v54, %v684_v48  ;;  %v1541_v57 = vpack.c.bf16 %v866_v55, %v866_v55 }
 0x14a   : > { %1276 = vst [vmem:[%s2043_s10 + $0x11c] sm:$0xf] %v1545_v20 }
 0x14b   : > { %1267 = vst [vmem:[%s2043_s10 + $0xe4] sm:$0xff] %v1536_v56  ;;  %1272 = vst [vmem:[%s2043_s10 + $0x104] sm:$0xf] %v1541_v57  ;;  %v689_v58 = vpop.f32.mrb[40].mxu0  ;;  %v1628_v59 = vpop.f32.mrb[40].mxu1 }
 0x14c   : > { %v690_v60 = vadd.f32 %v689_v58, %v2028_v24  ;;  %v887_v61 = vadd.f32 %v1628_v59, %v2087_v44  ;;  %v691_v62 = vpop.f32.mrb[41].mxu0  ;;  %v878_v63 = vpop.f32.mrb[41].mxu1 }
 0x14d   : > { %v692_v0 = vadd.f32 %v691_v62, %v2033_v2  ;;  %v879_v1 = vadd.f32 %v878_v63, %v2087_v44  ;;  %v693_v46 = vpop.f32.mrb[42].mxu0  ;;  %v1629_v3 = vpop.f32.mrb[42].mxu1 }
 0x14e   : > { %v1551_v4 = vpack.c.bf16 %v887_v61, %v887_v61  ;;  %v694_v5 = vadd.f32 %v693_v46, %v2028_v24  ;;  %v890_v6 = vadd.f32 %v1629_v3, %v2087_v44  ;;  %v695_v7 = vpop.f32.mrb[43].mxu0  ;;  %v881_v8 = vpop.f32.mrb[43].mxu1 }
 0x14f   : > { %v1538_v11 = vpack.c.bf16 %v692_v0, %v690_v60  ;;  %v1547_v13 = vpack.c.bf16 %v879_v1, %v879_v1  ;;  %v696_v14 = vadd.f32 %v695_v7, %v2033_v2  ;;  %v882_v15 = vadd.f32 %v881_v8, %v2087_v44 }
 0x150   : > { %1282 = vst [vmem:[%s2043_s10 + $0x140] sm:$0xf] %v1551_v4  ;;  %v1553_v16 = vpack.c.bf16 %v890_v6, %v890_v6 }
 0x151   : > { %1269 = vst [vmem:[%s2043_s10 + $0xf0] sm:$0xff] %v1538_v11  ;;  %1278 = vst [vmem:[%s2043_s10 + $0x128] sm:$0xf] %v1547_v13  ;;  %v1540_v21 = vpack.c.bf16 %v696_v14, %v694_v5  ;;  %v1549_v22 = vpack.c.bf16 %v882_v15, %v882_v15 }
 0x152   : > { %1284 = vst [vmem:[%s2043_s10 + $0x14c] sm:$0xf] %v1553_v16 }
 0x153   : > { %1271 = vst [vmem:[%s2043_s10 + $0xfc] sm:$0xff] %v1540_v21  ;;  %1280 = vst [vmem:[%s2043_s10 + $0x134] sm:$0xf] %v1549_v22  ;;  %v699_v23 = vpop.f32.mrb[44].mxu0  ;;  %v1632_v25 = vpop.f32.mrb[44].mxu1 }
 0x154   : > { %v700_v27 = vadd.f32 %v699_v23, %v2028_v24  ;;  %v903_v28 = vadd.f32 %v1632_v25, %v2087_v44  ;;  %v701_v29 = vpop.f32.mrb[45].mxu0  ;;  %v894_v30 = vpop.f32.mrb[45].mxu1 }
 0x155   : > { %v702_v31 = vadd.f32 %v701_v29, %v2033_v2  ;;  %v895_v32 = vadd.f32 %v894_v30, %v2087_v44  ;;  %v703_v47 = vpop.f32.mrb[46].mxu0  ;;  %v1633_v10 = vpop.f32.mrb[46].mxu1 }
 0x156   : > { %v1559_v18 = vpack.c.bf16 %v903_v28, %v903_v28  ;;  %v704_v19 = vadd.f32 %v703_v47, %v2028_v24  ;;  %v906_v26 = vadd.f32 %v1633_v10, %v2087_v44  ;;  %v705_v33 = vpop.f32.mrb[47].mxu0  ;;  %v897_v34 = vpop.f32.mrb[47].mxu1 }
 0x157   : > { %v1542_v35 = vpack.c.bf16 %v702_v31, %v700_v27  ;;  %v1555_v12 = vpack.c.bf16 %v895_v32, %v895_v32  ;;  %v706_v36 = vadd.f32 %v705_v33, %v2033_v2  ;;  %v898_v17 = vadd.f32 %v897_v34, %v2087_v44 }
 0x158   : > { %1290 = vst [vmem:[%s2043_s10 + $0x170] sm:$0xf] %v1559_v18  ;;  %v1561_v37 = vpack.c.bf16 %v906_v26, %v906_v26 }
 0x159   : > { %1273 = vst [vmem:[%s2043_s10 + $0x108] sm:$0xff] %v1542_v35  ;;  %1286 = vst [vmem:[%s2043_s10 + $0x158] sm:$0xf] %v1555_v12  ;;  %v1544_v38 = vpack.c.bf16 %v706_v36, %v704_v19  ;;  %v1557_v39 = vpack.c.bf16 %v898_v17, %v898_v17 }
 0x15a   : > { %1292 = vst [vmem:[%s2043_s10 + $0x17c] sm:$0xf] %v1561_v37 }
 0x15b   : > { %1275 = vst [vmem:[%s2043_s10 + $0x114] sm:$0xff] %v1544_v38  ;;  %1288 = vst [vmem:[%s2043_s10 + $0x164] sm:$0xf] %v1557_v39 }
 0x15c PF: > { %s14_s17 = sadd.s32 1, %s1730_s17   ;;  %s2219_s15 = smov %s1726_s16 }
 0x15d   : > { %p11_p5 = scmp.ge.s32.totalorder %s14_s17, 4   ;;  %s2220_s16 = smov %s2222_s18 }
 0x15f   :  { %13 = sbr.rel (!%p11_p5) target bundleno = 2 (0x2), region = 69 }

// kernel: spatial_self_attention.7
= control target key start
LH: loop header
LB: loop body
LE: loop exit
PB: predicated region body
PF: predicated region fallthrough
CT: control target
= control target key end

     0   :  { %s1899_s0 = inlined_call_operand.vmem [shape: bf16[512,128], index: 0, kind: input, shape index: {}]   ;;  %s1900_s1 = inlined_call_operand.vmem [shape: bf16[128,128], index: 1, kind: input, shape index: {}]   ;;  %s1901_s2 = inlined_call_operand.vmem [shape: f32[1,128], index: 2, kind: input, shape index: {}]   ;;  %s1902_s3 = inlined_call_operand.vmem [shape: f32[512,128], index: 3, kind: input, shape index: {}]   ;;  %s1903_s4 = inlined_call_operand.hbm [shape: f32[512,128], index: 4, kind: output, shape index: {}]  }
   0x1   :  { %v1414_v0 = vld [vmem:[%s1900_s1] sm:$0xff]   ;;  %v1415_v1 = vld [vmem:[%s1900_s1 + $0x8] sm:$0xff]   ;;  %v1416_v2 = vld [vmem:[%s1900_s1 + $0x10] sm:$0xff]  }
   0x2   :  { %1315 = vmatprep.subr.bf16.mxu0 %v1414_v0  ;;  %1395 = vmatprep.subr.bf16.mxu1 %v1414_v0  ;;  %v1417_v3 = vld [vmem:[%s1900_s1 + $0x18] sm:$0xff]   ;;  %v1422_v4 = vld [vmem:[%s1899_s0] sm:$0xff]   ;;  %v1419_v7 = vld [vmem:[%s1900_s1 + $0x28] sm:$0xff]  }
   0x3   :  { %1316 = vmatpush3.bf16.msra.mxu0 %v1414_v0  ;;  %1403 = vmatpush3.bf16.msra.mxu1 %v1414_v0  ;;  %v1423_v5 = vld [vmem:[%s1899_s0 + $0x80] sm:$0xff]   ;;  %v1420_v8 = vld [vmem:[%s1900_s1 + $0x30] sm:$0xff]   ;;  %v1421_v9 = vld [vmem:[%s1900_s1 + $0x38] sm:$0xff]  }
   0x4   :  { %1317 = vmatprep.subr.bf16.mxu0 %v1415_v1  ;;  %1396 = vmatprep.subr.bf16.mxu1 %v1415_v1  ;;  %v1418_v6 = vld [vmem:[%s1900_s1 + $0x20] sm:$0xff]   ;;  %v1424_v10 = vld [vmem:[%s1899_s0 + $0x8] sm:$0xff]   ;;  %v1426_v12 = vld [vmem:[%s1899_s0 + $0x10] sm:$0xff]  }
   0x5   :  { %1331 = vmatprep.mubr.bf16.mxu0 %v1422_v4  ;;  %1363 = vmatprep.mubr.bf16.mxu1 %v1423_v5  ;;  %v1425_v11 = vld [vmem:[%s1899_s0 + $0x88] sm:$0xff]   ;;  %v1427_v13 = vld [vmem:[%s1899_s0 + $0x90] sm:$0xff]   ;;  %v1428_v14 = vld [vmem:[%s1899_s0 + $0x18] sm:$0xff]  }
   0x6   :  { %v1429_v15 = vld [vmem:[%s1899_s0 + $0x98] sm:$0xff]   ;;  %v1430_v16 = vld [vmem:[%s1899_s0 + $0x20] sm:$0xff]  }
   0x7   :  { %1318 = vmatpush3.bf16.msra.mxu0 %v1415_v1  ;;  %1404 = vmatpush3.bf16.msra.mxu1 %v1415_v1  ;;  %v1431_v17 = vld [vmem:[%s1899_s0 + $0xa0] sm:$0xff]  }
   0x8   :  { %1319 = vmatprep.subr.bf16.mxu0 %v1416_v2  ;;  %1397 = vmatprep.subr.bf16.mxu1 %v1416_v2 }
   0xb   :  { %1320 = vmatpush3.bf16.msra.mxu0 %v1416_v2  ;;  %1405 = vmatpush3.bf16.msra.mxu1 %v1416_v2 }
   0xc   :  { %1321 = vmatprep.subr.bf16.mxu0 %v1417_v3  ;;  %1398 = vmatprep.subr.bf16.mxu1 %v1417_v3 }
   0xf   :  { %1322 = vmatpush3.bf16.msra.mxu0 %v1417_v3  ;;  %1406 = vmatpush3.bf16.msra.mxu1 %v1417_v3 }
  0x10   :  { %1323 = vmatprep.subr.bf16.mxu0 %v1418_v6  ;;  %1399 = vmatprep.subr.bf16.mxu1 %v1418_v6 }
  0x13   :  { %1324 = vmatpush3.bf16.msra.mxu0 %v1418_v6  ;;  %1407 = vmatpush3.bf16.msra.mxu1 %v1418_v6 }
  0x14   :  { %1325 = vmatprep.subr.bf16.mxu0 %v1419_v7  ;;  %1400 = vmatprep.subr.bf16.mxu1 %v1419_v7 }
  0x17   :  { %1326 = vmatpush3.bf16.msra.mxu0 %v1419_v7  ;;  %1408 = vmatpush3.bf16.msra.mxu1 %v1419_v7 }
  0x18   :  { %1327 = vmatprep.subr.bf16.mxu0 %v1420_v8  ;;  %1401 = vmatprep.subr.bf16.mxu1 %v1420_v8 }
  0x1b   :  { %1328 = vmatpush3.bf16.msra.mxu0 %v1420_v8  ;;  %1409 = vmatpush3.bf16.msra.mxu1 %v1420_v8 }
  0x1c   :  { %1329 = vmatprep.subr.bf16.mxu0 %v1421_v9  ;;  %1402 = vmatprep.subr.bf16.mxu1 %v1421_v9 }
  0x1f   :  { %1330 = vmatpush3.bf16.msra.mxu0 %v1421_v9  ;;  %1410 = vmatpush3.bf16.msra.mxu1 %v1421_v9 }
  0x22   :  { %1332 = vmatmul.mubr.bf16.vlgmr.msra.gmra.mrb[0].mxu0 %v1424_v10  ;;  %1364 = vmatmul.mubr.bf16.vlgmr.msra.gmra.mrb[0].mxu1 %v1425_v11 }
  0x23   :  { %1335 = vmatprep.mubr.bf16.mxu0 %v1426_v12  ;;  %1367 = vmatprep.mubr.bf16.mxu1 %v1427_v13 }
  0x24   :  { %9 = vsyncpa [#allocation4], 0  ;;  %v1432_v18 = vld [vmem:[%s1899_s0 + $0x28] sm:$0xff]   ;;  %v1434_v20 = vld [vmem:[%s1899_s0 + $0x30] sm:$0xff]   ;;  %s1478_s22 = smov [#allocation3]  }
  0x25   :  { %v1433_v19 = vld [vmem:[%s1899_s0 + $0xa8] sm:$0xff]   ;;  %v1435_v21 = vld [vmem:[%s1899_s0 + $0xb0] sm:$0xff]   ;;  %v1436_v22 = vld [vmem:[%s1899_s0 + $0x38] sm:$0xff]   ;;  %s1223_s23 = sshll.u32 %s1478_s22, 4  ;;  %s1224_s23 = int_to_ptr.vmem [resolvable:$true] %s1223_s23 }
  0x26   :  { %v1437_v23 = vld [vmem:[%s1899_s0 + $0xb8] sm:$0xff]   ;;  %v1438_v24 = vld [vmem:[%s1899_s0 + $0x40] sm:$0xff]   ;;  %v1440_v26 = vld [vmem:[%s1899_s0 + $0x48] sm:$0xff]   ;;  %p1459_p1 = scmp.lt.s32.totalorder %s1224_s23, %s1224_s23 }
  0x27   :  { %v1439_v25 = vld [vmem:[%s1899_s0 + $0xc0] sm:$0xff]   ;;  %v1441_v27 = vld [vmem:[%s1899_s0 + $0xc8] sm:$0xff]   ;;  %v1442_v28 = vld [vmem:[%s1899_s0 + $0x50] sm:$0xff]  }
  0x28   :  { %v1443_v29 = vld [vmem:[%s1899_s0 + $0xd0] sm:$0xff]   ;;  %v1444_v30 = vld [vmem:[%s1899_s0 + $0x58] sm:$0xff]   ;;  %v1446_v32 = vld [vmem:[%s1899_s0 + $0x60] sm:$0xff]  }
  0x29   :  { %v1445_v31 = vld [vmem:[%s1899_s0 + $0xd8] sm:$0xff]   ;;  %v1447_v33 = vld [vmem:[%s1899_s0 + $0xe0] sm:$0xff]   ;;  %v1448_v34 = vld [vmem:[%s1899_s0 + $0x68] sm:$0xff]  }
  0x2a   :  { %1336 = vmatmul.mubr.bf16.gmra.mrb[4].mxu0 %v1428_v14  ;;  %1368 = vmatmul.mubr.bf16.gmra.mrb[4].mxu1 %v1429_v15  ;;  %v1449_v35 = vld [vmem:[%s1899_s0 + $0xe8] sm:$0xff]   ;;  %v1450_v36 = vld [vmem:[%s1899_s0 + $0x70] sm:$0xff]   ;;  %v1452_v38 = vld [vmem:[%s1899_s0 + $0x78] sm:$0xff]  }
  0x2b   :  { %1339 = vmatprep.mubr.bf16.mxu0 %v1430_v16  ;;  %1371 = vmatprep.mubr.bf16.mxu1 %v1431_v17  ;;  %v1451_v37 = vld [vmem:[%s1899_s0 + $0xf0] sm:$0xff]   ;;  %v1453_v39 = vld [vmem:[%s1899_s0 + $0xf8] sm:$0xff]   ;;  %v1629_v40 = vld [vmem:[%s1901_s2] ss:$0 sm:$0xff] }
  0x2c   :  { %v1028_v42 = vld [vmem:[%s1902_s3 + $0x10] sm:$0xff]  ;;  %v1026_v48 = vld [vmem:[%s1902_s3] sm:$0xff]  ;;  %v1029_v54 = vld [vmem:[%s1902_s3 + $0x18] sm:$0xff] }
  0x2d   :  { %v1060_v44 = vld [vmem:[%s1902_s3 + $0x110] sm:$0xff]  ;;  %v1058_v50 = vld [vmem:[%s1902_s3 + $0x100] sm:$0xff]  ;;  %v1061_v56 = vld [vmem:[%s1902_s3 + $0x118] sm:$0xff] }
  0x2e   :  { %v1027_v62 = vld [vmem:[%s1902_s3 + $0x8] sm:$0xff]  ;;  %v1032_v10 = vld [vmem:[%s1902_s3 + $0x30] sm:$0xff]  ;;  %v1030_v16 = vld [vmem:[%s1902_s3 + $0x20] sm:$0xff] }
  0x2f   :  { %v1059_v0 = vld [vmem:[%s1902_s3 + $0x108] sm:$0xff]  ;;  %v1064_v12 = vld [vmem:[%s1902_s3 + $0x130] sm:$0xff] }
  0x32   :  { %1340 = vmatmul.mubr.bf16.gmra.mrb[8].mxu0 %v1432_v18  ;;  %1372 = vmatmul.mubr.bf16.gmra.mrb[8].mxu1 %v1433_v19  ;;  %v1062_v18 = vld [vmem:[%s1902_s3 + $0x120] sm:$0xff] }
  0x33   :  { %1343 = vmatprep.mubr.bf16.mxu0 %v1434_v20  ;;  %1375 = vmatprep.mubr.bf16.mxu1 %v1435_v21 }
  0x3a   :  { %1344 = vmatmul.mubr.bf16.gmra.mrb[12].mxu0 %v1436_v22  ;;  %1376 = vmatmul.mubr.bf16.gmra.mrb[12].mxu1 %v1437_v23  ;;  %v1033_v22 = vld [vmem:[%s1902_s3 + $0x38] sm:$0xff] }
  0x3b   :  { %1347 = vmatprep.mubr.bf16.mxu0 %v1438_v24  ;;  %1379 = vmatprep.mubr.bf16.mxu1 %v1439_v25  ;;  %v1065_v24 = vld [vmem:[%s1902_s3 + $0x138] sm:$0xff] }
  0x42   :  { %1348 = vmatmul.mubr.bf16.gmra.mrb[16].mxu0 %v1440_v26  ;;  %1380 = vmatmul.mubr.bf16.gmra.mrb[16].mxu1 %v1441_v27 }
  0x43   :  { %1351 = vmatprep.mubr.bf16.mxu0 %v1442_v28  ;;  %1383 = vmatprep.mubr.bf16.mxu1 %v1443_v29 }
  0x4a   :  { %1352 = vmatmul.mubr.bf16.gmra.mrb[20].mxu0 %v1444_v30  ;;  %1384 = vmatmul.mubr.bf16.gmra.mrb[20].mxu1 %v1445_v31  ;;  %v1031_v30 = vld [vmem:[%s1902_s3 + $0x28] sm:$0xff] }
  0x4b   :  { %1355 = vmatprep.mubr.bf16.mxu0 %v1446_v32  ;;  %1387 = vmatprep.mubr.bf16.mxu1 %v1447_v33  ;;  %v1063_v32 = vld [vmem:[%s1902_s3 + $0x128] sm:$0xff] }
  0x52   :  { %1356 = vmatmul.mubr.bf16.gmra.mrb[24].mxu0 %v1448_v34  ;;  %1388 = vmatmul.mubr.bf16.gmra.mrb[24].mxu1 %v1449_v35 }
  0x53   :  { %1359 = vmatprep.mubr.bf16.mxu0 %v1450_v36  ;;  %1391 = vmatprep.mubr.bf16.mxu1 %v1451_v37 }
  0x5a   :  { %1360 = vmatmul.mubr.bf16.gmra.mrb[28].mxu0 %v1452_v38  ;;  %1392 = vmatmul.mubr.bf16.gmra.mrb[28].mxu1 %v1453_v39 }
  0xf5   :  { %v1333_v41 = vpop.f32.mrb[0].mxu0  ;;  %v1365_v43 = vpop.f32.mrb[0].mxu1 }
  0xf6   :  { %v964_v45 = vadd.f32 %v1333_v41, %v1629_v40  ;;  %v996_v46 = vadd.f32 %v1365_v43, %v1629_v40  ;;  %v505_v47 = vpop.f32.mrb[1].mxu0  ;;  %v633_v49 = vpop.f32.mrb[1].mxu1  ;;  %v1036_v43 = vld [vmem:[%s1902_s3 + $0x50] sm:$0xff] }
  0xf7   :  { %v962_v51 = vadd.f32 %v1629_v40, %v505_v47  ;;  %v994_v52 = vadd.f32 %v1629_v40, %v633_v49  ;;  %v1334_v53 = vpop.f32.mrb[2].mxu0  ;;  %v1366_v55 = vpop.f32.mrb[2].mxu1  ;;  %v1034_v49 = vld [vmem:[%s1902_s3 + $0x40] sm:$0xff] }
  0xf8   :  { %v1092_v57 = vadd.f32 %v1028_v42, %v964_v45  ;;  %v1124_v58 = vadd.f32 %v1060_v44, %v996_v46  ;;  %v965_v59 = vadd.f32 %v1334_v53, %v1629_v40  ;;  %v997_v60 = vadd.f32 %v1366_v55, %v1629_v40  ;;  %v508_v61 = vpop.f32.mrb[3].mxu0  ;;  %v636_v63 = vpop.f32.mrb[3].mxu1  ;;  %v1068_v45 = vld [vmem:[%s1902_s3 + $0x150] sm:$0xff]  ;;  %v1037_v55 = vld [vmem:[%s1902_s3 + $0x58] sm:$0xff] }
  0xf9   :  { %v1090_v1 = vadd.f32 %v1026_v48, %v962_v51  ;;  %v1122_v2 = vadd.f32 %v1058_v50, %v994_v52  ;;  %v963_v3 = vadd.f32 %v1629_v40, %v508_v61  ;;  %v995_v4 = vadd.f32 %v1629_v40, %v636_v63  ;;  %v1066_v51 = vld [vmem:[%s1902_s3 + $0x140] sm:$0xff]  ;;  %v1035_v63 = vld [vmem:[%s1902_s3 + $0x48] sm:$0xff] }
  0xfa   :  { %1156 = vst [vmem:[#allocation3 + $0x10] sm:$0xff] %v1092_v57  ;;  %1188 = vst [vmem:[#allocation3 + $0x110] sm:$0xff] %v1124_v58  ;;  %v1093_v5 = vadd.f32 %v1029_v54, %v965_v59  ;;  %v1125_v6 = vadd.f32 %v1061_v56, %v997_v60  ;;  %v1069_v57 = vld [vmem:[%s1902_s3 + $0x158] sm:$0xff] }
  0xfb   :  { %1154 = vst [vmem:[#allocation3] sm:$0xff] %v1090_v1  ;;  %1186 = vst [vmem:[#allocation3 + $0x100] sm:$0xff] %v1122_v2  ;;  %v1091_v7 = vadd.f32 %v1027_v62, %v963_v3  ;;  %v1123_v8 = vadd.f32 %v1059_v0, %v995_v4  ;;  %v1067_v1 = vld [vmem:[%s1902_s3 + $0x148] sm:$0xff] }
  0xfc   :  { %1157 = vst [vmem:[#allocation3 + $0x18] sm:$0xff] %v1093_v5  ;;  %1189 = vst [vmem:[#allocation3 + $0x118] sm:$0xff] %v1125_v6 }
  0xfd   :  { %1155 = vst [vmem:[#allocation3 + $0x8] sm:$0xff] %v1091_v7  ;;  %1187 = vst [vmem:[#allocation3 + $0x108] sm:$0xff] %v1123_v8  ;;  %v1337_v9 = vpop.f32.mrb[4].mxu0  ;;  %v1369_v11 = vpop.f32.mrb[4].mxu1 }
  0xfe   :  { %v968_v13 = vadd.f32 %v1337_v9, %v1629_v40  ;;  %v1000_v14 = vadd.f32 %v1369_v11, %v1629_v40  ;;  %v521_v15 = vpop.f32.mrb[5].mxu0  ;;  %v649_v17 = vpop.f32.mrb[5].mxu1  ;;  %v1040_v11 = vld [vmem:[%s1902_s3 + $0x70] sm:$0xff] }
  0xff   :  { %v966_v19 = vadd.f32 %v1629_v40, %v521_v15  ;;  %v998_v20 = vadd.f32 %v1629_v40, %v649_v17  ;;  %v1338_v21 = vpop.f32.mrb[6].mxu0  ;;  %v1370_v23 = vpop.f32.mrb[6].mxu1  ;;  %v1038_v17 = vld [vmem:[%s1902_s3 + $0x60] sm:$0xff] }
 0x100   :  { %v1096_v25 = vadd.f32 %v1032_v10, %v968_v13  ;;  %v1128_v26 = vadd.f32 %v1064_v12, %v1000_v14  ;;  %v969_v27 = vadd.f32 %v1338_v21, %v1629_v40  ;;  %v1001_v28 = vadd.f32 %v1370_v23, %v1629_v40  ;;  %v524_v29 = vpop.f32.mrb[7].mxu0  ;;  %v652_v31 = vpop.f32.mrb[7].mxu1  ;;  %v1072_v13 = vld [vmem:[%s1902_s3 + $0x170] sm:$0xff]  ;;  %v1041_v23 = vld [vmem:[%s1902_s3 + $0x78] sm:$0xff] }
 0x101   :  { %v1094_v33 = vadd.f32 %v1030_v16, %v966_v19  ;;  %v1126_v34 = vadd.f32 %v1062_v18, %v998_v20  ;;  %v967_v35 = vadd.f32 %v1629_v40, %v524_v29  ;;  %v999_v36 = vadd.f32 %v1629_v40, %v652_v31  ;;  %v1070_v19 = vld [vmem:[%s1902_s3 + $0x160] sm:$0xff]  ;;  %v1039_v31 = vld [vmem:[%s1902_s3 + $0x68] sm:$0xff] }
 0x102   :  { %1160 = vst [vmem:[#allocation3 + $0x30] sm:$0xff] %v1096_v25  ;;  %1192 = vst [vmem:[#allocation3 + $0x130] sm:$0xff] %v1128_v26  ;;  %v1097_v37 = vadd.f32 %v1033_v22, %v969_v27  ;;  %v1129_v38 = vadd.f32 %v1065_v24, %v1001_v28  ;;  %v1073_v25 = vld [vmem:[%s1902_s3 + $0x178] sm:$0xff] }
 0x103   :  { %1158 = vst [vmem:[#allocation3 + $0x20] sm:$0xff] %v1094_v33  ;;  %1190 = vst [vmem:[#allocation3 + $0x120] sm:$0xff] %v1126_v34  ;;  %v1095_v39 = vadd.f32 %v1031_v30, %v967_v35  ;;  %v1127_v41 = vadd.f32 %v1063_v32, %v999_v36  ;;  %v1071_v33 = vld [vmem:[%s1902_s3 + $0x168] sm:$0xff] }
 0x104   :  { %1161 = vst [vmem:[#allocation3 + $0x38] sm:$0xff] %v1097_v37  ;;  %1193 = vst [vmem:[#allocation3 + $0x138] sm:$0xff] %v1129_v38 }
 0x105   :  { %1159 = vst [vmem:[#allocation3 + $0x28] sm:$0xff] %v1095_v39  ;;  %1191 = vst [vmem:[#allocation3 + $0x128] sm:$0xff] %v1127_v41  ;;  %v1341_v42 = vpop.f32.mrb[8].mxu0  ;;  %v1373_v44 = vpop.f32.mrb[8].mxu1 }
 0x106   :  { %v972_v46 = vadd.f32 %v1341_v42, %v1629_v40  ;;  %v1004_v47 = vadd.f32 %v1373_v44, %v1629_v40  ;;  %v537_v48 = vpop.f32.mrb[9].mxu0  ;;  %v665_v50 = vpop.f32.mrb[9].mxu1  ;;  %v1044_v44 = vld [vmem:[%s1902_s3 + $0x90] sm:$0xff] }
 0x107   :  { %v970_v52 = vadd.f32 %v1629_v40, %v537_v48  ;;  %v1002_v53 = vadd.f32 %v1629_v40, %v665_v50  ;;  %v1342_v54 = vpop.f32.mrb[10].mxu0  ;;  %v1374_v56 = vpop.f32.mrb[10].mxu1  ;;  %v1042_v50 = vld [vmem:[%s1902_s3 + $0x80] sm:$0xff] }
 0x108   :  { %v1100_v58 = vadd.f32 %v1036_v43, %v972_v46  ;;  %v1132_v59 = vadd.f32 %v1068_v45, %v1004_v47  ;;  %v973_v60 = vadd.f32 %v1342_v54, %v1629_v40  ;;  %v1005_v61 = vadd.f32 %v1374_v56, %v1629_v40  ;;  %v540_v62 = vpop.f32.mrb[11].mxu0  ;;  %v668_v0 = vpop.f32.mrb[11].mxu1  ;;  %v1076_v46 = vld [vmem:[%s1902_s3 + $0x190] sm:$0xff]  ;;  %v1045_v56 = vld [vmem:[%s1902_s3 + $0x98] sm:$0xff] }
 0x109   :  { %v1098_v2 = vadd.f32 %v1034_v49, %v970_v52  ;;  %v1130_v3 = vadd.f32 %v1066_v51, %v1002_v53  ;;  %v971_v4 = vadd.f32 %v1629_v40, %v540_v62  ;;  %v1003_v5 = vadd.f32 %v1629_v40, %v668_v0  ;;  %v1074_v52 = vld [vmem:[%s1902_s3 + $0x180] sm:$0xff]  ;;  %v1043_v0 = vld [vmem:[%s1902_s3 + $0x88] sm:$0xff] }
 0x10a   :  { %1164 = vst [vmem:[#allocation3 + $0x50] sm:$0xff] %v1100_v58  ;;  %1196 = vst [vmem:[#allocation3 + $0x150] sm:$0xff] %v1132_v59  ;;  %v1101_v6 = vadd.f32 %v1037_v55, %v973_v60  ;;  %v1133_v7 = vadd.f32 %v1069_v57, %v1005_v61  ;;  %v1077_v58 = vld [vmem:[%s1902_s3 + $0x198] sm:$0xff] }
 0x10b   :  { %1162 = vst [vmem:[#allocation3 + $0x40] sm:$0xff] %v1098_v2  ;;  %1194 = vst [vmem:[#allocation3 + $0x140] sm:$0xff] %v1130_v3  ;;  %v1099_v8 = vadd.f32 %v1035_v63, %v971_v4  ;;  %v1131_v9 = vadd.f32 %v1067_v1, %v1003_v5  ;;  %v1075_v2 = vld [vmem:[%s1902_s3 + $0x188] sm:$0xff] }
 0x10c   :  { %1165 = vst [vmem:[#allocation3 + $0x58] sm:$0xff] %v1101_v6  ;;  %1197 = vst [vmem:[#allocation3 + $0x158] sm:$0xff] %v1133_v7 }
 0x10d   :  { %1163 = vst [vmem:[#allocation3 + $0x48] sm:$0xff] %v1099_v8  ;;  %1195 = vst [vmem:[#allocation3 + $0x148] sm:$0xff] %v1131_v9  ;;  %v1345_v10 = vpop.f32.mrb[12].mxu0  ;;  %v1377_v12 = vpop.f32.mrb[12].mxu1 }
 0x10e   :  { %v976_v14 = vadd.f32 %v1345_v10, %v1629_v40  ;;  %v1008_v15 = vadd.f32 %v1377_v12, %v1629_v40  ;;  %v553_v16 = vpop.f32.mrb[13].mxu0  ;;  %v681_v18 = vpop.f32.mrb[13].mxu1  ;;  %v1048_v12 = vld [vmem:[%s1902_s3 + $0xb0] sm:$0xff] }
 0x10f   :  { %v974_v20 = vadd.f32 %v1629_v40, %v553_v16  ;;  %v1006_v21 = vadd.f32 %v1629_v40, %v681_v18  ;;  %v1346_v22 = vpop.f32.mrb[14].mxu0  ;;  %v1378_v24 = vpop.f32.mrb[14].mxu1  ;;  %v1046_v18 = vld [vmem:[%s1902_s3 + $0xa0] sm:$0xff] }
 0x110   :  { %v1104_v26 = vadd.f32 %v1040_v11, %v976_v14  ;;  %v1136_v27 = vadd.f32 %v1072_v13, %v1008_v15  ;;  %v977_v28 = vadd.f32 %v1346_v22, %v1629_v40  ;;  %v1009_v29 = vadd.f32 %v1378_v24, %v1629_v40  ;;  %v556_v30 = vpop.f32.mrb[15].mxu0  ;;  %v684_v32 = vpop.f32.mrb[15].mxu1  ;;  %v1080_v14 = vld [vmem:[%s1902_s3 + $0x1b0] sm:$0xff]  ;;  %v1049_v24 = vld [vmem:[%s1902_s3 + $0xb8] sm:$0xff] }
 0x111   :  { %v1102_v34 = vadd.f32 %v1038_v17, %v974_v20  ;;  %v1134_v35 = vadd.f32 %v1070_v19, %v1006_v21  ;;  %v975_v36 = vadd.f32 %v1629_v40, %v556_v30  ;;  %v1007_v37 = vadd.f32 %v1629_v40, %v684_v32  ;;  %v1078_v20 = vld [vmem:[%s1902_s3 + $0x1a0] sm:$0xff]  ;;  %v1047_v32 = vld [vmem:[%s1902_s3 + $0xa8] sm:$0xff] }
 0x112   :  { %1168 = vst [vmem:[#allocation3 + $0x70] sm:$0xff] %v1104_v26  ;;  %1200 = vst [vmem:[#allocation3 + $0x170] sm:$0xff] %v1136_v27  ;;  %v1105_v38 = vadd.f32 %v1041_v23, %v977_v28  ;;  %v1137_v39 = vadd.f32 %v1073_v25, %v1009_v29  ;;  %v1081_v26 = vld [vmem:[%s1902_s3 + $0x1b8] sm:$0xff] }
 0x113   :  { %1166 = vst [vmem:[#allocation3 + $0x60] sm:$0xff] %v1102_v34  ;;  %1198 = vst [vmem:[#allocation3 + $0x160] sm:$0xff] %v1134_v35  ;;  %v1103_v41 = vadd.f32 %v1039_v31, %v975_v36  ;;  %v1135_v42 = vadd.f32 %v1071_v33, %v1007_v37  ;;  %v1079_v34 = vld [vmem:[%s1902_s3 + $0x1a8] sm:$0xff] }
 0x114   :  { %1169 = vst [vmem:[#allocation3 + $0x78] sm:$0xff] %v1105_v38  ;;  %1201 = vst [vmem:[#allocation3 + $0x178] sm:$0xff] %v1137_v39 }
 0x115   :  { %1167 = vst [vmem:[#allocation3 + $0x68] sm:$0xff] %v1103_v41  ;;  %1199 = vst [vmem:[#allocation3 + $0x168] sm:$0xff] %v1135_v42  ;;  %v1349_v43 = vpop.f32.mrb[16].mxu0  ;;  %v1381_v45 = vpop.f32.mrb[16].mxu1 }
 0x116   :  { %v980_v47 = vadd.f32 %v1349_v43, %v1629_v40  ;;  %v1012_v48 = vadd.f32 %v1381_v45, %v1629_v40  ;;  %v569_v49 = vpop.f32.mrb[17].mxu0  ;;  %v697_v51 = vpop.f32.mrb[17].mxu1  ;;  %v1052_v45 = vld [vmem:[%s1902_s3 + $0xd0] sm:$0xff] }
 0x117   :  { %v978_v53 = vadd.f32 %v1629_v40, %v569_v49  ;;  %v1010_v54 = vadd.f32 %v1629_v40, %v697_v51  ;;  %v1350_v55 = vpop.f32.mrb[18].mxu0  ;;  %v1382_v57 = vpop.f32.mrb[18].mxu1  ;;  %v1050_v51 = vld [vmem:[%s1902_s3 + $0xc0] sm:$0xff] }
 0x118   :  { %v1108_v59 = vadd.f32 %v1044_v44, %v980_v47  ;;  %v1140_v60 = vadd.f32 %v1076_v46, %v1012_v48  ;;  %v981_v61 = vadd.f32 %v1350_v55, %v1629_v40  ;;  %v1013_v62 = vadd.f32 %v1382_v57, %v1629_v40  ;;  %v572_v63 = vpop.f32.mrb[19].mxu0  ;;  %v700_v1 = vpop.f32.mrb[19].mxu1  ;;  %v1084_v47 = vld [vmem:[%s1902_s3 + $0x1d0] sm:$0xff]  ;;  %v1053_v57 = vld [vmem:[%s1902_s3 + $0xd8] sm:$0xff] }
 0x119   :  { %v1106_v3 = vadd.f32 %v1042_v50, %v978_v53  ;;  %v1138_v4 = vadd.f32 %v1074_v52, %v1010_v54  ;;  %v979_v5 = vadd.f32 %v1629_v40, %v572_v63  ;;  %v1011_v6 = vadd.f32 %v1629_v40, %v700_v1  ;;  %v1082_v53 = vld [vmem:[%s1902_s3 + $0x1c0] sm:$0xff]  ;;  %v1051_v1 = vld [vmem:[%s1902_s3 + $0xc8] sm:$0xff] }
 0x11a   :  { %1172 = vst [vmem:[#allocation3 + $0x90] sm:$0xff] %v1108_v59  ;;  %1204 = vst [vmem:[#allocation3 + $0x190] sm:$0xff] %v1140_v60  ;;  %v1109_v7 = vadd.f32 %v1045_v56, %v981_v61  ;;  %v1141_v8 = vadd.f32 %v1077_v58, %v1013_v62  ;;  %v1085_v59 = vld [vmem:[%s1902_s3 + $0x1d8] sm:$0xff] }
 0x11b   :  { %1170 = vst [vmem:[#allocation3 + $0x80] sm:$0xff] %v1106_v3  ;;  %1202 = vst [vmem:[#allocation3 + $0x180] sm:$0xff] %v1138_v4  ;;  %v1107_v9 = vadd.f32 %v1043_v0, %v979_v5  ;;  %v1139_v10 = vadd.f32 %v1075_v2, %v1011_v6  ;;  %v1083_v3 = vld [vmem:[%s1902_s3 + $0x1c8] sm:$0xff] }
 0x11c   :  { %1173 = vst [vmem:[#allocation3 + $0x98] sm:$0xff] %v1109_v7  ;;  %1205 = vst [vmem:[#allocation3 + $0x198] sm:$0xff] %v1141_v8 }
 0x11d   :  { %1171 = vst [vmem:[#allocation3 + $0x88] sm:$0xff] %v1107_v9  ;;  %1203 = vst [vmem:[#allocation3 + $0x188] sm:$0xff] %v1139_v10  ;;  %v1353_v11 = vpop.f32.mrb[20].mxu0  ;;  %v1385_v13 = vpop.f32.mrb[20].mxu1 }
 0x11e   :  { %v984_v15 = vadd.f32 %v1353_v11, %v1629_v40  ;;  %v1016_v16 = vadd.f32 %v1385_v13, %v1629_v40  ;;  %v585_v17 = vpop.f32.mrb[21].mxu0  ;;  %v713_v19 = vpop.f32.mrb[21].mxu1  ;;  %v1056_v13 = vld [vmem:[%s1902_s3 + $0xf0] sm:$0xff] }
 0x11f   :  { %v982_v21 = vadd.f32 %v1629_v40, %v585_v17  ;;  %v1014_v22 = vadd.f32 %v1629_v40, %v713_v19  ;;  %v1354_v23 = vpop.f32.mrb[22].mxu0  ;;  %v1386_v25 = vpop.f32.mrb[22].mxu1  ;;  %v1054_v19 = vld [vmem:[%s1902_s3 + $0xe0] sm:$0xff] }
 0x120   :  { %v1112_v27 = vadd.f32 %v1048_v12, %v984_v15  ;;  %v1144_v28 = vadd.f32 %v1080_v14, %v1016_v16  ;;  %v985_v29 = vadd.f32 %v1354_v23, %v1629_v40  ;;  %v1017_v30 = vadd.f32 %v1386_v25, %v1629_v40  ;;  %v588_v31 = vpop.f32.mrb[23].mxu0  ;;  %v716_v33 = vpop.f32.mrb[23].mxu1  ;;  %v1088_v15 = vld [vmem:[%s1902_s3 + $0x1f0] sm:$0xff]  ;;  %v1057_v25 = vld [vmem:[%s1902_s3 + $0xf8] sm:$0xff] }
 0x121   :  { %v1110_v35 = vadd.f32 %v1046_v18, %v982_v21  ;;  %v1142_v36 = vadd.f32 %v1078_v20, %v1014_v22  ;;  %v983_v37 = vadd.f32 %v1629_v40, %v588_v31  ;;  %v1015_v38 = vadd.f32 %v1629_v40, %v716_v33  ;;  %v1086_v21 = vld [vmem:[%s1902_s3 + $0x1e0] sm:$0xff]  ;;  %v1055_v33 = vld [vmem:[%s1902_s3 + $0xe8] sm:$0xff] }
 0x122   :  { %1176 = vst [vmem:[#allocation3 + $0xb0] sm:$0xff] %v1112_v27  ;;  %1208 = vst [vmem:[#allocation3 + $0x1b0] sm:$0xff] %v1144_v28  ;;  %v1113_v39 = vadd.f32 %v1049_v24, %v985_v29  ;;  %v1145_v41 = vadd.f32 %v1081_v26, %v1017_v30  ;;  %v1089_v27 = vld [vmem:[%s1902_s3 + $0x1f8] sm:$0xff] }
 0x123   :  { %1174 = vst [vmem:[#allocation3 + $0xa0] sm:$0xff] %v1110_v35  ;;  %1206 = vst [vmem:[#allocation3 + $0x1a0] sm:$0xff] %v1142_v36  ;;  %v1111_v42 = vadd.f32 %v1047_v32, %v983_v37  ;;  %v1143_v43 = vadd.f32 %v1079_v34, %v1015_v38  ;;  %v1087_v35 = vld [vmem:[%s1902_s3 + $0x1e8] sm:$0xff]  ;;  %s1454_s3 = scalar_lea.vmem %s1224_s23, 8192 }
 0x124   :  { %1177 = vst [vmem:[#allocation3 + $0xb8] sm:$0xff] %v1113_v39  ;;  %1209 = vst [vmem:[#allocation3 + $0x1b8] sm:$0xff] %v1145_v41  ;;  %p1455_p0 = scmp.ne.s32.totalorder %s1224_s23, %s1454_s3  ;;  %p1460_p2 = scmp.lt.s32.totalorder %s1454_s3, %s1454_s3 }
 0x125   :  { %1175 = vst [vmem:[#allocation3 + $0xa8] sm:$0xff] %v1111_v42  ;;  %1207 = vst [vmem:[#allocation3 + $0x1a8] sm:$0xff] %v1143_v43  ;;  %v1357_v44 = vpop.f32.mrb[24].mxu0  ;;  %v1389_v46 = vpop.f32.mrb[24].mxu1 }
 0x126   :  { %v988_v48 = vadd.f32 %v1357_v44, %v1629_v40  ;;  %v1020_v49 = vadd.f32 %v1389_v46, %v1629_v40  ;;  %v601_v50 = vpop.f32.mrb[25].mxu0  ;;  %v729_v52 = vpop.f32.mrb[25].mxu1  ;;  %p1461_p3 = por %p1460_p2, %p1459_p1 }
 0x127   :  { %v986_v54 = vadd.f32 %v1629_v40, %v601_v50  ;;  %v1018_v55 = vadd.f32 %v1629_v40, %v729_v52  ;;  %v1358_v56 = vpop.f32.mrb[26].mxu0  ;;  %v1390_v58 = vpop.f32.mrb[26].mxu1 }
 0x128   :  { %v1116_v60 = vadd.f32 %v1052_v45, %v988_v48  ;;  %v1148_v61 = vadd.f32 %v1084_v47, %v1020_v49  ;;  %v989_v62 = vadd.f32 %v1358_v56, %v1629_v40  ;;  %v1021_v63 = vadd.f32 %v1390_v58, %v1629_v40  ;;  %v604_v0 = vpop.f32.mrb[27].mxu0  ;;  %v732_v2 = vpop.f32.mrb[27].mxu1  ;;  %p1462_p4 = pnand %p1461_p3, %p1455_p0 }
 0x129   :  { %v1114_v4 = vadd.f32 %v1050_v51, %v986_v54  ;;  %v1146_v5 = vadd.f32 %v1082_v53, %v1018_v55  ;;  %v987_v6 = vadd.f32 %v1629_v40, %v604_v0  ;;  %v1019_v7 = vadd.f32 %v1629_v40, %v732_v2 }
 0x12a   :  { %1180 = vst [vmem:[#allocation3 + $0xd0] sm:$0xff] %v1116_v60  ;;  %1212 = vst [vmem:[#allocation3 + $0x1d0] sm:$0xff] %v1148_v61  ;;  %v1117_v8 = vadd.f32 %v1053_v57, %v989_v62  ;;  %v1149_v9 = vadd.f32 %v1085_v59, %v1021_v63 }
 0x12b   :  { %1178 = vst [vmem:[#allocation3 + $0xc0] sm:$0xff] %v1114_v4  ;;  %1210 = vst [vmem:[#allocation3 + $0x1c0] sm:$0xff] %v1146_v5  ;;  %v1115_v10 = vadd.f32 %v1051_v1, %v987_v6  ;;  %v1147_v11 = vadd.f32 %v1083_v3, %v1019_v7 }
 0x12c   :  { %1181 = vst [vmem:[#allocation3 + $0xd8] sm:$0xff] %v1117_v8  ;;  %1213 = vst [vmem:[#allocation3 + $0x1d8] sm:$0xff] %v1149_v9 }
 0x12d   :  { %1179 = vst [vmem:[#allocation3 + $0xc8] sm:$0xff] %v1115_v10  ;;  %1211 = vst [vmem:[#allocation3 + $0x1c8] sm:$0xff] %v1147_v11  ;;  %v1361_v12 = vpop.f32.mrb[28].mxu0  ;;  %v1393_v14 = vpop.f32.mrb[28].mxu1 }
 0x12e   :  { %v992_v16 = vadd.f32 %v1361_v12, %v1629_v40  ;;  %v1024_v17 = vadd.f32 %v1393_v14, %v1629_v40  ;;  %v617_v18 = vpop.f32.mrb[29].mxu0  ;;  %v745_v20 = vpop.f32.mrb[29].mxu1 }
 0x12f   :  { %v990_v22 = vadd.f32 %v1629_v40, %v617_v18  ;;  %v1022_v23 = vadd.f32 %v1629_v40, %v745_v20  ;;  %v1362_v24 = vpop.f32.mrb[30].mxu0  ;;  %v1394_v26 = vpop.f32.mrb[30].mxu1 }
 0x130   :  { %v1120_v28 = vadd.f32 %v1056_v13, %v992_v16  ;;  %v1152_v29 = vadd.f32 %v1088_v15, %v1024_v17  ;;  %v993_v30 = vadd.f32 %v1362_v24, %v1629_v40  ;;  %v1025_v31 = vadd.f32 %v1394_v26, %v1629_v40  ;;  %v620_v32 = vpop.f32.mrb[31].mxu0  ;;  %v748_v34 = vpop.f32.mrb[31].mxu1 }
 0x131   :  { %v1118_v36 = vadd.f32 %v1054_v19, %v990_v22  ;;  %v1150_v37 = vadd.f32 %v1086_v21, %v1022_v23  ;;  %v991_v38 = vadd.f32 %v1629_v40, %v620_v32  ;;  %v1023_v39 = vadd.f32 %v1629_v40, %v748_v34 }
 0x132   :  { %1184 = vst [vmem:[#allocation3 + $0xf0] sm:$0xff] %v1120_v28  ;;  %1216 = vst [vmem:[#allocation3 + $0x1f0] sm:$0xff] %v1152_v29  ;;  %v1121_v41 = vadd.f32 %v1057_v25, %v993_v30  ;;  %v1153_v42 = vadd.f32 %v1089_v27, %v1025_v31 }
 0x133   :  { %1182 = vst [vmem:[#allocation3 + $0xe0] sm:$0xff] %v1118_v36  ;;  %1214 = vst [vmem:[#allocation3 + $0x1e0] sm:$0xff] %v1150_v37  ;;  %v1119_v43 = vadd.f32 %v1055_v33, %v991_v38  ;;  %v1151_v44 = vadd.f32 %v1087_v35, %v1023_v39 }
 0x134   :  { %1185 = vst [vmem:[#allocation3 + $0xf8] sm:$0xff] %v1121_v41  ;;  %1217 = vst [vmem:[#allocation3 + $0x1f8] sm:$0xff] %v1153_v42 }
 0x135   :  { %1183 = vst [vmem:[#allocation3 + $0xe8] sm:$0xff] %v1119_v43  ;;  %1215 = vst [vmem:[#allocation3 + $0x1e8] sm:$0xff] %v1151_v44 }
 0x136   :  { %1465 = shalt.err (!%p1462_p4)
}
 0x137   :  { %s1466_s30 = scalar_lea.hbm %s1903_s4, 8192 }
 0x138   :  { %p1467_p5 = scmp.ne.s32.totalorder %s1903_s4, %s1466_s30  ;;  %p1470_p6 = scmp.lt.u32.totalorder %s1466_s30, %s1903_s4 }
 0x13a   :  { %p1472_p7 = pnand %p1470_p6, %p1467_p5 }
 0x13c   :  { %1475 = shalt.err (!%p1472_p7)
}
 0x13d   :  { %s1479_s9 = smov 128   ;;  %s1480_s10 = smov 8  }
 0x13e   :  { %1229 = dma.vmem_to_hbm [thread:$0]  %s1224_s23, 8192, %s1903_s4, [#allocation4], %s1479_s9, %s1479_s9, %s1480_s10  }
 0x13f   :  { %1476 = dma.done.wait [#allocation4], 8192  }
 0x140   :  { %1477 = vsyncadd [#allocation4], 4294959104 }
 0x141   :  { %1233 = vsyncpa [#allocation4], 1 }

// kernel: spatial_self_attention.6
= control target key start
LH: loop header
LB: loop body
LE: loop exit
PB: predicated region body
PF: predicated region fallthrough
CT: control target
= control target key end

     0   :  { %s4235_s12 = smov 0   ;;  %s4237_s13 = smov 0   ;;  %s5744_s0 = inlined_call_operand.vmem [shape: bf16[2,256,384], index: 0, kind: input, shape index: {}, may-alias: {0,1,2}]   ;;  %s5745_s1 = inlined_call_operand.vmem [shape: bf16[2,256,384], index: 1, kind: input, shape index: {}, may-alias: {0,1,2}]   ;;  %s5746_s2 = inlined_call_operand.vmem [shape: bf16[2,256,384], index: 2, kind: input, shape index: {}, may-alias: {0,1,2}]   ;;  %s5747_s3 = inlined_call_operand.vmem [shape: bf16[2,256,128], index: 3, kind: output, shape index: {}]  }
   0x1   :  { %s4239_s14 = smov 0   ;;  %s4241_s15 = smov 0  }
   0x2   :  { %s4243_s16 = smov 0  }
   0x3 LB: > { %s32_s17 = sadd.s32 1, %s4206_s15  ;;  %p48_p1 = scmp.ne.s32.totalorder %s4198_s13, %s4194_s12  ;;  %s4210_s16 = sphi %s4243_s16, %s13_s16   ;;  %s4206_s15 = sphi %s4241_s15, %s6012_s15   ;;  %s4202_s14 = sphi %s4239_s14, %s6011_s14   ;;  %s4198_s13 = sphi %s4237_s13, %s6010_s13   ;;  %s4194_s12 = sphi %s4235_s12, %s6009_s12  }
   0x4   : > { %p34_p0 = scmp.ge.s32.totalorder %s32_s17, 2  ;;  %p49_p2 = scmp.eq.s32.totalorder %s4210_s16, 0 }
   0x5   : > { %s41_s20 = sadd.s32 1, %s4198_s13  ;;  %p3375_p5 = scmp.ge.s32.totalorder %s4210_s16, 2 }
   0x6   : > { %s6014_s17 = smov (%p34_p0, %s32_s17), 0  ;;  %p4266_p3 = por %p49_p2, %p48_p1 }
   0x7   : > { %s36_s19 = ssub.s32 %s4206_s15, %s6014_s17  ;;  %158 = sbr.rel (%p3375_p5) target bundleno = 92 (0x5c), region = 16 }
   0x8   : > { %p39_p4 = scmp.eq.s32.totalorder %s36_s19, 0 }
   0xa   : > { %s4274_s21 = scalar_select %p39_p4, %s4198_s13, %s41_s20  }
   0xe   : > { %161 = sbr.rel (!%p4266_p3) target bundleno = 40 (0x28), region = 20  ;;  %s163_s22 = sand.u32 (%p4266_p3), 1, %s4198_s13  }
   0xf   : > { %s3822_s23 = smul.u32 (%p4266_p3), 384, %s4206_s15  ;;  %s3376_s24 = sshll.u32 (%p4266_p3), %s163_s22, 7 }
  0x10   : > { %s4289_s28 = scalar_lea.vmem (%p4266_p3), [#allocation5], %s3376_s24 }
  0x11   : > { %s4284_s27 = scalar_lea.vmem (%p4266_p3), %s5744_s0, %s3822_s23 }
  0x12   : > { %v187_v0 = vld [vmem:[%s4284_s27] sm:$0xf] (%p4266_p3)  ;;  %v189_v1 = vld [vmem:[%s4284_s27 + $0xc] sm:$0xf] (%p4266_p3)  ;;  %v191_v2 = vld [vmem:[%s4284_s27 + $0x18] sm:$0xf] (%p4266_p3) }
  0x13   : > { %188 = vst [vmem:[%s4289_s28] sm:$0xf] (%p4266_p3), %v187_v0  ;;  %190 = vst [vmem:[%s4289_s28 + $0x4] sm:$0xf] (%p4266_p3), %v189_v1  ;;  %v193_v3 = vld [vmem:[%s4284_s27 + $0x24] sm:$0xf] (%p4266_p3) }
  0x14   : > { %192 = vst [vmem:[%s4289_s28 + $0x8] sm:$0xf] (%p4266_p3), %v191_v2  ;;  %v195_v4 = vld [vmem:[%s4284_s27 + $0x30] sm:$0xf] (%p4266_p3)  ;;  %v197_v5 = vld [vmem:[%s4284_s27 + $0x3c] sm:$0xf] (%p4266_p3) }
  0x15   : > { %194 = vst [vmem:[%s4289_s28 + $0xc] sm:$0xf] %v193_v3  ;;  %196 = vst [vmem:[%s4289_s28 + $0x10] sm:$0xf] %v195_v4  ;;  %v199_v6 = vld [vmem:[%s4284_s27 + $0x48] sm:$0xf] }
  0x16   : > { %198 = vst [vmem:[%s4289_s28 + $0x14] sm:$0xf] %v197_v5  ;;  %v201_v7 = vld [vmem:[%s4284_s27 + $0x54] sm:$0xf]  ;;  %v203_v8 = vld [vmem:[%s4284_s27 + $0x60] sm:$0xf] }
  0x17   : > { %200 = vst [vmem:[%s4289_s28 + $0x18] sm:$0xf] %v199_v6  ;;  %202 = vst [vmem:[%s4289_s28 + $0x1c] sm:$0xf] %v201_v7  ;;  %v205_v9 = vld [vmem:[%s4284_s27 + $0x6c] sm:$0xf] }
  0x18   : > { %204 = vst [vmem:[%s4289_s28 + $0x20] sm:$0xf] %v203_v8  ;;  %v207_v10 = vld [vmem:[%s4284_s27 + $0x78] sm:$0xf]  ;;  %v209_v11 = vld [vmem:[%s4284_s27 + $0x84] sm:$0xf] }
  0x19   : > { %206 = vst [vmem:[%s4289_s28 + $0x24] sm:$0xf] %v205_v9  ;;  %208 = vst [vmem:[%s4289_s28 + $0x28] sm:$0xf] %v207_v10  ;;  %v211_v12 = vld [vmem:[%s4284_s27 + $0x90] sm:$0xf] }
  0x1a   : > { %210 = vst [vmem:[%s4289_s28 + $0x2c] sm:$0xf] %v209_v11  ;;  %v213_v13 = vld [vmem:[%s4284_s27 + $0x9c] sm:$0xf]  ;;  %v215_v14 = vld [vmem:[%s4284_s27 + $0xa8] sm:$0xf] }
  0x1b   : > { %212 = vst [vmem:[%s4289_s28 + $0x30] sm:$0xf] %v211_v12  ;;  %214 = vst [vmem:[%s4289_s28 + $0x34] sm:$0xf] %v213_v13  ;;  %v217_v15 = vld [vmem:[%s4284_s27 + $0xb4] sm:$0xf] }
  0x1c   : > { %216 = vst [vmem:[%s4289_s28 + $0x38] sm:$0xf] %v215_v14  ;;  %v219_v16 = vld [vmem:[%s4284_s27 + $0xc0] sm:$0xf]  ;;  %v221_v17 = vld [vmem:[%s4284_s27 + $0xcc] sm:$0xf] }
  0x1d   : > { %218 = vst [vmem:[%s4289_s28 + $0x3c] sm:$0xf] %v217_v15  ;;  %220 = vst [vmem:[%s4289_s28 + $0x40] sm:$0xf] %v219_v16  ;;  %v223_v18 = vld [vmem:[%s4284_s27 + $0xd8] sm:$0xf] }
  0x1e   : > { %222 = vst [vmem:[%s4289_s28 + $0x44] sm:$0xf] %v221_v17  ;;  %v225_v19 = vld [vmem:[%s4284_s27 + $0xe4] sm:$0xf]  ;;  %v227_v20 = vld [vmem:[%s4284_s27 + $0xf0] sm:$0xf] }
  0x1f   : > { %224 = vst [vmem:[%s4289_s28 + $0x48] sm:$0xf] %v223_v18  ;;  %226 = vst [vmem:[%s4289_s28 + $0x4c] sm:$0xf] %v225_v19  ;;  %v229_v21 = vld [vmem:[%s4284_s27 + $0xfc] sm:$0xf] }
  0x20   : > { %228 = vst [vmem:[%s4289_s28 + $0x50] sm:$0xf] %v227_v20  ;;  %v231_v22 = vld [vmem:[%s4284_s27 + $0x108] sm:$0xf]  ;;  %v233_v23 = vld [vmem:[%s4284_s27 + $0x114] sm:$0xf] }
  0x21   : > { %230 = vst [vmem:[%s4289_s28 + $0x54] sm:$0xf] %v229_v21  ;;  %232 = vst [vmem:[%s4289_s28 + $0x58] sm:$0xf] %v231_v22  ;;  %v235_v24 = vld [vmem:[%s4284_s27 + $0x120] sm:$0xf] }
  0x22   : > { %234 = vst [vmem:[%s4289_s28 + $0x5c] sm:$0xf] %v233_v23  ;;  %v237_v25 = vld [vmem:[%s4284_s27 + $0x12c] sm:$0xf]  ;;  %v239_v26 = vld [vmem:[%s4284_s27 + $0x138] sm:$0xf] }
  0x23   : > { %236 = vst [vmem:[%s4289_s28 + $0x60] sm:$0xf] %v235_v24  ;;  %238 = vst [vmem:[%s4289_s28 + $0x64] sm:$0xf] %v237_v25  ;;  %v241_v27 = vld [vmem:[%s4284_s27 + $0x144] sm:$0xf] }
  0x24   : > { %240 = vst [vmem:[%s4289_s28 + $0x68] sm:$0xf] %v239_v26  ;;  %v243_v28 = vld [vmem:[%s4284_s27 + $0x150] sm:$0xf]  ;;  %v245_v29 = vld [vmem:[%s4284_s27 + $0x15c] sm:$0xf] }
  0x25   : > { %242 = vst [vmem:[%s4289_s28 + $0x6c] sm:$0xf] %v241_v27  ;;  %244 = vst [vmem:[%s4289_s28 + $0x70] sm:$0xf] %v243_v28  ;;  %v247_v30 = vld [vmem:[%s4284_s27 + $0x168] sm:$0xf] }
  0x26   : > { %246 = vst [vmem:[%s4289_s28 + $0x74] sm:$0xf] %v245_v29  ;;  %v249_v31 = vld [vmem:[%s4284_s27 + $0x174] sm:$0xf]  ;;  %248 = vst [vmem:[%s4289_s28 + $0x78] sm:$0xf] %v247_v30 }
  0x27   : > { %250 = vst [vmem:[%s4289_s28 + $0x7c] sm:$0xf] %v249_v31 }
  0x28 PF: > { %337 = sbr.rel (!%p4266_p3) target bundleno = 66 (0x42), region = 61  ;;  %s339_s29 = sand.u32 (%p4266_p3), 1, %s4198_s13  }
  0x29   : > { %s3379_s30 = smul.u32 (%p4266_p3), 384, %s4206_s15  ;;  %s3378_s4 = sshll.u32 (%p4266_p3), %s339_s29, 7 }
  0x2a   : > { %s4364_s8 = scalar_lea.vmem (%p4266_p3), [#allocation6], %s3378_s4 }
  0x2b   : > { %s4359_s7 = scalar_lea.vmem (%p4266_p3), %s5745_s1, %s3379_s30 }
  0x2c   : > { %v3380_v32 = vld [vmem:[%s4359_s7 + $0x4] sm:$0xf] (%p4266_p3)  ;;  %v3381_v33 = vld [vmem:[%s4359_s7 + $0x10] sm:$0xf] (%p4266_p3)  ;;  %v3382_v34 = vld [vmem:[%s4359_s7 + $0x1c] sm:$0xf] (%p4266_p3) }
  0x2d   : > { %365 = vst [vmem:[%s4364_s8] sm:$0xf] (%p4266_p3), %v3380_v32  ;;  %367 = vst [vmem:[%s4364_s8 + $0x4] sm:$0xf] (%p4266_p3), %v3381_v33  ;;  %v3383_v35 = vld [vmem:[%s4359_s7 + $0x28] sm:$0xf] (%p4266_p3) }
  0x2e   : > { %369 = vst [vmem:[%s4364_s8 + $0x8] sm:$0xf] (%p4266_p3), %v3382_v34  ;;  %v3384_v36 = vld [vmem:[%s4359_s7 + $0x34] sm:$0xf] (%p4266_p3)  ;;  %v3385_v37 = vld [vmem:[%s4359_s7 + $0x40] sm:$0xf] (%p4266_p3) }
  0x2f   : > { %371 = vst [vmem:[%s4364_s8 + $0xc] sm:$0xf] %v3383_v35  ;;  %373 = vst [vmem:[%s4364_s8 + $0x10] sm:$0xf] %v3384_v36  ;;  %v3386_v38 = vld [vmem:[%s4359_s7 + $0x4c] sm:$0xf] }
  0x30   : > { %375 = vst [vmem:[%s4364_s8 + $0x14] sm:$0xf] %v3385_v37  ;;  %v3387_v39 = vld [vmem:[%s4359_s7 + $0x58] sm:$0xf]  ;;  %v3388_v40 = vld [vmem:[%s4359_s7 + $0x64] sm:$0xf] }
  0x31   : > { %377 = vst [vmem:[%s4364_s8 + $0x18] sm:$0xf] %v3386_v38  ;;  %379 = vst [vmem:[%s4364_s8 + $0x1c] sm:$0xf] %v3387_v39  ;;  %v3389_v41 = vld [vmem:[%s4359_s7 + $0x70] sm:$0xf] }
  0x32   : > { %381 = vst [vmem:[%s4364_s8 + $0x20] sm:$0xf] %v3388_v40  ;;  %v3390_v42 = vld [vmem:[%s4359_s7 + $0x7c] sm:$0xf]  ;;  %v3391_v43 = vld [vmem:[%s4359_s7 + $0x88] sm:$0xf] }
  0x33   : > { %383 = vst [vmem:[%s4364_s8 + $0x24] sm:$0xf] %v3389_v41  ;;  %385 = vst [vmem:[%s4364_s8 + $0x28] sm:$0xf] %v3390_v42  ;;  %v3392_v44 = vld [vmem:[%s4359_s7 + $0x94] sm:$0xf] }
  0x34   : > { %387 = vst [vmem:[%s4364_s8 + $0x2c] sm:$0xf] %v3391_v43  ;;  %v3393_v45 = vld [vmem:[%s4359_s7 + $0xa0] sm:$0xf]  ;;  %v3394_v46 = vld [vmem:[%s4359_s7 + $0xac] sm:$0xf] }
  0x35   : > { %389 = vst [vmem:[%s4364_s8 + $0x30] sm:$0xf] %v3392_v44  ;;  %391 = vst [vmem:[%s4364_s8 + $0x34] sm:$0xf] %v3393_v45  ;;  %v3395_v47 = vld [vmem:[%s4359_s7 + $0xb8] sm:$0xf] }
  0x36   : > { %393 = vst [vmem:[%s4364_s8 + $0x38] sm:$0xf] %v3394_v46  ;;  %v3396_v48 = vld [vmem:[%s4359_s7 + $0xc4] sm:$0xf]  ;;  %v3397_v49 = vld [vmem:[%s4359_s7 + $0xd0] sm:$0xf] }
  0x37   : > { %395 = vst [vmem:[%s4364_s8 + $0x3c] sm:$0xf] %v3395_v47  ;;  %397 = vst [vmem:[%s4364_s8 + $0x40] sm:$0xf] %v3396_v48  ;;  %v3398_v50 = vld [vmem:[%s4359_s7 + $0xdc] sm:$0xf] }
  0x38   : > { %399 = vst [vmem:[%s4364_s8 + $0x44] sm:$0xf] %v3397_v49  ;;  %v3399_v51 = vld [vmem:[%s4359_s7 + $0xe8] sm:$0xf]  ;;  %v3400_v52 = vld [vmem:[%s4359_s7 + $0xf4] sm:$0xf] }
  0x39   : > { %401 = vst [vmem:[%s4364_s8 + $0x48] sm:$0xf] %v3398_v50  ;;  %403 = vst [vmem:[%s4364_s8 + $0x4c] sm:$0xf] %v3399_v51  ;;  %v3401_v53 = vld [vmem:[%s4359_s7 + $0x100] sm:$0xf] }
  0x3a   : > { %405 = vst [vmem:[%s4364_s8 + $0x50] sm:$0xf] %v3400_v52  ;;  %v3402_v54 = vld [vmem:[%s4359_s7 + $0x10c] sm:$0xf]  ;;  %v3403_v55 = vld [vmem:[%s4359_s7 + $0x118] sm:$0xf] }
  0x3b   : > { %407 = vst [vmem:[%s4364_s8 + $0x54] sm:$0xf] %v3401_v53  ;;  %409 = vst [vmem:[%s4364_s8 + $0x58] sm:$0xf] %v3402_v54  ;;  %v3404_v56 = vld [vmem:[%s4359_s7 + $0x124] sm:$0xf] }
  0x3c   : > { %411 = vst [vmem:[%s4364_s8 + $0x5c] sm:$0xf] %v3403_v55  ;;  %v3405_v57 = vld [vmem:[%s4359_s7 + $0x130] sm:$0xf]  ;;  %v3406_v58 = vld [vmem:[%s4359_s7 + $0x13c] sm:$0xf] }
  0x3d   : > { %413 = vst [vmem:[%s4364_s8 + $0x60] sm:$0xf] %v3404_v56  ;;  %415 = vst [vmem:[%s4364_s8 + $0x64] sm:$0xf] %v3405_v57  ;;  %v3407_v59 = vld [vmem:[%s4359_s7 + $0x148] sm:$0xf] }
  0x3e   : > { %417 = vst [vmem:[%s4364_s8 + $0x68] sm:$0xf] %v3406_v58  ;;  %v3408_v60 = vld [vmem:[%s4359_s7 + $0x154] sm:$0xf]  ;;  %v3409_v61 = vld [vmem:[%s4359_s7 + $0x160] sm:$0xf] }
  0x3f   : > { %419 = vst [vmem:[%s4364_s8 + $0x6c] sm:$0xf] %v3407_v59  ;;  %421 = vst [vmem:[%s4364_s8 + $0x70] sm:$0xf] %v3408_v60  ;;  %v3410_v62 = vld [vmem:[%s4359_s7 + $0x16c] sm:$0xf] }
  0x40   : > { %423 = vst [vmem:[%s4364_s8 + $0x74] sm:$0xf] %v3409_v61  ;;  %v3411_v63 = vld [vmem:[%s4359_s7 + $0x178] sm:$0xf]  ;;  %425 = vst [vmem:[%s4364_s8 + $0x78] sm:$0xf] %v3410_v62 }
  0x41   : > { %427 = vst [vmem:[%s4364_s8 + $0x7c] sm:$0xf] %v3411_v63 }
  0x42 PF: > { %514 = sbr.rel (!%p4266_p3) target bundleno = 92 (0x5c), region = 102  ;;  %s516_s9 = sand.u32 (%p4266_p3), 1, %s4198_s13  }
  0x43   : > { %s3413_s10 = smul.u32 (%p4266_p3), 384, %s4206_s15  ;;  %s3412_s11 = sshll.u32 (%p4266_p3), %s516_s9, 7 }
  0x44   : > { %s4439_s18 = scalar_lea.vmem (%p4266_p3), [#allocation7], %s3412_s11 }
  0x45   : > { %s4434_s22 = scalar_lea.vmem (%p4266_p3), %s5746_s2, %s3413_s10 }
  0x46   : > { %v3414_v0 = vld [vmem:[%s4434_s22 + $0x8] sm:$0xf] (%p4266_p3)  ;;  %v3415_v1 = vld [vmem:[%s4434_s22 + $0x14] sm:$0xf] (%p4266_p3)  ;;  %v3416_v2 = vld [vmem:[%s4434_s22 + $0x20] sm:$0xf] (%p4266_p3) }
  0x47   : > { %542 = vst [vmem:[%s4439_s18] sm:$0xf] (%p4266_p3), %v3414_v0  ;;  %544 = vst [vmem:[%s4439_s18 + $0x4] sm:$0xf] (%p4266_p3), %v3415_v1  ;;  %v3417_v3 = vld [vmem:[%s4434_s22 + $0x2c] sm:$0xf] (%p4266_p3) }
  0x48   : > { %546 = vst [vmem:[%s4439_s18 + $0x8] sm:$0xf] (%p4266_p3), %v3416_v2  ;;  %v3418_v4 = vld [vmem:[%s4434_s22 + $0x38] sm:$0xf] (%p4266_p3)  ;;  %v3419_v5 = vld [vmem:[%s4434_s22 + $0x44] sm:$0xf] (%p4266_p3) }
  0x49   : > { %548 = vst [vmem:[%s4439_s18 + $0xc] sm:$0xf] %v3417_v3  ;;  %550 = vst [vmem:[%s4439_s18 + $0x10] sm:$0xf] %v3418_v4  ;;  %v3420_v6 = vld [vmem:[%s4434_s22 + $0x50] sm:$0xf] }
  0x4a   : > { %552 = vst [vmem:[%s4439_s18 + $0x14] sm:$0xf] %v3419_v5  ;;  %v3421_v7 = vld [vmem:[%s4434_s22 + $0x5c] sm:$0xf]  ;;  %v3422_v8 = vld [vmem:[%s4434_s22 + $0x68] sm:$0xf] }
  0x4b   : > { %554 = vst [vmem:[%s4439_s18 + $0x18] sm:$0xf] %v3420_v6  ;;  %556 = vst [vmem:[%s4439_s18 + $0x1c] sm:$0xf] %v3421_v7  ;;  %v3423_v9 = vld [vmem:[%s4434_s22 + $0x74] sm:$0xf] }
  0x4c   : > { %558 = vst [vmem:[%s4439_s18 + $0x20] sm:$0xf] %v3422_v8  ;;  %v3424_v10 = vld [vmem:[%s4434_s22 + $0x80] sm:$0xf]  ;;  %v3425_v11 = vld [vmem:[%s4434_s22 + $0x8c] sm:$0xf] }
  0x4d   : > { %560 = vst [vmem:[%s4439_s18 + $0x24] sm:$0xf] %v3423_v9  ;;  %562 = vst [vmem:[%s4439_s18 + $0x28] sm:$0xf] %v3424_v10  ;;  %v3426_v12 = vld [vmem:[%s4434_s22 + $0x98] sm:$0xf] }
  0x4e   : > { %564 = vst [vmem:[%s4439_s18 + $0x2c] sm:$0xf] %v3425_v11  ;;  %v3427_v13 = vld [vmem:[%s4434_s22 + $0xa4] sm:$0xf]  ;;  %v3428_v14 = vld [vmem:[%s4434_s22 + $0xb0] sm:$0xf] }
  0x4f   : > { %566 = vst [vmem:[%s4439_s18 + $0x30] sm:$0xf] %v3426_v12  ;;  %568 = vst [vmem:[%s4439_s18 + $0x34] sm:$0xf] %v3427_v13  ;;  %v3429_v15 = vld [vmem:[%s4434_s22 + $0xbc] sm:$0xf] }
  0x50   : > { %570 = vst [vmem:[%s4439_s18 + $0x38] sm:$0xf] %v3428_v14  ;;  %v3430_v16 = vld [vmem:[%s4434_s22 + $0xc8] sm:$0xf]  ;;  %v3431_v17 = vld [vmem:[%s4434_s22 + $0xd4] sm:$0xf] }
  0x51   : > { %572 = vst [vmem:[%s4439_s18 + $0x3c] sm:$0xf] %v3429_v15  ;;  %574 = vst [vmem:[%s4439_s18 + $0x40] sm:$0xf] %v3430_v16  ;;  %v3432_v18 = vld [vmem:[%s4434_s22 + $0xe0] sm:$0xf] }
  0x52   : > { %576 = vst [vmem:[%s4439_s18 + $0x44] sm:$0xf] %v3431_v17  ;;  %v3433_v19 = vld [vmem:[%s4434_s22 + $0xec] sm:$0xf]  ;;  %v3434_v20 = vld [vmem:[%s4434_s22 + $0xf8] sm:$0xf] }
  0x53   : > { %578 = vst [vmem:[%s4439_s18 + $0x48] sm:$0xf] %v3432_v18  ;;  %580 = vst [vmem:[%s4439_s18 + $0x4c] sm:$0xf] %v3433_v19  ;;  %v3435_v21 = vld [vmem:[%s4434_s22 + $0x104] sm:$0xf] }
  0x54   : > { %582 = vst [vmem:[%s4439_s18 + $0x50] sm:$0xf] %v3434_v20  ;;  %v3436_v22 = vld [vmem:[%s4434_s22 + $0x110] sm:$0xf]  ;;  %v3437_v23 = vld [vmem:[%s4434_s22 + $0x11c] sm:$0xf] }
  0x55   : > { %584 = vst [vmem:[%s4439_s18 + $0x54] sm:$0xf] %v3435_v21  ;;  %586 = vst [vmem:[%s4439_s18 + $0x58] sm:$0xf] %v3436_v22  ;;  %v3438_v24 = vld [vmem:[%s4434_s22 + $0x128] sm:$0xf] }
  0x56   : > { %588 = vst [vmem:[%s4439_s18 + $0x5c] sm:$0xf] %v3437_v23  ;;  %v3439_v25 = vld [vmem:[%s4434_s22 + $0x134] sm:$0xf]  ;;  %v3440_v26 = vld [vmem:[%s4434_s22 + $0x140] sm:$0xf] }
  0x57   : > { %590 = vst [vmem:[%s4439_s18 + $0x60] sm:$0xf] %v3438_v24  ;;  %592 = vst [vmem:[%s4439_s18 + $0x64] sm:$0xf] %v3439_v25  ;;  %v3441_v27 = vld [vmem:[%s4434_s22 + $0x14c] sm:$0xf] }
  0x58   : > { %594 = vst [vmem:[%s4439_s18 + $0x68] sm:$0xf] %v3440_v26  ;;  %v3442_v28 = vld [vmem:[%s4434_s22 + $0x158] sm:$0xf]  ;;  %v3443_v29 = vld [vmem:[%s4434_s22 + $0x164] sm:$0xf] }
  0x59   : > { %596 = vst [vmem:[%s4439_s18 + $0x6c] sm:$0xf] %v3441_v27  ;;  %598 = vst [vmem:[%s4439_s18 + $0x70] sm:$0xf] %v3442_v28  ;;  %v3444_v30 = vld [vmem:[%s4434_s22 + $0x170] sm:$0xf] }
  0x5a   : > { %600 = vst [vmem:[%s4439_s18 + $0x74] sm:$0xf] %v3443_v29  ;;  %v3445_v31 = vld [vmem:[%s4434_s22 + $0x17c] sm:$0xf]  ;;  %602 = vst [vmem:[%s4439_s18 + $0x78] sm:$0xf] %v3444_v30 }
  0x5b   : > { %604 = vst [vmem:[%s4439_s18 + $0x7c] sm:$0xf] %v3445_v31 }
  0x5c PF: > { %p3446_p6 = scmp.ge.s32.totalorder %s4210_s16, 1  ;;  %p690_p7 = scmp.lt.s32.totalorder %s4210_s16, 3 }
  0x5e   : > { %p691_p8 = pnand %p3446_p6, %p690_p7 }
  0x60   : > { %694 = sbr.rel (%p691_p8) target bundleno = 1106 (0x452), region = 143 }
  0x67   : > { %s697_s23 = sand.u32 1, %s4194_s12   ;;  %vm764_vm0 = vcmask 7168   ;;  %v4212_v0 = vmov -inf   ;;  %v4213_v18 = vmov 0   ;;  %v4214_v26 = vmov 0.0   ;;  %p750_p9 = scmp.lt.s32.totalorder %s4202_s14, 1 }
  0x68   : > { %s4505_s24 = sshll.u32 %s697_s23, 7  ;;  %765 = vst.msk [vmem:[#allocation2] sm:$0xff] %vm764_vm0, %v4212_v0  ;;  %766 = vst.msk [vmem:[#allocation2 + $0x8] sm:$0xff] %vm764_vm0, %v4212_v0  ;;  %3866 = vset.pattern.permute.xlu0 %v4213_v18  ;;  %3867 = vset.pattern.permute.xlu1 %v4213_v18 }
  0x69   : > { %s4508_s25 = scalar_lea.vmem [#allocation6], %s4505_s24  ;;  %s4518_s12 = scalar_lea.vmem [#allocation5], %s4505_s24  ;;  %767 = vst.msk [vmem:[#allocation2 + $0x10] sm:$0xff] %vm764_vm0, %v4212_v0  ;;  %768 = vst.msk [vmem:[#allocation2 + $0x18] sm:$0xff] %vm764_vm0, %v4212_v0 }
  0x6a   : > { %v3868_v32 = vld [vmem:[%s4508_s25 + $0x40] sm:$0xff]   ;;  %v3870_v34 = vld [vmem:[%s4508_s25 + $0x48] sm:$0xff]   ;;  %v3872_v36 = vld [vmem:[%s4508_s25 + $0x50] sm:$0xff]   ;;  %769 = vst.msk [vmem:[#allocation2 + $0x20] sm:$0xff] %vm764_vm0, %v4212_v0  ;;  %s4802_s26 = scalar_lea.vmem [#allocation7], %s4505_s24  ;;  %s6016_s14 = smov (!%p750_p9, %s4202_s14), 1 }
  0x6b   : > { %v3869_v33 = vld [vmem:[%s4508_s25] sm:$0xff]   ;;  %3662 = vmatprep.subr.bf16.mxu0 %v3868_v32  ;;  %v3871_v35 = vld [vmem:[%s4508_s25 + $0x8] sm:$0xff]   ;;  %v3873_v37 = vld [vmem:[%s4508_s25 + $0x10] sm:$0xff]   ;;  %770 = vst.msk [vmem:[#allocation2 + $0x28] sm:$0xff] %vm764_vm0, %v4212_v0  ;;  %s3534_s27 = sshll.u32 %s6016_s14, 7 }
  0x6c   : > { %3663 = vmatpush3.bf16.xpose.msra.mxu0 %v3869_v33  ;;  %v3874_v38 = vld [vmem:[%s4508_s25 + $0x58] sm:$0xff]   ;;  %v3884_v39 = vld [vmem:[%s4518_s12] sm:$0xff]   ;;  %v3878_v43 = vld [vmem:[%s4508_s25 + $0x68] sm:$0xff]   ;;  %771 = vst.msk [vmem:[#allocation2 + $0x30] sm:$0xff] %vm764_vm0, %v4212_v0  ;;  %s5680_s30 = scalar_lea.vmem %s5747_s3, %s3534_s27 }
  0x6d   : > { %3664 = vmatprep.subr.bf16.mxu0 %v3870_v34  ;;  %3678 = vmatprep.mubr.bf16.mxu0 %v3884_v39  ;;  %v3875_v40 = vld [vmem:[%s4508_s25 + $0x18] sm:$0xff]   ;;  %v3876_v41 = vld [vmem:[%s4508_s25 + $0x60] sm:$0xff]   ;;  %v3879_v44 = vld [vmem:[%s4508_s25 + $0x28] sm:$0xff]   ;;  %772 = vst.msk [vmem:[#allocation2 + $0x38] sm:$0xff] %vm764_vm0, %v4212_v0 }
  0x6e   : > { %v3877_v42 = vld [vmem:[%s4508_s25 + $0x20] sm:$0xff]   ;;  %v3880_v45 = vld [vmem:[%s4508_s25 + $0x70] sm:$0xff]   ;;  %v3882_v47 = vld [vmem:[%s4508_s25 + $0x78] sm:$0xff]   ;;  %773 = vst.msk [vmem:[#allocation2 + $0x40] sm:$0xff] %vm764_vm0, %v4212_v0 }
  0x6f   : > { %v3881_v46 = vld [vmem:[%s4508_s25 + $0x30] sm:$0xff]   ;;  %v3883_v48 = vld [vmem:[%s4508_s25 + $0x38] sm:$0xff]   ;;  %v3885_v49 = vld [vmem:[%s4518_s12 + $0x8] sm:$0xff]   ;;  %774 = vst.msk [vmem:[#allocation2 + $0x48] sm:$0xff] %vm764_vm0, %v4212_v0 }
  0x70   : > { %v3886_v50 = vld [vmem:[%s4518_s12 + $0x10] sm:$0xff]   ;;  %v3887_v51 = vld [vmem:[%s4518_s12 + $0x18] sm:$0xff]   ;;  %v3888_v52 = vld [vmem:[%s4518_s12 + $0x20] sm:$0xff]   ;;  %775 = vst.msk [vmem:[#allocation2 + $0x50] sm:$0xff] %vm764_vm0, %v4212_v0 }
  0x71   : > { %v3889_v53 = vld [vmem:[%s4518_s12 + $0x28] sm:$0xff]   ;;  %v3890_v54 = vld [vmem:[%s4518_s12 + $0x30] sm:$0xff]   ;;  %v3891_v55 = vld [vmem:[%s4518_s12 + $0x38] sm:$0xff]   ;;  %776 = vst.msk [vmem:[#allocation2 + $0x58] sm:$0xff] %vm764_vm0, %v4212_v0 }
  0x72   : > { %v3892_v56 = vld [vmem:[%s4518_s12 + $0x40] sm:$0xff]   ;;  %v3893_v57 = vld [vmem:[%s4518_s12 + $0x48] sm:$0xff]   ;;  %v3894_v58 = vld [vmem:[%s4518_s12 + $0x50] sm:$0xff]   ;;  %777 = vst.msk [vmem:[#allocation2 + $0x60] sm:$0xff] %vm764_vm0, %v4212_v0 }
  0x73   : > { %v3895_v59 = vld [vmem:[%s4518_s12 + $0x58] sm:$0xff]   ;;  %v3896_v60 = vld [vmem:[%s4518_s12 + $0x60] sm:$0xff]   ;;  %v3897_v61 = vld [vmem:[%s4518_s12 + $0x68] sm:$0xff]   ;;  %778 = vst.msk [vmem:[#allocation2 + $0x68] sm:$0xff] %vm764_vm0, %v4212_v0 }
  0x74   : > { %3665 = vmatpush3.bf16.xpose.msra.mxu0 %v3871_v35  ;;  %v3898_v62 = vld [vmem:[%s4518_s12 + $0x70] sm:$0xff]   ;;  %v3899_v63 = vld [vmem:[%s4518_s12 + $0x78] sm:$0xff]   ;;  %779 = vst.msk [vmem:[#allocation2 + $0x70] sm:$0xff] %vm764_vm0, %v4212_v0  ;;  %780 = vst.msk [vmem:[#allocation2 + $0x78] sm:$0xff] %vm764_vm0, %v4212_v0 }
  0x75   : > { %3666 = vmatprep.subr.bf16.mxu0 %v3872_v36  ;;  %781 = vst.msk [vmem:[#allocation2 + $0x80] sm:$0xff] %vm764_vm0, %v4212_v0  ;;  %782 = vst.msk [vmem:[#allocation2 + $0x88] sm:$0xff] %vm764_vm0, %v4212_v0 }
  0x76   : > { %783 = vst.msk [vmem:[#allocation2 + $0x90] sm:$0xff] %vm764_vm0, %v4212_v0  ;;  %784 = vst.msk [vmem:[#allocation2 + $0x98] sm:$0xff] %vm764_vm0, %v4212_v0 }
  0x77   : > { %785 = vst.msk [vmem:[#allocation2 + $0xa0] sm:$0xff] %vm764_vm0, %v4212_v0  ;;  %786 = vst.msk [vmem:[#allocation2 + $0xa8] sm:$0xff] %vm764_vm0, %v4212_v0 }
  0x78   : > { %787 = vst.msk [vmem:[#allocation2 + $0xb0] sm:$0xff] %vm764_vm0, %v4212_v0  ;;  %788 = vst.msk [vmem:[#allocation2 + $0xb8] sm:$0xff] %vm764_vm0, %v4212_v0 }
  0x79   : > { %789 = vst.msk [vmem:[#allocation2 + $0xc0] sm:$0xff] %vm764_vm0, %v4212_v0  ;;  %790 = vst.msk [vmem:[#allocation2 + $0xc8] sm:$0xff] %vm764_vm0, %v4212_v0 }
  0x7a   : > { %791 = vst.msk [vmem:[#allocation2 + $0xd0] sm:$0xff] %vm764_vm0, %v4212_v0  ;;  %792 = vst.msk [vmem:[#allocation2 + $0xd8] sm:$0xff] %vm764_vm0, %v4212_v0 }
  0x7b   : > { %793 = vst.msk [vmem:[#allocation2 + $0xe0] sm:$0xff] %vm764_vm0, %v4212_v0  ;;  %794 = vst.msk [vmem:[#allocation2 + $0xe8] sm:$0xff] %vm764_vm0, %v4212_v0 }
  0x7c   : > { %3667 = vmatpush3.bf16.xpose.msra.mxu0 %v3873_v37  ;;  %795 = vst.msk [vmem:[#allocation2 + $0xf0] sm:$0xff] %vm764_vm0, %v4212_v0  ;;  %796 = vst.msk [vmem:[#allocation2 + $0xf8] sm:$0xff] %vm764_vm0, %v4212_v0 }
  0x7d   : > { %3668 = vmatprep.subr.bf16.mxu0 %v3874_v38  ;;  %798 = vst.msk [vmem:[#allocation3 + $0x8] sm:$0xff] %vm764_vm0, %v4214_v26  ;;  %797 = vst.msk [vmem:[#allocation3] sm:$0xff] %vm764_vm0, %v4214_v26 }
  0x7e   : > { %799 = vst.msk [vmem:[#allocation3 + $0x10] sm:$0xff] %vm764_vm0, %v4214_v26  ;;  %800 = vst.msk [vmem:[#allocation3 + $0x18] sm:$0xff] %vm764_vm0, %v4214_v26 }
  0x7f   : > { %801 = vst.msk [vmem:[#allocation3 + $0x20] sm:$0xff] %vm764_vm0, %v4214_v26  ;;  %802 = vst.msk [vmem:[#allocation3 + $0x28] sm:$0xff] %vm764_vm0, %v4214_v26 }
  0x80   : > { %803 = vst.msk [vmem:[#allocation3 + $0x30] sm:$0xff] %vm764_vm0, %v4214_v26  ;;  %804 = vst.msk [vmem:[#allocation3 + $0x38] sm:$0xff] %vm764_vm0, %v4214_v26 }
  0x81   : > { %805 = vst.msk [vmem:[#allocation3 + $0x40] sm:$0xff] %vm764_vm0, %v4214_v26  ;;  %806 = vst.msk [vmem:[#allocation3 + $0x48] sm:$0xff] %vm764_vm0, %v4214_v26 }
  0x82   : > { %807 = vst.msk [vmem:[#allocation3 + $0x50] sm:$0xff] %vm764_vm0, %v4214_v26  ;;  %808 = vst.msk [vmem:[#allocation3 + $0x58] sm:$0xff] %vm764_vm0, %v4214_v26 }
  0x83   : > { %809 = vst.msk [vmem:[#allocation3 + $0x60] sm:$0xff] %vm764_vm0, %v4214_v26  ;;  %810 = vst.msk [vmem:[#allocation3 + $0x68] sm:$0xff] %vm764_vm0, %v4214_v26 }
  0x84   : > { %3669 = vmatpush3.bf16.xpose.msra.mxu0 %v3875_v40  ;;  %811 = vst.msk [vmem:[#allocation3 + $0x70] sm:$0xff] %vm764_vm0, %v4214_v26  ;;  %812 = vst.msk [vmem:[#allocation3 + $0x78] sm:$0xff] %vm764_vm0, %v4214_v26 }
  0x85   : > { %3670 = vmatprep.subr.bf16.mxu0 %v3876_v41  ;;  %813 = vst.msk [vmem:[#allocation3 + $0x80] sm:$0xff] %vm764_vm0, %v4214_v26  ;;  %814 = vst.msk [vmem:[#allocation3 + $0x88] sm:$0xff] %vm764_vm0, %v4214_v26 }
  0x86   : > { %815 = vst.msk [vmem:[#allocation3 + $0x90] sm:$0xff] %vm764_vm0, %v4214_v26  ;;  %816 = vst.msk [vmem:[#allocation3 + $0x98] sm:$0xff] %vm764_vm0, %v4214_v26 }
  0x87   : > { %817 = vst.msk [vmem:[#allocation3 + $0xa0] sm:$0xff] %vm764_vm0, %v4214_v26  ;;  %818 = vst.msk [vmem:[#allocation3 + $0xa8] sm:$0xff] %vm764_vm0, %v4214_v26 }
  0x88   : > { %819 = vst.msk [vmem:[#allocation3 + $0xb0] sm:$0xff] %vm764_vm0, %v4214_v26  ;;  %820 = vst.msk [vmem:[#allocation3 + $0xb8] sm:$0xff] %vm764_vm0, %v4214_v26 }
  0x89   : > { %821 = vst.msk [vmem:[#allocation3 + $0xc0] sm:$0xff] %vm764_vm0, %v4214_v26  ;;  %822 = vst.msk [vmem:[#allocation3 + $0xc8] sm:$0xff] %vm764_vm0, %v4214_v26 }
  0x8a   : > { %823 = vst.msk [vmem:[#allocation3 + $0xd0] sm:$0xff] %vm764_vm0, %v4214_v26  ;;  %824 = vst.msk [vmem:[#allocation3 + $0xd8] sm:$0xff] %vm764_vm0, %v4214_v26 }
  0x8b   : > { %825 = vst.msk [vmem:[#allocation3 + $0xe0] sm:$0xff] %vm764_vm0, %v4214_v26  ;;  %826 = vst.msk [vmem:[#allocation3 + $0xe8] sm:$0xff] %vm764_vm0, %v4214_v26 }
  0x8c   : > { %3671 = vmatpush3.bf16.xpose.msra.mxu0 %v3877_v42  ;;  %827 = vst.msk [vmem:[#allocation3 + $0xf0] sm:$0xff] %vm764_vm0, %v4214_v26  ;;  %828 = vst.msk [vmem:[#allocation3 + $0xf8] sm:$0xff] %vm764_vm0, %v4214_v26 }
  0x8d   : > { %3672 = vmatprep.subr.bf16.mxu0 %v3878_v43 }
  0x94   : > { %3673 = vmatpush3.bf16.xpose.msra.mxu0 %v3879_v44 }
  0x95   : > { %3674 = vmatprep.subr.bf16.mxu0 %v3880_v45 }
  0x9c   : > { %3675 = vmatpush3.bf16.xpose.msra.mxu0 %v3881_v46 }
  0x9d   : > { %3676 = vmatprep.subr.bf16.mxu0 %v3882_v47 }
  0xa4   : > { %3677 = vmatpush3.bf16.xpose.msra.mxu0 %v3883_v48 }
  0xab   : > { %3679 = vmatmul.mubr.bf16.vlgmr.msra.gmra.mrb[0].mxu0 %v3884_v39 }
  0xac   : > { %3680 = vmatprep.mubr.bf16.mxu0 %v3885_v49 }
  0xb3   : > { %3681 = vmatmul.mubr.bf16.gmra.mrb[4].mxu0 %v3885_v49 }
  0xb4   : > { %3682 = vmatprep.mubr.bf16.mxu0 %v3886_v50 }
  0xbb   : > { %3683 = vmatmul.mubr.bf16.gmra.mrb[8].mxu0 %v3886_v50 }
  0xbc   : > { %3684 = vmatprep.mubr.bf16.mxu0 %v3887_v51 }
  0xc3   : > { %3685 = vmatmul.mubr.bf16.gmra.mrb[12].mxu0 %v3887_v51 }
  0xc4   : > { %3686 = vmatprep.mubr.bf16.mxu0 %v3888_v52 }
  0xcb   : > { %3687 = vmatmul.mubr.bf16.gmra.mrb[16].mxu0 %v3888_v52 }
  0xcc   : > { %3688 = vmatprep.mubr.bf16.mxu0 %v3889_v53 }
  0xd3   : > { %3689 = vmatmul.mubr.bf16.gmra.mrb[20].mxu0 %v3889_v53 }
  0xd4   : > { %3690 = vmatprep.mubr.bf16.mxu0 %v3890_v54 }
  0xdb   : > { %3691 = vmatmul.mubr.bf16.gmra.mrb[24].mxu0 %v3890_v54 }
  0xdc   : > { %3692 = vmatprep.mubr.bf16.mxu0 %v3891_v55 }
  0xe3   : > { %3693 = vmatmul.mubr.bf16.gmra.mrb[28].mxu0 %v3891_v55 }
  0xe4   : > { %3694 = vmatprep.mubr.bf16.mxu0 %v3892_v56 }
  0xeb   : > { %3695 = vmatmul.mubr.bf16.gmra.mrb[32].mxu0 %v3892_v56 }
  0xec   : > { %3696 = vmatprep.mubr.bf16.mxu0 %v3893_v57 }
  0xf3   : > { %3697 = vmatmul.mubr.bf16.gmra.mrb[36].mxu0 %v3893_v57 }
  0xf4   : > { %3698 = vmatprep.mubr.bf16.mxu0 %v3894_v58 }
  0xfb   : > { %3699 = vmatmul.mubr.bf16.gmra.mrb[40].mxu0 %v3894_v58 }
  0xfc   : > { %3700 = vmatprep.mubr.bf16.mxu0 %v3895_v59 }
 0x103   : > { %3701 = vmatmul.mubr.bf16.gmra.mrb[44].mxu0 %v3895_v59 }
 0x104   : > { %3702 = vmatprep.mubr.bf16.mxu0 %v3896_v60 }
 0x10b   : > { %3703 = vmatmul.mubr.bf16.gmra.mrb[48].mxu0 %v3896_v60 }
 0x10c   : > { %3704 = vmatprep.mubr.bf16.mxu0 %v3897_v61 }
 0x113   : > { %3705 = vmatmul.mubr.bf16.gmra.mrb[52].mxu0 %v3897_v61 }
 0x114   : > { %3706 = vmatprep.mubr.bf16.mxu0 %v3898_v62 }
 0x11b   : > { %3707 = vmatmul.mubr.bf16.gmra.mrb[56].mxu0 %v3898_v62 }
 0x11c   : > { %3708 = vmatprep.mubr.bf16.mxu0 %v3899_v63 }
 0x123   : > { %3709 = vmatmul.mubr.bf16.gmra.mrb[60].mxu0 %v3899_v63 }
 0x17e   : > { %v4577_v1 = vpop.f32.mrb[0].mxu0 }
 0x17f   : > { %v4579_v2 = vpop.f32.mrb[1].mxu0 }
 0x180   : > { %v4581_v3 = vpop.f32.mrb[2].mxu0  ;;  %v1342_v4 = vmax.f32 %v4577_v1, %v4579_v2 }
 0x181   : > { %v4585_v5 = vpop.f32.mrb[3].mxu0 }
 0x182   : > { %1343 = vmax.xlane.f32.xlu0 %v1342_v4  ;;  %v1345_v6 = vmax.f32 %v4581_v3, %v4585_v5 }
 0x186   : > { %1346 = vmax.xlane.f32.xlu0 %v1345_v6  ;;  %v4589_v7 = vpop.f32.mrb[4].mxu0 }
 0x187   : > { %v4591_v8 = vpop.f32.mrb[5].mxu0 }
 0x188   : > { %v4593_v9 = vpop.f32.mrb[6].mxu0  ;;  %v1348_v10 = vmax.f32 %v4589_v7, %v4591_v8 }
 0x189   : > { %v4597_v11 = vpop.f32.mrb[7].mxu0 }
 0x18a   : > { %1349 = vmax.xlane.f32.xlu1 %v1348_v10  ;;  %v1351_v12 = vmax.f32 %v4593_v9, %v4597_v11 }
 0x18e   : > { %1352 = vmax.xlane.f32.xlu1 %v1351_v12  ;;  %v4601_v13 = vpop.f32.mrb[8].mxu0 }
 0x18f   : > { %v4603_v14 = vpop.f32.mrb[9].mxu0 }
 0x190   : > { %v4605_v15 = vpop.f32.mrb[10].mxu0  ;;  %v1354_v16 = vmax.f32 %v4601_v13, %v4603_v14 }
 0x191   : > { %5822 = vst [vmem:[#allocation8_spill] sm:$0xff] %v4605_v15  ;;  %v4609_v17 = vpop.f32.mrb[11].mxu0 }
 0x192   : > { %5823 = vst [vmem:[#allocation9_spill] sm:$0xff] %v4609_v17  ;;  %1355 = vmax.xlane.f32.xlu0 %v1354_v16  ;;  %v1357_v19 = vmax.f32 %v4605_v15, %v4609_v17 }
 0x194   : > { %1358 = vmax.xlane.f32.xlu1 %v1357_v19 }
 0x196   : > { %v4613_v20 = vpop.f32.mrb[12].mxu0 }
 0x197   : > { %5824 = vst [vmem:[#allocation10_spill] sm:$0xff] %v4613_v20  ;;  %v4615_v21 = vpop.f32.mrb[13].mxu0 }
 0x198   : > { %5825 = vst [vmem:[#allocation11_spill] sm:$0xff] %v4615_v21  ;;  %v4617_v22 = vpop.f32.mrb[14].mxu0  ;;  %v1360_v23 = vmax.f32 %v4613_v20, %v4615_v21  ;;  %v5062_v21 = vld [vmem:[#allocation2 + $0xc8] sm:$0xff]  ;;  %v5076_v20 = vld [vmem:[#allocation2 + $0xd0] sm:$0xff] }
 0x199   : > { %5826 = vst [vmem:[#allocation12_spill] sm:$0xff] %v4617_v22  ;;  %v4621_v24 = vpop.f32.mrb[15].mxu0  ;;  %5881 = vst [vmem:[#allocation67_spill] sm:$0xff] %v5062_v21 }
 0x19a   : > { %5827 = vst [vmem:[#allocation13_spill] sm:$0xff] %v4621_v24  ;;  %1361 = vmax.xlane.f32.xlu0 %v1360_v23  ;;  %v1363_v25 = vmax.f32 %v4617_v22, %v4621_v24  ;;  %5884 = vst [vmem:[#allocation70_spill] sm:$0xff] %v5076_v20 }
 0x19c   : > { %1364 = vmax.xlane.f32.xlu1 %v1363_v25 }
 0x19e   : > { %v4657_v27 = vpop.f32.mrb[16].mxu0 }
 0x19f   : > { %5828 = vst [vmem:[#allocation14_spill] sm:$0xff] %v4657_v27  ;;  %v4659_v28 = vpop.f32.mrb[17].mxu0 }
 0x1a0   : > { %5829 = vst [vmem:[#allocation15_spill] sm:$0xff] %v4659_v28  ;;  %v4661_v29 = vpop.f32.mrb[18].mxu0  ;;  %v1366_v30 = vmax.f32 %v4657_v27, %v4659_v28  ;;  %v5042_v28 = vld [vmem:[#allocation2 + $0xb8] sm:$0xff] }
 0x1a1   : > { %5830 = vst [vmem:[#allocation16_spill] sm:$0xff] %v4661_v29  ;;  %v4665_v31 = vpop.f32.mrb[19].mxu0  ;;  %5877 = vst [vmem:[#allocation63_spill] sm:$0xff] %v5042_v28 }
 0x1a2   : > { %5831 = vst [vmem:[#allocation17_spill] sm:$0xff] %v4665_v31  ;;  %1367 = vmax.xlane.f32.xlu0 %v1366_v30  ;;  %v1369_v32 = vmax.f32 %v4661_v29, %v4665_v31 }
 0x1a4   : > { %1370 = vmax.xlane.f32.xlu1 %v1369_v32 }
 0x1a6   : > { %v4669_v33 = vpop.f32.mrb[20].mxu0 }
 0x1a7   : > { %5832 = vst [vmem:[#allocation18_spill] sm:$0xff] %v4669_v33  ;;  %v4671_v34 = vpop.f32.mrb[21].mxu0 }
 0x1a8   : > { %5833 = vst [vmem:[#allocation19_spill] sm:$0xff] %v4671_v34  ;;  %v4673_v35 = vpop.f32.mrb[22].mxu0  ;;  %v1372_v36 = vmax.f32 %v4669_v33, %v4671_v34  ;;  %v5022_v34 = vld [vmem:[#allocation2 + $0xa8] sm:$0xff] }
 0x1a9   : > { %5834 = vst [vmem:[#allocation20_spill] sm:$0xff] %v4673_v35  ;;  %v4677_v37 = vpop.f32.mrb[23].mxu0 }
 0x1aa   : > { %5835 = vst [vmem:[#allocation21_spill] sm:$0xff] %v4677_v37  ;;  %1373 = vmax.xlane.f32.xlu0 %v1372_v36  ;;  %v1375_v38 = vmax.f32 %v4673_v35, %v4677_v37 }
 0x1ac   : > { %1376 = vmax.xlane.f32.xlu1 %v1375_v38 }
 0x1ae   : > { %v4681_v39 = vpop.f32.mrb[24].mxu0 }
 0x1af   : > { %5836 = vst [vmem:[#allocation22_spill] sm:$0xff] %v4681_v39  ;;  %v4683_v40 = vpop.f32.mrb[25].mxu0 }
 0x1b0   : > { %5837 = vst [vmem:[#allocation23_spill] sm:$0xff] %v4683_v40  ;;  %v4685_v41 = vpop.f32.mrb[26].mxu0  ;;  %v1378_v42 = vmax.f32 %v4681_v39, %v4683_v40  ;;  %v5002_v40 = vld [vmem:[#allocation2 + $0x98] sm:$0xff] }
 0x1b1   : > { %5838 = vst [vmem:[#allocation24_spill] sm:$0xff] %v4685_v41  ;;  %v4689_v43 = vpop.f32.mrb[27].mxu0 }
 0x1b2   : > { %5839 = vst [vmem:[#allocation25_spill] sm:$0xff] %v4689_v43  ;;  %1379 = vmax.xlane.f32.xlu0 %v1378_v42  ;;  %v1381_v44 = vmax.f32 %v4685_v41, %v4689_v43 }
 0x1b4   : > { %1382 = vmax.xlane.f32.xlu1 %v1381_v44 }
 0x1b6   : > { %v4693_v45 = vpop.f32.mrb[28].mxu0 }
 0x1b7   : > { %5840 = vst [vmem:[#allocation26_spill] sm:$0xff] %v4693_v45  ;;  %v4695_v46 = vpop.f32.mrb[29].mxu0 }
 0x1b8   : > { %5841 = vst [vmem:[#allocation27_spill] sm:$0xff] %v4695_v46  ;;  %v4697_v47 = vpop.f32.mrb[30].mxu0  ;;  %v1384_v48 = vmax.f32 %v4693_v45, %v4695_v46  ;;  %v4982_v46 = vld [vmem:[#allocation2 + $0x88] sm:$0xff] }
 0x1b9   : > { %5842 = vst [vmem:[#allocation28_spill] sm:$0xff] %v4697_v47  ;;  %v4701_v49 = vpop.f32.mrb[31].mxu0 }
 0x1ba   : > { %5843 = vst [vmem:[#allocation29_spill] sm:$0xff] %v4701_v49  ;;  %1385 = vmax.xlane.f32.xlu0 %v1384_v48  ;;  %v1387_v50 = vmax.f32 %v4697_v47, %v4701_v49 }
 0x1bc   : > { %1388 = vmax.xlane.f32.xlu1 %v1387_v50 }
 0x1be   : > { %v4705_v51 = vpop.f32.mrb[32].mxu0 }
 0x1bf   : > { %5844 = vst [vmem:[#allocation30_spill] sm:$0xff] %v4705_v51  ;;  %v4707_v52 = vpop.f32.mrb[33].mxu0 }
 0x1c0   : > { %5845 = vst [vmem:[#allocation31_spill] sm:$0xff] %v4707_v52  ;;  %v4709_v53 = vpop.f32.mrb[34].mxu0  ;;  %v1390_v54 = vmax.f32 %v4705_v51, %v4707_v52  ;;  %v4962_v52 = vld [vmem:[#allocation2 + $0x78] sm:$0xff] }
 0x1c1   : > { %5846 = vst [vmem:[#allocation32_spill] sm:$0xff] %v4709_v53  ;;  %v4713_v55 = vpop.f32.mrb[35].mxu0 }
 0x1c2   : > { %5847 = vst [vmem:[#allocation33_spill] sm:$0xff] %v4713_v55  ;;  %1391 = vmax.xlane.f32.xlu0 %v1390_v54  ;;  %v1393_v56 = vmax.f32 %v4709_v53, %v4713_v55 }
 0x1c4   : > { %1394 = vmax.xlane.f32.xlu1 %v1393_v56 }
 0x1c6   : > { %v4717_v57 = vpop.f32.mrb[36].mxu0 }
 0x1c7   : > { %5848 = vst [vmem:[#allocation34_spill] sm:$0xff] %v4717_v57  ;;  %v4719_v58 = vpop.f32.mrb[37].mxu0 }
 0x1c8   : > { %5849 = vst [vmem:[#allocation35_spill] sm:$0xff] %v4719_v58  ;;  %v4721_v59 = vpop.f32.mrb[38].mxu0  ;;  %v1396_v60 = vmax.f32 %v4717_v57, %v4719_v58  ;;  %v4942_v58 = vld [vmem:[#allocation2 + $0x68] sm:$0xff] }
 0x1c9   : > { %5850 = vst [vmem:[#allocation36_spill] sm:$0xff] %v4721_v59  ;;  %v4725_v61 = vpop.f32.mrb[39].mxu0 }
 0x1ca   : > { %5851 = vst [vmem:[#allocation37_spill] sm:$0xff] %v4725_v61  ;;  %1397 = vmax.xlane.f32.xlu0 %v1396_v60  ;;  %v1399_v62 = vmax.f32 %v4721_v59, %v4725_v61 }
 0x1cc   : > { %1400 = vmax.xlane.f32.xlu1 %v1399_v62 }
 0x1ce   : > { %v4729_v63 = vpop.f32.mrb[40].mxu0 }
 0x1cf   : > { %5852 = vst [vmem:[#allocation38_spill] sm:$0xff] %v4729_v63  ;;  %v4731_v0 = vpop.f32.mrb[41].mxu0 }
 0x1d0   : > { %5853 = vst [vmem:[#allocation39_spill] sm:$0xff] %v4731_v0  ;;  %v4733_v4 = vpop.f32.mrb[42].mxu0  ;;  %v1402_v6 = vmax.f32 %v4729_v63, %v4731_v0  ;;  %v4922_v0 = vld [vmem:[#allocation2 + $0x58] sm:$0xff] }
 0x1d1   : > { %5854 = vst [vmem:[#allocation40_spill] sm:$0xff] %v4733_v4  ;;  %v4737_v10 = vpop.f32.mrb[43].mxu0 }
 0x1d2   : > { %5855 = vst [vmem:[#allocation41_spill] sm:$0xff] %v4737_v10  ;;  %1403 = vmax.xlane.f32.xlu0 %v1402_v6  ;;  %v1405_v12 = vmax.f32 %v4733_v4, %v4737_v10 }
 0x1d4   : > { %1406 = vmax.xlane.f32.xlu1 %v1405_v12 }
 0x1d6   : > { %v4741_v16 = vpop.f32.mrb[44].mxu0 }
 0x1d7   : > { %5856 = vst [vmem:[#allocation42_spill] sm:$0xff] %v4741_v16  ;;  %v4743_v18 = vpop.f32.mrb[45].mxu0 }
 0x1d8   : > { %5857 = vst [vmem:[#allocation43_spill] sm:$0xff] %v4743_v18  ;;  %v4745_v19 = vpop.f32.mrb[46].mxu0  ;;  %v1408_v23 = vmax.f32 %v4741_v16, %v4743_v18  ;;  %v4879_v18 = vld [vmem:[#allocation2 + $0x30] sm:$0xff] }
 0x1d9   : > { %5858 = vst [vmem:[#allocation44_spill] sm:$0xff] %v4745_v19  ;;  %v4749_v25 = vpop.f32.mrb[47].mxu0 }
 0x1da   : > { %5859 = vst [vmem:[#allocation45_spill] sm:$0xff] %v4749_v25  ;;  %1409 = vmax.xlane.f32.xlu0 %v1408_v23  ;;  %v1411_v26 = vmax.f32 %v4745_v19, %v4749_v25  ;;  %v3913_v25 = vld [vmem:[%s4802_s26 + $0x30] sm:$0xff]  }
 0x1dc   : > { %1412 = vmax.xlane.f32.xlu1 %v1411_v26 }
 0x1de   : > { %v4753_v30 = vpop.f32.mrb[48].mxu0 }
 0x1df   : > { %5860 = vst [vmem:[#allocation46_spill] sm:$0xff] %v4753_v30  ;;  %v4755_v32 = vpop.f32.mrb[49].mxu0 }
 0x1e0   : > { %5861 = vst [vmem:[#allocation47_spill] sm:$0xff] %v4755_v32  ;;  %v4757_v36 = vpop.f32.mrb[50].mxu0  ;;  %v1414_v38 = vmax.f32 %v4753_v30, %v4755_v32  ;;  %v4851_v32 = vld [vmem:[#allocation2 + $0x20] sm:$0xff] }
 0x1e1   : > { %5862 = vst [vmem:[#allocation48_spill] sm:$0xff] %v4757_v36  ;;  %v4761_v42 = vpop.f32.mrb[51].mxu0 }
 0x1e2   : > { %5863 = vst [vmem:[#allocation49_spill] sm:$0xff] %v4761_v42  ;;  %1415 = vmax.xlane.f32.xlu0 %v1414_v38  ;;  %v1417_v44 = vmax.f32 %v4757_v36, %v4761_v42  ;;  %v4839_v42 = vld [vmem:[#allocation2 + $0x18] sm:$0xff]  ;;  %v3911_v36 = vld [vmem:[%s4802_s26 + $0x28] sm:$0xff]  }
 0x1e4   : > { %1418 = vmax.xlane.f32.xlu1 %v1417_v44 }
 0x1e6   : > { %v4765_v48 = vpop.f32.mrb[52].mxu0 }
 0x1e7   : > { %5864 = vst [vmem:[#allocation50_spill] sm:$0xff] %v4765_v48  ;;  %v4767_v50 = vpop.f32.mrb[53].mxu0 }
 0x1e8   : > { %5865 = vst [vmem:[#allocation51_spill] sm:$0xff] %v4767_v50  ;;  %v4769_v54 = vpop.f32.mrb[54].mxu0  ;;  %v1420_v56 = vmax.f32 %v4765_v48, %v4767_v50  ;;  %v3909_v48 = vld [vmem:[%s4802_s26 + $0x20] sm:$0xff]  }
 0x1e9   : > { %5866 = vst [vmem:[#allocation52_spill] sm:$0xff] %v4769_v54  ;;  %v4773_v60 = vpop.f32.mrb[55].mxu0 }
 0x1ea   : > { %5867 = vst [vmem:[#allocation53_spill] sm:$0xff] %v4773_v60  ;;  %1421 = vmax.xlane.f32.xlu0 %v1420_v56  ;;  %v1423_v62 = vmax.f32 %v4769_v54, %v4773_v60 }
 0x1ec   : > { %1424 = vmax.xlane.f32.xlu1 %v1423_v62 }
 0x1ee   : > { %v4777_v6 = vpop.f32.mrb[56].mxu0 }
 0x1ef   : > { %5868 = vst [vmem:[#allocation54_spill] sm:$0xff] %v4777_v6  ;;  %v4779_v12 = vpop.f32.mrb[57].mxu0 }
 0x1f0   : > { %5869 = vst [vmem:[#allocation55_spill] sm:$0xff] %v4779_v12  ;;  %v4781_v23 = vpop.f32.mrb[58].mxu0  ;;  %v1426_v26 = vmax.f32 %v4777_v6, %v4779_v12  ;;  %v3907_v6 = vld [vmem:[%s4802_s26 + $0x18] sm:$0xff]  }
 0x1f1   : > { %5870 = vst [vmem:[#allocation56_spill] sm:$0xff] %v4781_v23  ;;  %v4785_v38 = vpop.f32.mrb[59].mxu0 }
 0x1f2   : > { %5871 = vst [vmem:[#allocation57_spill] sm:$0xff] %v4785_v38  ;;  %1427 = vmax.xlane.f32.xlu0 %v1426_v26  ;;  %v1429_v44 = vmax.f32 %v4781_v23, %v4785_v38  ;;  %v3900_v26 = vld [vmem:[%s4802_s26 + $0x40] sm:$0xff]   ;;  %v3903_v38 = vld [vmem:[%s4802_s26 + $0x8] sm:$0xff]  }
 0x1f3   : > { %3710 = vmatprep.subr.bf16.mxu1 %v3900_v26  ;;  %v3908_v26 = vld [vmem:[%s4802_s26 + $0x60] sm:$0xff]  }
 0x1f4   : > { %1430 = vmax.xlane.f32.xlu1 %v1429_v44  ;;  %v3901_v44 = vld [vmem:[%s4802_s26] sm:$0xff]  }
 0x1f5   : > { %3711 = vmatpush3.bf16.msra.mxu1 %v3901_v44 }
 0x1f6   : > { %v4789_v56 = vpop.f32.mrb[60].mxu0 }
 0x1f7   : > { %5872 = vst [vmem:[#allocation58_spill] sm:$0xff] %v4789_v56  ;;  %v4791_v62 = vpop.f32.mrb[61].mxu0 }
 0x1f8   : > { %5873 = vst [vmem:[#allocation59_spill] sm:$0xff] %v4791_v62  ;;  %v4793_v60 = vpop.f32.mrb[62].mxu0  ;;  %v1432_v54 = vmax.f32 %v4789_v56, %v4791_v62  ;;  %v3902_v62 = vld [vmem:[%s4802_s26 + $0x48] sm:$0xff]   ;;  %v4807_v56 = vld [vmem:[#allocation2] sm:$0xff] }
 0x1f9   : > { %5874 = vst [vmem:[#allocation60_spill] sm:$0xff] %v4793_v60  ;;  %v4797_v50 = vpop.f32.mrb[63].mxu0  ;;  %3712 = vmatprep.subr.bf16.mxu1 %v3902_v62  ;;  %v3906_v62 = vld [vmem:[%s4802_s26 + $0x58] sm:$0xff]  }
 0x1fa   : > { %5875 = vst [vmem:[#allocation61_spill] sm:$0xff] %v4797_v50  ;;  %v1435_v12 = vmax.f32 %v4793_v60, %v4797_v50  ;;  %1433 = vmax.xlane.f32.xlu0 %v1432_v54  ;;  %3713 = vmatpush3.bf16.msra.mxu1 %v3903_v38  ;;  %v3904_v54 = vld [vmem:[%s4802_s26 + $0x50] sm:$0xff]   ;;  %v4811_v50 = vld [vmem:[#allocation2 + $0x8] sm:$0xff] }
 0x1fb   : > { %v3905_v60 = vld [vmem:[%s4802_s26 + $0x10] sm:$0xff]   ;;  %3714 = vmatprep.subr.bf16.mxu1 %v3904_v54  ;;  %v3910_v54 = vld [vmem:[%s4802_s26 + $0x68] sm:$0xff]  }
 0x1fc   : > { %1436 = vmax.xlane.f32.xlu1 %v1435_v12 }
 0x1fe   : > { %3715 = vmatpush3.bf16.msra.mxu1 %v3905_v60 }
 0x1ff   : > { %3716 = vmatprep.subr.bf16.mxu1 %v3906_v62  ;;  %v4858_v62 = vld [vmem:[#allocation2 + $0x28] sm:$0xff] }
 0x202   : > { %3717 = vmatpush3.bf16.msra.mxu1 %v3907_v6 }
 0x203   : > { %3718 = vmatprep.subr.bf16.mxu1 %v3908_v26 }
 0x206   : > { %3719 = vmatpush3.bf16.msra.mxu1 %v3909_v48 }
 0x207   : > { %3720 = vmatprep.subr.bf16.mxu1 %v3910_v54 }
 0x20a   : > { %3721 = vmatpush3.bf16.msra.mxu1 %v3911_v36  ;;  %v3914_v36 = vld [vmem:[%s4802_s26 + $0x78] sm:$0xff]  }
 0x20f   : > { %v1344_v12 = vpop.xlane.xlu0 %1343 }
 0x210   : > { %v4815_v23 = vmax.f32 %v4807_v56, %v1344_v12  ;;  %v4827_v12 = vld [vmem:[#allocation2 + $0x10] sm:$0xff] }
 0x212   : > { %2752 = vst.msk [vmem:[#allocation2] sm:$0xff] %vm764_vm0, %v4815_v23  ;;  %1568 = vperm.xlu0 %3866, %v4815_v23  }
 0x213   : > { %v1347_v38 = vpop.xlane.xlu0 %1346 }
 0x214   : > { %v4824_v44 = vmax.f32 %v4811_v50, %v1347_v38 }
 0x216   : > { %2753 = vst.msk [vmem:[#allocation2 + $0x8] sm:$0xff] %vm764_vm0, %v4824_v44  ;;  %1573 = vperm.xlu1 %3867, %v4824_v44  }
 0x217   : > { %v1350_v60 = vpop.xlane.xlu1 %1349 }
 0x218   : > { %v4836_v38 = vmax.f32 %v4827_v12, %v1350_v60 }
 0x21a   : > { %2754 = vst.msk [vmem:[#allocation2 + $0x10] sm:$0xff] %vm764_vm0, %v4836_v38  ;;  %1578 = vperm.xlu1 %3867, %v4836_v38  }
 0x21b   : > { %v1353_v6 = vpop.xlane.xlu1 %1352 }
 0x21c   : > { %v4848_v60 = vmax.f32 %v4839_v42, %v1353_v6  ;;  %v3912_v6 = vld [vmem:[%s4802_s26 + $0x70] sm:$0xff]  }
 0x21d   : > { %3722 = vmatprep.subr.bf16.mxu1 %v3912_v6  ;;  %v3915_v6 = vld [vmem:[%s4802_s26 + $0x38] sm:$0xff]  }
 0x21e   : > { %2755 = vst.msk [vmem:[#allocation2 + $0x18] sm:$0xff] %vm764_vm0, %v4848_v60  ;;  %1583 = vperm.xlu1 %3867, %v4848_v60   ;;  %3723 = vmatpush3.bf16.msra.mxu1 %v3913_v25 }
 0x21f   : > { %v1356_v48 = vpop.xlane.xlu0 %1355  ;;  %3724 = vmatprep.subr.bf16.mxu1 %v3914_v36 }
 0x220   : > { %v4862_v30 = vmax.f32 %v4851_v32, %v1356_v48  ;;  %v4902_v48 = vld [vmem:[#allocation2 + $0x48] sm:$0xff] }
 0x221   : > { %v1359_v54 = vpop.xlane.xlu1 %1358 }
 0x222   : > { %2756 = vst.msk [vmem:[#allocation2 + $0x20] sm:$0xff] %vm764_vm0, %v4862_v30  ;;  %v4870_v19 = vmax.f32 %v4858_v62, %v1359_v54  ;;  %1588 = vperm.xlu1 %3867, %v4862_v30   ;;  %3725 = vmatpush3.bf16.msra.mxu1 %v3915_v6  ;;  %v4882_v54 = vld [vmem:[#allocation2 + $0x38] sm:$0xff] }
 0x224   : > { %2757 = vst.msk [vmem:[#allocation2 + $0x28] sm:$0xff] %vm764_vm0, %v4870_v19 }
 0x226   : > { %1593 = vperm.xlu1 %3867, %v4870_v19  }
 0x227   : > { %v1362_v26 = vpop.xlane.xlu0 %1361 }
 0x228   : > { %v4885_v16 = vmax.f32 %v4879_v18, %v1362_v26  ;;  %v4899_v26 = vld [vmem:[#allocation2 + $0x40] sm:$0xff] }
 0x229   : > { %v1365_v25 = vpop.xlane.xlu1 %1364 }
 0x22a   : > { %2758 = vst.msk [vmem:[#allocation2 + $0x30] sm:$0xff] %vm764_vm0, %v4885_v16  ;;  %v4892_v10 = vmax.f32 %v4882_v54, %v1365_v25  ;;  %1598 = vperm.xlu1 %3867, %v4885_v16  }
 0x22c   : > { %2759 = vst.msk [vmem:[#allocation2 + $0x38] sm:$0xff] %vm764_vm0, %v4892_v10 }
 0x22e   : > { %1603 = vperm.xlu1 %3867, %v4892_v10  }
 0x22f   : > { %v1368_v6 = vpop.xlane.xlu0 %1367 }
 0x230   : > { %v4905_v4 = vmax.f32 %v4899_v26, %v1368_v6  ;;  %v4920_v6 = vld [vmem:[#allocation2 + $0x50] sm:$0xff] }
 0x231   : > { %v1371_v25 = vpop.xlane.xlu1 %1370 }
 0x232   : > { %2760 = vst.msk [vmem:[#allocation2 + $0x40] sm:$0xff] %vm764_vm0, %v4905_v4  ;;  %v4912_v36 = vmax.f32 %v4902_v48, %v1371_v25  ;;  %1608 = vperm.xlu1 %3867, %v4905_v4  }
 0x234   : > { %2761 = vst.msk [vmem:[#allocation2 + $0x48] sm:$0xff] %vm764_vm0, %v4912_v36  ;;  %1613 = vperm.xlu0 %3866, %v4912_v36  }
 0x237   : > { %v1374_v61 = vpop.xlane.xlu0 %1373 }
 0x238   : > { %v4925_v59 = vmax.f32 %v4920_v6, %v1374_v61  ;;  %v4940_v61 = vld [vmem:[#allocation2 + $0x60] sm:$0xff] }
 0x239   : > { %v1377_v25 = vpop.xlane.xlu1 %1376 }
 0x23a   : > { %2762 = vst.msk [vmem:[#allocation2 + $0x50] sm:$0xff] %vm764_vm0, %v4925_v59  ;;  %v4932_v63 = vmax.f32 %v4922_v0, %v1377_v25  ;;  %1618 = vperm.xlu1 %3867, %v4925_v59  }
 0x23c   : > { %2763 = vst.msk [vmem:[#allocation2 + $0x58] sm:$0xff] %vm764_vm0, %v4932_v63  ;;  %1623 = vperm.xlu0 %3866, %v4932_v63  }
 0x23f   : > { %v1380_v55 = vpop.xlane.xlu0 %1379 }
 0x240   : > { %v4945_v53 = vmax.f32 %v4940_v61, %v1380_v55  ;;  %v4960_v55 = vld [vmem:[#allocation2 + $0x70] sm:$0xff] }
 0x241   : > { %v1383_v25 = vpop.xlane.xlu1 %1382 }
 0x242   : > { %2764 = vst.msk [vmem:[#allocation2 + $0x60] sm:$0xff] %vm764_vm0, %v4945_v53  ;;  %v4952_v57 = vmax.f32 %v4942_v58, %v1383_v25  ;;  %1628 = vperm.xlu1 %3867, %v4945_v53  }
 0x244   : > { %2765 = vst.msk [vmem:[#allocation2 + $0x68] sm:$0xff] %vm764_vm0, %v4952_v57  ;;  %1633 = vperm.xlu0 %3866, %v4952_v57  }
 0x247   : > { %v1386_v49 = vpop.xlane.xlu0 %1385 }
 0x248   : > { %v4965_v47 = vmax.f32 %v4960_v55, %v1386_v49  ;;  %v4980_v49 = vld [vmem:[#allocation2 + $0x80] sm:$0xff] }
 0x249   : > { %v1389_v25 = vpop.xlane.xlu1 %1388 }
 0x24a   : > { %2766 = vst.msk [vmem:[#allocation2 + $0x70] sm:$0xff] %vm764_vm0, %v4965_v47  ;;  %v4972_v51 = vmax.f32 %v4962_v52, %v1389_v25  ;;  %1638 = vperm.xlu1 %3867, %v4965_v47  }
 0x24c   : > { %2767 = vst.msk [vmem:[#allocation2 + $0x78] sm:$0xff] %vm764_vm0, %v4972_v51  ;;  %1643 = vperm.xlu0 %3866, %v4972_v51  }
 0x24f   : > { %v1392_v43 = vpop.xlane.xlu0 %1391 }
 0x250   : > { %v4985_v41 = vmax.f32 %v4980_v49, %v1392_v43  ;;  %v5000_v43 = vld [vmem:[#allocation2 + $0x90] sm:$0xff] }
 0x251   : > { %v1395_v25 = vpop.xlane.xlu1 %1394 }
 0x252   : > { %2768 = vst.msk [vmem:[#allocation2 + $0x80] sm:$0xff] %vm764_vm0, %v4985_v41  ;;  %v4992_v45 = vmax.f32 %v4982_v46, %v1395_v25  ;;  %1648 = vperm.xlu1 %3867, %v4985_v41  }
 0x254   : > { %2769 = vst.msk [vmem:[#allocation2 + $0x88] sm:$0xff] %vm764_vm0, %v4992_v45  ;;  %1653 = vperm.xlu0 %3866, %v4992_v45  }
 0x257   : > { %v1398_v37 = vpop.xlane.xlu0 %1397 }
 0x258   : > { %v5005_v35 = vmax.f32 %v5000_v43, %v1398_v37  ;;  %v5020_v37 = vld [vmem:[#allocation2 + $0xa0] sm:$0xff] }
 0x259   : > { %v1401_v25 = vpop.xlane.xlu1 %1400 }
 0x25a   : > { %2770 = vst.msk [vmem:[#allocation2 + $0x90] sm:$0xff] %vm764_vm0, %v5005_v35  ;;  %v5012_v39 = vmax.f32 %v5002_v40, %v1401_v25  ;;  %1658 = vperm.xlu1 %3867, %v5005_v35  }
 0x25c   : > { %2771 = vst.msk [vmem:[#allocation2 + $0x98] sm:$0xff] %vm764_vm0, %v5012_v39  ;;  %1663 = vperm.xlu0 %3866, %v5012_v39  }
 0x25f   : > { %v1404_v31 = vpop.xlane.xlu0 %1403 }
 0x260   : > { %v5025_v29 = vmax.f32 %v5020_v37, %v1404_v31  ;;  %v5040_v31 = vld [vmem:[#allocation2 + $0xb0] sm:$0xff] }
 0x261   : > { %v1407_v25 = vpop.xlane.xlu1 %1406  ;;  %5876 = vst [vmem:[#allocation62_spill] sm:$0xff] %v5040_v31 }
 0x262   : > { %2772 = vst.msk [vmem:[#allocation2 + $0xa0] sm:$0xff] %vm764_vm0, %v5025_v29  ;;  %v5032_v33 = vmax.f32 %v5022_v34, %v1407_v25  ;;  %1668 = vperm.xlu1 %3867, %v5025_v29  }
 0x264   : > { %2773 = vst.msk [vmem:[#allocation2 + $0xa8] sm:$0xff] %vm764_vm0, %v5032_v33  ;;  %1673 = vperm.xlu0 %3866, %v5032_v33  }
 0x267   : > { %v1410_v24 = vpop.xlane.xlu0 %1409 }
 0x268   : > { %v5045_v22 = vmax.f32 %v5040_v31, %v1410_v24  ;;  %v5060_v24 = vld [vmem:[#allocation2 + $0xc0] sm:$0xff] }
 0x269   : > { %v1413_v25 = vpop.xlane.xlu1 %1412  ;;  %5880 = vst [vmem:[#allocation66_spill] sm:$0xff] %v5060_v24 }
 0x26a   : > { %5878 = vst [vmem:[#allocation64_spill] sm:$0xff] %v5045_v22  ;;  %2774 = vst.msk [vmem:[#allocation2 + $0xb0] sm:$0xff] %vm764_vm0, %v5045_v22  ;;  %v5052_v27 = vmax.f32 %v5042_v28, %v1413_v25  ;;  %1678 = vperm.xlu1 %3867, %v5045_v22   ;;  %v5078_v28 = vld [vmem:[#allocation2 + $0xd8] sm:$0xff] }
 0x26b   : > { %5885 = vst [vmem:[#allocation71_spill] sm:$0xff] %v5078_v28 }
 0x26c   : > { %5879 = vst [vmem:[#allocation65_spill] sm:$0xff] %v5052_v27  ;;  %2775 = vst.msk [vmem:[#allocation2 + $0xb8] sm:$0xff] %vm764_vm0, %v5052_v27  ;;  %1683 = vperm.xlu0 %3866, %v5052_v27  }
 0x26f   : > { %v1416_v17 = vpop.xlane.xlu0 %1415 }
 0x270   : > { %v5065_v15 = vmax.f32 %v5060_v24, %v1416_v17 }
 0x271   : > { %v1419_v25 = vpop.xlane.xlu1 %1418 }
 0x272   : > { %5882 = vst [vmem:[#allocation68_spill] sm:$0xff] %v5065_v15  ;;  %2776 = vst.msk [vmem:[#allocation2 + $0xc0] sm:$0xff] %vm764_vm0, %v5065_v15  ;;  %v5070_v22 = vmax.f32 %v5062_v21, %v1419_v25  ;;  %1688 = vperm.xlu1 %3867, %v5065_v15   ;;  %v5092_v21 = vld [vmem:[#allocation2 + $0xe0] sm:$0xff]  ;;  %v5097_v15 = vld [vmem:[#allocation2 + $0xe8] sm:$0xff] }
 0x274   : > { %5883 = vst [vmem:[#allocation69_spill] sm:$0xff] %v5070_v22  ;;  %2777 = vst.msk [vmem:[#allocation2 + $0xc8] sm:$0xff] %vm764_vm0, %v5070_v22  ;;  %1693 = vperm.xlu0 %3866, %v5070_v22  }
 0x277   : > { %v1422_v27 = vpop.xlane.xlu0 %1421 }
 0x278   : > { %v5081_v17 = vmax.f32 %v5076_v20, %v1422_v27  ;;  %v5888_v27 = vsub.f32 %v4811_v50, %v4824_v44  ;;  %v5890_v50 = vsub.f32 %v4827_v12, %v4836_v38  ;;  %v5125_v12 = vld [vmem:[#allocation2 + $0xf8] sm:$0xff] }
 0x279   : > { %v1425_v24 = vpop.xlane.xlu1 %1424 }
 0x27a   : > { %5886 = vst [vmem:[#allocation72_spill] sm:$0xff] %v5081_v17  ;;  %2778 = vst.msk [vmem:[#allocation2 + $0xd0] sm:$0xff] %vm764_vm0, %v5081_v17  ;;  %v5086_v25 = vmax.f32 %v5078_v28, %v1425_v24  ;;  %1698 = vperm.xlu1 %3867, %v5081_v17   ;;  %v1504_v20 = vmul.f32 1.442695, %v5888_v27  ;;  %v5889_v24 = vsub.f32 %v4807_v56, %v4815_v23  ;;  %v1506_v44 = vmul.f32 1.442695, %v5890_v50 }
 0x27b   : > { %v5120_v56 = vld [vmem:[#allocation2 + $0xf0] sm:$0xff] }
 0x27c   : > { %5887 = vst [vmem:[#allocation73_spill] sm:$0xff] %v5086_v25  ;;  %2779 = vst.msk [vmem:[#allocation2 + $0xd8] sm:$0xff] %vm764_vm0, %v5086_v25  ;;  %1703 = vperm.xlu0 %3866, %v5086_v25   ;;  %v1502_v28 = vmul.f32 1.442695, %v5889_v24  ;;  %3916 = vpow2.f32 %v1504_v20  ;;  %v5892_v20 = vsub.f32 %v4851_v32, %v4862_v30  ;;  %v5895_v32 = vsub.f32 %v4882_v54, %v4892_v10 }
 0x27e   : > { %3918 = vpow2.f32 %v1502_v28  ;;  %v5893_v28 = vsub.f32 %v4858_v62, %v4870_v19  ;;  %v5896_v19 = vsub.f32 %v4899_v26, %v4905_v4  ;;  %v5898_v4 = vsub.f32 %v4920_v6, %v4925_v59 }
 0x27f   : > { %v1428_v22 = vpop.xlane.xlu0 %1427  ;;  %3920 = vpow2.f32 %v1506_v44  ;;  %v1516_v44 = vmul.f32 1.442695, %v5895_v32  ;;  %v5901_v59 = vsub.f32 %v4942_v58, %v4952_v57  ;;  %v5904_v32 = vsub.f32 %v4980_v49, %v4985_v41 }
 0x280   : > { %v5100_v31 = vmax.f32 %v5092_v21, %v1428_v22  ;;  %v5891_v22 = vsub.f32 %v4839_v42, %v4848_v60  ;;  %v1512_v24 = vmul.f32 1.442695, %v5893_v28  ;;  %v5894_v60 = vsub.f32 %v4879_v18, %v4885_v16 }
 0x281   : > { %v1431_v17 = vpop.xlane.xlu1 %1430  ;;  %v1518_v62 = vmul.f32 1.442695, %v5896_v19  ;;  %v1522_v54 = vmul.f32 1.442695, %v5898_v4  ;;  %v1528_v6 = vmul.f32 1.442695, %v5901_v59 }
 0x282   : > { %2780 = vst.msk [vmem:[#allocation2 + $0xe0] sm:$0xff] %vm764_vm0, %v5100_v31  ;;  %v5108_v25 = vmax.f32 %v5097_v15, %v1431_v17  ;;  %1708 = vperm.xlu1 %3867, %v5100_v31   ;;  %v1508_v23 = vmul.f32 1.442695, %v5891_v22  ;;  %v1510_v17 = vmul.f32 1.442695, %v5892_v20  ;;  %v5897_v22 = vsub.f32 %v4902_v48, %v4912_v36 }
 0x283   : > { %v1514_v50 = vmul.f32 1.442695, %v5894_v60 }
 0x284   : > { %2781 = vst.msk [vmem:[#allocation2 + $0xe8] sm:$0xff] %vm764_vm0, %v5108_v25  ;;  %1713 = vperm.xlu0 %3866, %v5108_v25   ;;  %3922 = vpow2.f32 %v1508_v23  ;;  %v1520_v10 = vmul.f32 1.442695, %v5897_v22  ;;  %v5899_v23 = vsub.f32 %v4922_v0, %v4932_v63 }
 0x285   : > { %3924 = vpow2.f32 %v1510_v17  ;;  %v5900_v17 = vsub.f32 %v4940_v61, %v4945_v53  ;;  %v5902_v53 = vsub.f32 %v4960_v55, %v4965_v47 }
 0x286   : > { %v5153_v18 = vpop.eup %3916  ;;  %3926 = vpow2.f32 %v1512_v24  ;;  %v1524_v20 = vmul.f32 1.442695, %v5899_v23 }
 0x287   : > { %v1434_v27 = vpop.xlane.xlu0 %1433  ;;  %3928 = vpow2.f32 %v1514_v50  ;;  %v1526_v48 = vmul.f32 1.442695, %v5900_v17  ;;  %v1530_v61 = vmul.f32 1.442695, %v5902_v53 }
 0x288   : > { %v5128_v38 = vmax.f32 %v5120_v56, %v1434_v27  ;;  %v5162_v26 = vpop.eup %3918  ;;  %3930 = vpow2.f32 %v1516_v44  ;;  %v1534_v44 = vmul.f32 1.442695, %v5904_v32  ;;  %v5914_v32 = vld [vmem:[#allocation66_spill] sm:$0xff] }
 0x289   : > { %v1437_v42 = vpop.xlane.xlu1 %1436  ;;  %3932 = vpow2.f32 %v1518_v62  ;;  %v5171_v36 = vpop.eup %3920 }
 0x28a   : > { %2782 = vst.msk [vmem:[#allocation2 + $0xf0] sm:$0xff] %vm764_vm0, %v5128_v38  ;;  %v5139_v30 = vmax.f32 %v5125_v12, %v1437_v42  ;;  %1718 = vperm.xlu1 %3867, %v5128_v38   ;;  %3934 = vpow2.f32 %v1520_v10 }
 0x28b   : > { %3936 = vpow2.f32 %v1522_v54 }
 0x28c   : > { %2783 = vst.msk [vmem:[#allocation2 + $0xf8] sm:$0xff] %vm764_vm0, %v5139_v30  ;;  %1723 = vperm.xlu0 %3866, %v5139_v30   ;;  %3938 = vpow2.f32 %v1524_v20 }
 0x28d   : > { %3940 = vpow2.f32 %v1526_v48 }
 0x28e   : > { %2182 = vperm.xlu1 %3867, %v5153_v18   ;;  %v5179_v0 = vpop.eup %3922  ;;  %3942 = vpow2.f32 %v1528_v6 }
 0x28f   : > { %v5185_v57 = vpop.eup %3924 }
 0x290   : > { %2177 = vperm.xlu0 %3866, %v5162_v26   ;;  %v5193_v47 = vpop.eup %3926 }
 0x291   : > { %v1569_v27 = vpop.permute.xlu0 %1568  ;;  %v5195_v55 = vpop.eup %3928 }
 0x292   : > { %v1726_v28 = vsub.f32 %v4577_v1, %v1569_v27  ;;  %v1727_v63 = vsub.f32 %v4579_v2, %v1569_v27  ;;  %2187 = vperm.xlu1 %3867, %v5171_v36   ;;  %v5903_v1 = vsub.f32 %v4962_v52, %v4972_v51  ;;  %v5201_v19 = vpop.eup %3930  ;;  %v5908_v27 = vsub.f32 %v5020_v37, %v5025_v29 }
 0x293   : > { %v5206_v22 = vpop.eup %3932 }
 0x294   : > { %v1790_v24 = vmul.f32 1.442695, %v1726_v28  ;;  %v1792_v42 = vmul.f32 1.442695, %v1727_v63  ;;  %2192 = vperm.xlu0 %3866, %v5179_v0   ;;  %v1532_v2 = vmul.f32 1.442695, %v5903_v1  ;;  %v5211_v49 = vpop.eup %3934 }
 0x295   : > { %v1574_v58 = vpop.permute.xlu1 %1573  ;;  %v5213_v4 = vpop.eup %3936 }
 0x296   : > { %3944 = vpow2.f32 %v1790_v24  ;;  %v1728_v60 = vsub.f32 %v4581_v3, %v1574_v58  ;;  %v1729_v50 = vsub.f32 %v4585_v5, %v1574_v58  ;;  %2197 = vperm.xlu1 %3867, %v5185_v57   ;;  %v5905_v3 = vsub.f32 %v4982_v46, %v4992_v45  ;;  %v5219_v20 = vpop.eup %3938  ;;  %v5910_v58 = vld [vmem:[#allocation62_spill] sm:$0xff] }
 0x297   : > { %3946 = vpow2.f32 %v1792_v42  ;;  %v5906_v45 = vsub.f32 %v5000_v43, %v5005_v35  ;;  %v5224_v48 = vpop.eup %3940 }
 0x298   : > { %3948 = vpow2.f32 %v1530_v61  ;;  %v1794_v51 = vmul.f32 1.442695, %v1728_v60  ;;  %v1796_v52 = vmul.f32 1.442695, %v1729_v50  ;;  %2202 = vperm.xlu0 %3866, %v5193_v47   ;;  %v1536_v5 = vmul.f32 1.442695, %v5905_v3  ;;  %v5229_v43 = vpop.eup %3942 }
 0x299   : > { %3950 = vpow2.f32 %v1532_v2  ;;  %v1579_v62 = vpop.permute.xlu1 %1578  ;;  %v1538_v46 = vmul.f32 1.442695, %v5906_v45  ;;  %v5911_v60 = vld [vmem:[#allocation64_spill] sm:$0xff] }
 0x29a   : > { %3952 = vpow2.f32 %v1794_v51  ;;  %v1730_v10 = vsub.f32 %v4589_v7, %v1579_v62  ;;  %v1731_v41 = vsub.f32 %v4591_v8, %v1579_v62  ;;  %2207 = vperm.xlu1 %3867, %v5195_v55   ;;  %v5907_v7 = vsub.f32 %v5002_v40, %v5012_v39 }
 0x29b   : > { %3954 = vpow2.f32 %v1796_v52  ;;  %v1542_v39 = vmul.f32 1.442695, %v5908_v27 }
 0x29c   : > { %3956 = vpow2.f32 %v1534_v44  ;;  %v1798_v54 = vmul.f32 1.442695, %v1730_v10  ;;  %v1800_v23 = vmul.f32 1.442695, %v1731_v41  ;;  %2212 = vperm.xlu0 %3866, %v5201_v19   ;;  %v1540_v8 = vmul.f32 1.442695, %v5907_v7 }
 0x29d   : > { %3958 = vpow2.f32 %v1536_v5  ;;  %v1584_v17 = vpop.permute.xlu1 %1583  ;;  %v5915_v5 = vld [vmem:[#allocation8_spill] sm:$0xff]  ;;  %v5916_v10 = vld [vmem:[#allocation9_spill] sm:$0xff]  ;;  %v5917_v7 = vld [vmem:[#allocation63_spill] sm:$0xff] }
 0x29e   : > { %3960 = vpow2.f32 %v1798_v54  ;;  %v1732_v59 = vsub.f32 %v4593_v9, %v1584_v17  ;;  %v1733_v35 = vsub.f32 %v4597_v11, %v1584_v17  ;;  %2217 = vperm.xlu1 %3867, %v5206_v22   ;;  %v5909_v9 = vsub.f32 %v5022_v34, %v5032_v33 }
 0x29f   : > { %3962 = vpow2.f32 %v1800_v23 }
 0x2a0   : > { %v3945_v6 = vpop.eup %3944  ;;  %3964 = vpow2.f32 %v1538_v46  ;;  %v1802_v40 = vmul.f32 1.442695, %v1732_v59  ;;  %v1804_v28 = vmul.f32 1.442695, %v1733_v35  ;;  %2222 = vperm.xlu0 %3866, %v5211_v49   ;;  %v1544_v11 = vmul.f32 1.442695, %v5909_v9 }
 0x2a1   : > { %v3947_v63 = vpop.eup %3946  ;;  %3966 = vpow2.f32 %v1540_v8  ;;  %v1589_v53 = vpop.permute.xlu1 %1588  ;;  %v5918_v8 = vld [vmem:[#allocation65_spill] sm:$0xff]  ;;  %v5922_v9 = vld [vmem:[#allocation72_spill] sm:$0xff] }
 0x2a2   : > { %v5238_v61 = vpop.eup %3948  ;;  %3968 = vpow2.f32 %v1802_v40  ;;  %v1734_v24 = vsub.f32 %v4601_v13, %v1589_v53  ;;  %v1735_v42 = vsub.f32 %v4603_v14, %v1589_v53  ;;  %2227 = vperm.xlu1 %3867, %v5213_v4   ;;  %v5243_v29 = vadd.f32 %v3947_v63, %v3945_v6  ;;  %v5913_v14 = vld [vmem:[#allocation68_spill] sm:$0xff]  ;;  %v5920_v35 = vld [vmem:[#allocation69_spill] sm:$0xff] }
 0x2a3   : > { %v5245_v37 = vpop.eup %3950  ;;  %3970 = vpow2.f32 %v1804_v28  ;;  %v5912_v13 = vsub.f32 %v5910_v58, %v5911_v60  ;;  %v1494_v44 = vsub.f32 %v5914_v32, %v5913_v14  ;;  %v5919_v17 = vsub.f32 %v5917_v7, %v5918_v8  ;;  %v5928_v7 = vld [vmem:[#allocation12_spill] sm:$0xff] }
 0x2a4   : > { %v3953_v1 = vpop.eup %3952  ;;  %3972 = vpow2.f32 %v1542_v39  ;;  %v1806_v2 = vmul.f32 1.442695, %v1734_v24  ;;  %v1808_v33 = vmul.f32 1.442695, %v1735_v42  ;;  %2232 = vperm.xlu0 %3866, %v5219_v20  }
 0x2a5   : > { %v3955_v34 = vpop.eup %3954  ;;  %3974 = vpow2.f32 %v1544_v11  ;;  %v1546_v50 = vmul.f32 1.442695, %v5912_v13  ;;  %v1594_v51 = vpop.permute.xlu1 %1593  ;;  %v2367_v52 = vpack.c.bf16 %v3953_v1, %v3945_v6  ;;  %v1548_v59 = vmul.f32 1.442695, %v5919_v17  ;;  %v5921_v6 = vld [vmem:[#allocation67_spill] sm:$0xff]  ;;  %v5923_v11 = vld [vmem:[#allocation70_spill] sm:$0xff] }
 0x2a6   : > { %v5253_v3 = vpop.eup %3956  ;;  %3976 = vpow2.f32 %v1806_v2  ;;  %v1736_v62 = vsub.f32 %v5915_v5, %v1594_v51  ;;  %v1737_v41 = vsub.f32 %v5916_v10, %v1594_v51  ;;  %2237 = vperm.xlu1 %3867, %v5224_v48   ;;  %v2368_v45 = vpack.c.bf16 %v3955_v34, %v3947_v63  ;;  %v5927_v5 = vld [vmem:[#allocation71_spill] sm:$0xff]  ;;  %v5929_v17 = vld [vmem:[#allocation13_spill] sm:$0xff] }
 0x2a7   : > { %v5258_v46 = vpop.eup %3958  ;;  %3978 = vpow2.f32 %v1808_v33  ;;  %v5260_v54 = vadd.f32 %v3955_v34, %v3953_v1  ;;  %v1495_v27 = vsub.f32 %v5921_v6, %v5920_v35  ;;  %v1550_v63 = vmul.f32 1.442695, %v1494_v44  ;;  %v5924_v1 = vld [vmem:[#allocation10_spill] sm:$0xff]  ;;  %v5925_v33 = vld [vmem:[#allocation11_spill] sm:$0xff] }
 0x2a8   : > { %v3961_v23 = vpop.eup %3960  ;;  %v1810_v39 = vmul.f32 1.442695, %v1736_v62  ;;  %v1812_v40 = vmul.f32 1.442695, %v1737_v41  ;;  %2559 = vmatprep.mubr.bf16.mxu1 %v2368_v45  ;;  %2242 = vperm.xlu0 %3866, %v5229_v43   ;;  %3980 = vpow2.f32 %v1546_v50  ;;  %v1496_v53 = vsub.f32 %v5923_v11, %v5922_v9 }
 0x2a9   : > { %v3963_v28 = vpop.eup %3962  ;;  %2560 = vmatmul.mubr.bf16.vlgmr.msra.gmra.mrb[0].mxu1 %v2367_v52  ;;  %v1599_v24 = vpop.permute.xlu1 %1598  ;;  %v1552_v50 = vmul.f32 1.442695, %v1495_v27  ;;  %v5926_v52 = vld [vmem:[#allocation73_spill] sm:$0xff]  ;;  %v1498_v11 = vsub.f32 %v5092_v21, %v5100_v31 }
 0x2aa   : > { %v5270_v42 = vpop.eup %3964  ;;  %3982 = vpow2.f32 %v1810_v39  ;;  %v1738_v2 = vsub.f32 %v5924_v1, %v1599_v24  ;;  %v1739_v34 = vsub.f32 %v5925_v33, %v1599_v24  ;;  %2247 = vperm.xlu1 %3867, %v5238_v61   ;;  %v5275_v58 = vadd.f32 %v3963_v28, %v3961_v23  ;;  %v5931_v1 = vld [vmem:[#allocation15_spill] sm:$0xff] }
 0x2ab   : > { %v5277_v60 = vpop.eup %3966  ;;  %3984 = vpow2.f32 %v1812_v40  ;;  %v1554_v51 = vmul.f32 1.442695, %v1496_v53  ;;  %v1497_v62 = vsub.f32 %v5927_v5, %v5926_v52  ;;  %v5930_v53 = vld [vmem:[#allocation14_spill] sm:$0xff] }
 0x2ac   : > { %v3969_v13 = vpop.eup %3968  ;;  %3986 = vpow2.f32 %v1548_v59  ;;  %v1814_v14 = vmul.f32 1.442695, %v1738_v2  ;;  %v1816_v32 = vmul.f32 1.442695, %v1739_v34  ;;  %2252 = vperm.xlu0 %3866, %v5245_v37  }
 0x2ad   : > { %v3971_v44 = vpop.eup %3970  ;;  %3988 = vpow2.f32 %v1550_v63  ;;  %v1604_v10 = vpop.permute.xlu1 %1603  ;;  %v2369_v41 = vpack.c.bf16 %v3969_v13, %v3961_v23  ;;  %v1556_v9 = vmul.f32 1.442695, %v1497_v62  ;;  %v1558_v62 = vmul.f32 1.442695, %v1498_v11  ;;  %v5937_v11 = vld [vmem:[#allocation19_spill] sm:$0xff] }
 0x2ae   : > { %v5282_v45 = vpop.eup %3972  ;;  %3990 = vpow2.f32 %v1814_v14  ;;  %v1740_v8 = vsub.f32 %v5928_v7, %v1604_v10  ;;  %v1741_v59 = vsub.f32 %v5929_v17, %v1604_v10  ;;  %2257 = vperm.xlu1 %3867, %v5253_v3   ;;  %v2370_v35 = vpack.c.bf16 %v3971_v44, %v3963_v28 }
 0x2af   : > { %v5287_v6 = vpop.eup %3974  ;;  %3992 = vpow2.f32 %v1816_v32  ;;  %v5289_v27 = vadd.f32 %v3971_v44, %v3969_v13  ;;  %v1499_v13 = vsub.f32 %v5097_v15, %v5108_v25  ;;  %v5932_v32 = vld [vmem:[#allocation16_spill] sm:$0xff]  ;;  %v1500_v10 = vsub.f32 %v5120_v56, %v5128_v38 }
 0x2b0   : > { %v3977_v39 = vpop.eup %3976  ;;  %3994 = vpow2.f32 %v1552_v50  ;;  %v1818_v40 = vmul.f32 1.442695, %v1740_v8  ;;  %v1820_v63 = vmul.f32 1.442695, %v1741_v59  ;;  %2567 = vmatprep.mubr.bf16.mxu1 %v2370_v35  ;;  %2262 = vperm.xlu0 %3866, %v5258_v46  }
 0x2b1   : > { %v3979_v23 = vpop.eup %3978  ;;  %3996 = vpow2.f32 %v1554_v51  ;;  %2568 = vmatmul.mubr.bf16.gmra.mrb[4].mxu1 %v2369_v41  ;;  %v1609_v28 = vpop.permute.xlu1 %1608  ;;  %v5933_v51 = vld [vmem:[#allocation17_spill] sm:$0xff]  ;;  %v1560_v59 = vmul.f32 1.442695, %v1499_v13  ;;  %v1562_v38 = vmul.f32 1.442695, %v1500_v10 }
 0x2b2   : > { %3998 = vpow2.f32 %v1818_v40  ;;  %v1742_v24 = vsub.f32 %v5930_v53, %v1609_v28  ;;  %v1743_v2 = vsub.f32 %v5931_v1, %v1609_v28  ;;  %2267 = vperm.xlu1 %3867, %v5270_v42   ;;  %v5297_v33 = vadd.f32 %v3979_v23, %v3977_v39  ;;  %v5299_v34 = vpop.eup %3980 }
 0x2b3   : > { %4000 = vpow2.f32 %v1820_v63  ;;  %v1614_v50 = vpop.permute.xlu0 %1613 }
 0x2b4   : > { %v3983_v14 = vpop.eup %3982  ;;  %v1822_v21 = vmul.f32 1.442695, %v1742_v24  ;;  %v1824_v31 = vmul.f32 1.442695, %v1743_v2  ;;  %v1744_v44 = vsub.f32 %v5932_v32, %v1614_v50  ;;  %v1745_v52 = vsub.f32 %v5933_v51, %v1614_v50  ;;  %2272 = vperm.xlu0 %3866, %v5277_v60  }
 0x2b5   : > { %v3985_v5 = vpop.eup %3984  ;;  %4002 = vpow2.f32 %v1556_v9  ;;  %v2371_v41 = vpack.c.bf16 %v3983_v14, %v3977_v39 }
 0x2b6   : > { %v5308_v7 = vpop.eup %3986  ;;  %4004 = vpow2.f32 %v1822_v21  ;;  %v1826_v15 = vmul.f32 1.442695, %v1744_v44  ;;  %v1828_v25 = vmul.f32 1.442695, %v1745_v52  ;;  %2277 = vperm.xlu1 %3867, %v5282_v45   ;;  %v2372_v8 = vpack.c.bf16 %v3985_v5, %v3979_v23  ;;  %v5936_v23 = vld [vmem:[#allocation18_spill] sm:$0xff] }
 0x2b7   : > { %5934 = vst [vmem:[#allocation62_spill] sm:$0xff] %v5308_v7  ;;  %v5311_v17 = vpop.eup %3988  ;;  %4006 = vpow2.f32 %v1824_v31  ;;  %v5313_v35 = vadd.f32 %v3985_v5, %v3983_v14  ;;  %v5939_v14 = vld [vmem:[#allocation20_spill] sm:$0xff]  ;;  %v5940_v31 = vld [vmem:[#allocation21_spill] sm:$0xff] }
 0x2b8   : > { %v3991_v40 = vpop.eup %3990  ;;  %4008 = vpow2.f32 %v1826_v15  ;;  %2575 = vmatprep.mubr.bf16.mxu1 %v2372_v8  ;;  %2282 = vperm.xlu0 %3866, %v5287_v6  }
 0x2b9   : > { %v3993_v56 = vpop.eup %3992  ;;  %4010 = vpow2.f32 %v1828_v25  ;;  %2576 = vmatmul.mubr.bf16.gmra.mrb[8].mxu1 %v2371_v41  ;;  %v1619_v39 = vpop.permute.xlu1 %1618 }
 0x2ba   : > { %v5316_v63 = vpop.eup %3994  ;;  %4012 = vpow2.f32 %v1558_v62  ;;  %v1746_v9 = vsub.f32 %v5936_v23, %v1619_v39  ;;  %v1747_v28 = vsub.f32 %v5937_v11, %v1619_v39  ;;  %2287 = vperm.xlu1 %3867, %v5299_v34   ;;  %v5321_v53 = vadd.f32 %v3993_v56, %v3991_v40  ;;  %v5943_v39 = vld [vmem:[#allocation23_spill] sm:$0xff] }
 0x2bb   : > { %5935 = vst [vmem:[#allocation64_spill] sm:$0xff] %v5316_v63  ;;  %v5323_v24 = vpop.eup %3996  ;;  %4014 = vpow2.f32 %v1560_v59  ;;  %v1624_v1 = vpop.permute.xlu0 %1623 }
 0x2bc   : > { %5938 = vst [vmem:[#allocation68_spill] sm:$0xff] %v5323_v24  ;;  %v3999_v2 = vpop.eup %3998  ;;  %v1830_v13 = vmul.f32 1.442695, %v1746_v9  ;;  %v1832_v50 = vmul.f32 1.442695, %v1747_v28  ;;  %v1748_v21 = vsub.f32 %v5939_v14, %v1624_v1  ;;  %v1749_v32 = vsub.f32 %v5940_v31, %v1624_v1  ;;  %2292 = vperm.xlu0 %3866, %v5308_v7  }
 0x2bd   : > { %v4001_v44 = vpop.eup %4000  ;;  %4016 = vpow2.f32 %v1562_v38  ;;  %v2373_v51 = vpack.c.bf16 %v3999_v2, %v3991_v40  ;;  %v5942_v40 = vld [vmem:[#allocation22_spill] sm:$0xff] }
 0x2be   : > { %4018 = vpow2.f32 %v1830_v13  ;;  %v1834_v52 = vmul.f32 1.442695, %v1748_v21  ;;  %v1836_v5 = vmul.f32 1.442695, %v1749_v32  ;;  %2297 = vperm.xlu1 %3867, %v5311_v17   ;;  %v2374_v62 = vpack.c.bf16 %v4001_v44, %v3993_v56  ;;  %v5946_v21 = vld [vmem:[#allocation25_spill] sm:$0xff] }
 0x2bf   : > { %v5329_v10 = vpop.eup %4002  ;;  %4020 = vpow2.f32 %v1832_v50  ;;  %v5331_v41 = vadd.f32 %v4001_v44, %v3999_v2  ;;  %v5945_v50 = vld [vmem:[#allocation24_spill] sm:$0xff] }
 0x2c0   : > { %5941 = vst [vmem:[#allocation66_spill] sm:$0xff] %v5329_v10  ;;  %v4005_v15 = vpop.eup %4004  ;;  %4022 = vpow2.f32 %v1834_v52  ;;  %2583 = vmatprep.mubr.bf16.mxu1 %v2374_v62  ;;  %2302 = vperm.xlu0 %3866, %v5316_v63  }
 0x2c1   : > { %v4007_v25 = vpop.eup %4006  ;;  %4024 = vpow2.f32 %v1836_v5  ;;  %2584 = vmatmul.mubr.bf16.gmra.mrb[12].mxu1 %v2373_v51  ;;  %v1629_v8 = vpop.permute.xlu1 %1628 }
 0x2c2   : > { %v4009_v59 = vpop.eup %4008  ;;  %v1750_v38 = vsub.f32 %v5942_v40, %v1629_v8  ;;  %v1751_v23 = vsub.f32 %v5943_v39, %v1629_v8  ;;  %2307 = vperm.xlu1 %3867, %v5323_v24   ;;  %v5337_v56 = vadd.f32 %v4007_v25, %v4005_v15  ;;  %v5950_v39 = vld [vmem:[#allocation27_spill] sm:$0xff] }
 0x2c3   : > { %v4011_v9 = vpop.eup %4010  ;;  %v1634_v11 = vpop.permute.xlu0 %1633  ;;  %v2375_v28 = vpack.c.bf16 %v4009_v59, %v4005_v15 }
 0x2c4   : > { %v5339_v1 = vpop.eup %4012  ;;  %v1838_v2 = vmul.f32 1.442695, %v1750_v38  ;;  %v1840_v13 = vmul.f32 1.442695, %v1751_v23  ;;  %v1752_v14 = vsub.f32 %v5945_v50, %v1634_v11  ;;  %v1753_v31 = vsub.f32 %v5946_v21, %v1634_v11  ;;  %2312 = vperm.xlu0 %3866, %v5329_v10   ;;  %v5951_v21 = vld [vmem:[#allocation28_spill] sm:$0xff] }
 0x2c5   : > { %5944 = vst [vmem:[#allocation8_spill] sm:$0xff] %v5339_v1  ;;  %v5344_v32 = vpop.eup %4014  ;;  %v2376_v44 = vpack.c.bf16 %v4011_v9, %v4007_v25  ;;  %v5346_v51 = vadd.f32 %v4011_v9, %v4009_v59  ;;  %v5949_v59 = vld [vmem:[#allocation26_spill] sm:$0xff] }
 0x2c6   : > { %5947 = vst [vmem:[#allocation9_spill] sm:$0xff] %v5344_v32  ;;  %4026 = vpow2.f32 %v1838_v2  ;;  %v1842_v52 = vmul.f32 1.442695, %v1752_v14  ;;  %v1844_v5 = vmul.f32 1.442695, %v1753_v31  ;;  %2317 = vperm.xlu1 %3867, %v5339_v1  }
 0x2c7   : > { %v5349_v62 = vpop.eup %4016  ;;  %4028 = vpow2.f32 %v1840_v13  ;;  %2591 = vmatprep.mubr.bf16.mxu1 %v2376_v44  ;;  %v5952_v44 = vld [vmem:[#allocation29_spill] sm:$0xff] }
 0x2c8   : > { %5948 = vst [vmem:[#allocation63_spill] sm:$0xff] %v5349_v62  ;;  %v4019_v15 = vpop.eup %4018  ;;  %4030 = vpow2.f32 %v1842_v52  ;;  %2322 = vperm.xlu0 %3866, %v5344_v32  }
 0x2c9   : > { %v4021_v8 = vpop.eup %4020  ;;  %4032 = vpow2.f32 %v1844_v5  ;;  %2592 = vmatmul.mubr.bf16.gmra.mrb[16].mxu1 %v2375_v28  ;;  %v1639_v40 = vpop.permute.xlu1 %1638 }
 0x2ca   : > { %v4023_v25 = vpop.eup %4022  ;;  %v1754_v38 = vsub.f32 %v5949_v59, %v1639_v40  ;;  %v1755_v23 = vsub.f32 %v5950_v39, %v1639_v40  ;;  %2327 = vperm.xlu1 %3867, %v5349_v62   ;;  %v5355_v9 = vadd.f32 %v4021_v8, %v4019_v15 }
 0x2cb   : > { %v4025_v11 = vpop.eup %4024  ;;  %v1644_v2 = vpop.permute.xlu0 %1643  ;;  %v2377_v13 = vpack.c.bf16 %v4023_v25, %v4019_v15 }
 0x2cc   : > { %v1846_v50 = vmul.f32 1.442695, %v1754_v38  ;;  %v1848_v14 = vmul.f32 1.442695, %v1755_v23  ;;  %v1756_v31 = vsub.f32 %v5951_v21, %v1644_v2  ;;  %v1757_v52 = vsub.f32 %v5952_v44, %v1644_v2  ;;  %v5953_v23 = vld [vmem:[#allocation30_spill] sm:$0xff]  ;;  %v5954_v21 = vld [vmem:[#allocation31_spill] sm:$0xff] }
 0x2cd   : > { %v2378_v28 = vpack.c.bf16 %v4025_v11, %v4021_v8  ;;  %v5359_v5 = vadd.f32 %v4025_v11, %v4023_v25 }
 0x2ce   : > { %4034 = vpow2.f32 %v1846_v50  ;;  %v1850_v59 = vmul.f32 1.442695, %v1756_v31  ;;  %v1852_v16 = vmul.f32 1.442695, %v1757_v52  ;;  %v5956_v52 = vld [vmem:[#allocation33_spill] sm:$0xff] }
 0x2cf   : > { %4036 = vpow2.f32 %v1848_v14  ;;  %2599 = vmatprep.mubr.bf16.mxu1 %v2378_v28  ;;  %v5955_v14 = vld [vmem:[#allocation32_spill] sm:$0xff] }
 0x2d0   : > { %v4027_v40 = vpop.eup %4026  ;;  %4038 = vpow2.f32 %v1850_v59 }
 0x2d1   : > { %v4029_v39 = vpop.eup %4028  ;;  %4040 = vpow2.f32 %v1852_v16  ;;  %2600 = vmatmul.mubr.bf16.gmra.mrb[20].mxu1 %v2377_v13  ;;  %v1649_v15 = vpop.permute.xlu1 %1648 }
 0x2d2   : > { %v4031_v38 = vpop.eup %4030  ;;  %v1758_v32 = vsub.f32 %v5953_v23, %v1649_v15  ;;  %v1759_v62 = vsub.f32 %v5954_v21, %v1649_v15  ;;  %v5363_v2 = vadd.f32 %v4029_v39, %v4027_v40 }
 0x2d3   : > { %v4033_v8 = vpop.eup %4032  ;;  %v1654_v25 = vpop.permute.xlu0 %1653  ;;  %v2379_v11 = vpack.c.bf16 %v4031_v38, %v4027_v40 }
 0x2d4   : > { %v1854_v50 = vmul.f32 1.442695, %v1758_v32  ;;  %v1856_v31 = vmul.f32 1.442695, %v1759_v62  ;;  %v1760_v44 = vsub.f32 %v5955_v14, %v1654_v25  ;;  %v1761_v28 = vsub.f32 %v5956_v52, %v1654_v25  ;;  %v5957_v62 = vld [vmem:[#allocation34_spill] sm:$0xff]  ;;  %v5958_v14 = vld [vmem:[#allocation35_spill] sm:$0xff] }
 0x2d5   : > { %v2380_v59 = vpack.c.bf16 %v4033_v8, %v4029_v39  ;;  %v5367_v16 = vadd.f32 %v4033_v8, %v4031_v38 }
 0x2d6   : > { %4042 = vpow2.f32 %v1854_v50  ;;  %v1858_v13 = vmul.f32 1.442695, %v1760_v44  ;;  %v1860_v10 = vmul.f32 1.442695, %v1761_v28  ;;  %v5960_v28 = vld [vmem:[#allocation37_spill] sm:$0xff] }
 0x2d7   : > { %4044 = vpow2.f32 %v1856_v31  ;;  %2607 = vmatprep.mubr.bf16.mxu1 %v2380_v59  ;;  %v5959_v31 = vld [vmem:[#allocation36_spill] sm:$0xff] }
 0x2d8   : > { %v4035_v15 = vpop.eup %4034  ;;  %4046 = vpow2.f32 %v1858_v13 }
 0x2d9   : > { %v4037_v23 = vpop.eup %4036  ;;  %4048 = vpow2.f32 %v1860_v10  ;;  %2608 = vmatmul.mubr.bf16.gmra.mrb[24].mxu1 %v2379_v11  ;;  %v1659_v40 = vpop.permute.xlu1 %1658 }
 0x2da   : > { %v4039_v32 = vpop.eup %4038  ;;  %v1762_v21 = vsub.f32 %v5957_v62, %v1659_v40  ;;  %v1763_v1 = vsub.f32 %v5958_v14, %v1659_v40  ;;  %v5371_v25 = vadd.f32 %v4037_v23, %v4035_v15 }
 0x2db   : > { %v4041_v39 = vpop.eup %4040  ;;  %v1664_v38 = vpop.permute.xlu0 %1663  ;;  %v2381_v8 = vpack.c.bf16 %v4039_v32, %v4035_v15 }
 0x2dc   : > { %v1862_v50 = vmul.f32 1.442695, %v1762_v21  ;;  %v1864_v44 = vmul.f32 1.442695, %v1763_v1  ;;  %v1764_v52 = vsub.f32 %v5959_v31, %v1664_v38  ;;  %v1765_v59 = vsub.f32 %v5960_v28, %v1664_v38  ;;  %v5961_v1 = vld [vmem:[#allocation38_spill] sm:$0xff]  ;;  %v5962_v31 = vld [vmem:[#allocation39_spill] sm:$0xff] }
 0x2dd   : > { %v2382_v13 = vpack.c.bf16 %v4041_v39, %v4037_v23  ;;  %v5375_v10 = vadd.f32 %v4041_v39, %v4039_v32 }
 0x2de   : > { %4050 = vpow2.f32 %v1862_v50  ;;  %v1866_v11 = vmul.f32 1.442695, %v1764_v52  ;;  %v1868_v63 = vmul.f32 1.442695, %v1765_v59  ;;  %v5964_v59 = vld [vmem:[#allocation41_spill] sm:$0xff] }
 0x2df   : > { %4052 = vpow2.f32 %v1864_v44  ;;  %2615 = vmatprep.mubr.bf16.mxu1 %v2382_v13  ;;  %v5963_v44 = vld [vmem:[#allocation40_spill] sm:$0xff] }
 0x2e0   : > { %v4043_v40 = vpop.eup %4042  ;;  %4054 = vpow2.f32 %v1866_v11 }
 0x2e1   : > { %v4045_v62 = vpop.eup %4044  ;;  %4056 = vpow2.f32 %v1868_v63  ;;  %2616 = vmatmul.mubr.bf16.gmra.mrb[28].mxu1 %v2381_v8  ;;  %v1669_v15 = vpop.permute.xlu1 %1668 }
 0x2e2   : > { %v4047_v21 = vpop.eup %4046  ;;  %v1766_v14 = vsub.f32 %v5961_v1, %v1669_v15  ;;  %v1767_v24 = vsub.f32 %v5962_v31, %v1669_v15  ;;  %v5379_v38 = vadd.f32 %v4045_v62, %v4043_v40 }
 0x2e3   : > { %v4049_v23 = vpop.eup %4048  ;;  %v1674_v32 = vpop.permute.xlu0 %1673  ;;  %v2383_v39 = vpack.c.bf16 %v4047_v21, %v4043_v40 }
 0x2e4   : > { %v1870_v50 = vmul.f32 1.442695, %v1766_v14  ;;  %v1872_v52 = vmul.f32 1.442695, %v1767_v24  ;;  %v1768_v28 = vsub.f32 %v5963_v44, %v1674_v32  ;;  %v1769_v13 = vsub.f32 %v5964_v59, %v1674_v32  ;;  %v5965_v14 = vld [vmem:[#allocation42_spill] sm:$0xff]  ;;  %v5966_v32 = vld [vmem:[#allocation43_spill] sm:$0xff] }
 0x2e5   : > { %v2384_v11 = vpack.c.bf16 %v4049_v23, %v4045_v62  ;;  %v5383_v63 = vadd.f32 %v4049_v23, %v4047_v21 }
 0x2e6   : > { %4058 = vpow2.f32 %v1870_v50  ;;  %v1874_v8 = vmul.f32 1.442695, %v1768_v28  ;;  %v1876_v7 = vmul.f32 1.442695, %v1769_v13  ;;  %v5967_v28 = vld [vmem:[#allocation44_spill] sm:$0xff]  ;;  %v5968_v13 = vld [vmem:[#allocation45_spill] sm:$0xff] }
 0x2e7   : > { %4060 = vpow2.f32 %v1872_v52  ;;  %2623 = vmatprep.mubr.bf16.mxu1 %v2384_v11  ;;  %1986 = vadd.xlane.f32.xlu0 %v5260_v54 }
 0x2e8   : > { %v4051_v15 = vpop.eup %4050  ;;  %4062 = vpow2.f32 %v1874_v8 }
 0x2e9   : > { %v4053_v1 = vpop.eup %4052  ;;  %4064 = vpow2.f32 %v1876_v7  ;;  %2624 = vmatmul.mubr.bf16.gmra.mrb[32].mxu1 %v2383_v39  ;;  %v1679_v24 = vpop.permute.xlu1 %1678 }
 0x2ea   : > { %v4055_v40 = vpop.eup %4054  ;;  %v1770_v31 = vsub.f32 %v5965_v14, %v1679_v24  ;;  %v1771_v62 = vsub.f32 %v5966_v32, %v1679_v24  ;;  %v5388_v21 = vadd.f32 %v4053_v1, %v4051_v15  ;;  %v5969_v32 = vld [vmem:[#allocation46_spill] sm:$0xff] }
 0x2eb   : > { %v4057_v23 = vpop.eup %4056  ;;  %v1684_v50 = vpop.permute.xlu0 %1683  ;;  %1989 = vadd.xlane.f32.xlu0 %v5275_v58  ;;  %v2385_v52 = vpack.c.bf16 %v4055_v40, %v4051_v15 }
 0x2ec   : > { %v1878_v44 = vmul.f32 1.442695, %v1770_v31  ;;  %v1880_v54 = vmul.f32 1.442695, %v1771_v62  ;;  %v1772_v59 = vsub.f32 %v5967_v28, %v1684_v50  ;;  %v1773_v7 = vsub.f32 %v5968_v13, %v1684_v50  ;;  %v5971_v28 = vld [vmem:[#allocation48_spill] sm:$0xff] }
 0x2ed   : > { %v2386_v39 = vpack.c.bf16 %v4057_v23, %v4053_v1  ;;  %v5393_v11 = vadd.f32 %v4057_v23, %v4055_v40  ;;  %v5970_v40 = vld [vmem:[#allocation47_spill] sm:$0xff] }
 0x2ee   : > { %4066 = vpow2.f32 %v1878_v44  ;;  %v1882_v8 = vmul.f32 1.442695, %v1772_v59  ;;  %v1884_v14 = vmul.f32 1.442695, %v1773_v7  ;;  %1983 = vadd.xlane.f32.xlu1 %v5243_v29 }
 0x2ef   : > { %4068 = vpow2.f32 %v1880_v54  ;;  %2631 = vmatprep.mubr.bf16.mxu1 %v2386_v39  ;;  %1995 = vadd.xlane.f32.xlu0 %v5297_v33 }
 0x2f0   : > { %v4059_v58 = vpop.eup %4058  ;;  %4070 = vpow2.f32 %v1882_v8 }
 0x2f1   : > { %v4061_v15 = vpop.eup %4060  ;;  %4072 = vpow2.f32 %v1884_v14  ;;  %2632 = vmatmul.mubr.bf16.gmra.mrb[36].mxu1 %v2385_v52  ;;  %v1689_v24 = vpop.permute.xlu1 %1688  ;;  %v5972_v52 = vld [vmem:[#allocation49_spill] sm:$0xff] }
 0x2f2   : > { %v4063_v31 = vpop.eup %4062  ;;  %v1774_v1 = vsub.f32 %v5969_v32, %v1689_v24  ;;  %v1775_v62 = vsub.f32 %v5970_v40, %v1689_v24  ;;  %1992 = vadd.xlane.f32.xlu1 %v5289_v27  ;;  %v5400_v23 = vadd.f32 %v4061_v15, %v4059_v58  ;;  %v5973_v32 = vld [vmem:[#allocation50_spill] sm:$0xff] }
 0x2f3   : > { %v4065_v29 = vpop.eup %4064  ;;  %v1694_v50 = vpop.permute.xlu0 %1693  ;;  %2001 = vadd.xlane.f32.xlu0 %v5321_v53  ;;  %v2387_v33 = vpack.c.bf16 %v4063_v31, %v4059_v58 }
 0x2f4   : > { %v1886_v44 = vmul.f32 1.442695, %v1774_v1  ;;  %v1888_v54 = vmul.f32 1.442695, %v1775_v62  ;;  %v1776_v59 = vsub.f32 %v5971_v28, %v1694_v50  ;;  %v1777_v13 = vsub.f32 %v5972_v52, %v1694_v50 }
 0x2f5   : > { %v2388_v7 = vpack.c.bf16 %v4065_v29, %v4061_v15  ;;  %v5405_v39 = vadd.f32 %v4065_v29, %v4063_v31  ;;  %v5974_v31 = vld [vmem:[#allocation51_spill] sm:$0xff] }
 0x2f6   : > { %4074 = vpow2.f32 %v1886_v44  ;;  %v1890_v8 = vmul.f32 1.442695, %v1776_v59  ;;  %v1892_v14 = vmul.f32 1.442695, %v1777_v13  ;;  %1998 = vadd.xlane.f32.xlu1 %v5313_v35  ;;  %v5975_v44 = vld [vmem:[#allocation52_spill] sm:$0xff] }
 0x2f7   : > { %4076 = vpow2.f32 %v1888_v54  ;;  %2639 = vmatprep.mubr.bf16.mxu1 %v2388_v7  ;;  %2007 = vadd.xlane.f32.xlu0 %v5337_v56 }
 0x2f8   : > { %v4067_v27 = vpop.eup %4066  ;;  %4078 = vpow2.f32 %v1890_v8 }
 0x2f9   : > { %v4069_v53 = vpop.eup %4068  ;;  %4080 = vpow2.f32 %v1892_v14  ;;  %2640 = vmatmul.mubr.bf16.gmra.mrb[40].mxu1 %v2387_v33  ;;  %v1699_v58 = vpop.permute.xlu1 %1698  ;;  %v5976_v33 = vld [vmem:[#allocation53_spill] sm:$0xff] }
 0x2fa   : > { %v4071_v24 = vpop.eup %4070  ;;  %v1778_v15 = vsub.f32 %v5973_v32, %v1699_v58  ;;  %v1779_v1 = vsub.f32 %v5974_v31, %v1699_v58  ;;  %2004 = vadd.xlane.f32.xlu1 %v5331_v41  ;;  %v5412_v40 = vadd.f32 %v4069_v53, %v4067_v27  ;;  %v5978_v58 = vld [vmem:[#allocation55_spill] sm:$0xff] }
 0x2fb   : > { %v4073_v35 = vpop.eup %4072  ;;  %v1704_v62 = vpop.permute.xlu0 %1703  ;;  %2013 = vadd.xlane.f32.xlu0 %v5355_v9  ;;  %v2389_v56 = vpack.c.bf16 %v4071_v24, %v4067_v27  ;;  %v5977_v27 = vld [vmem:[#allocation54_spill] sm:$0xff] }
 0x2fc   : > { %v1894_v29 = vmul.f32 1.442695, %v1778_v15  ;;  %v1896_v50 = vmul.f32 1.442695, %v1779_v1  ;;  %v1780_v54 = vsub.f32 %v5975_v44, %v1704_v62  ;;  %v1781_v28 = vsub.f32 %v5976_v33, %v1704_v62 }
 0x2fd   : > { %v2390_v59 = vpack.c.bf16 %v4073_v35, %v4069_v53  ;;  %v5417_v52 = vadd.f32 %v4073_v35, %v4071_v24  ;;  %v5979_v35 = vld [vmem:[#allocation56_spill] sm:$0xff] }
 0x2fe   : > { %4082 = vpow2.f32 %v1894_v29  ;;  %v1898_v13 = vmul.f32 1.442695, %v1780_v54  ;;  %v1900_v7 = vmul.f32 1.442695, %v1781_v28  ;;  %2010 = vadd.xlane.f32.xlu1 %v5346_v51  ;;  %v5980_v29 = vld [vmem:[#allocation57_spill] sm:$0xff] }
 0x2ff   : > { %4084 = vpow2.f32 %v1896_v50  ;;  %2647 = vmatprep.mubr.bf16.mxu1 %v2390_v59  ;;  %2019 = vadd.xlane.f32.xlu0 %v5363_v2 }
 0x300   : > { %v4075_v41 = vpop.eup %4074  ;;  %4086 = vpow2.f32 %v1898_v13  ;;  %v5981_v13 = vld [vmem:[#allocation58_spill] sm:$0xff] }
 0x301   : > { %v4077_v9 = vpop.eup %4076  ;;  %4088 = vpow2.f32 %v1900_v7  ;;  %2648 = vmatmul.mubr.bf16.gmra.mrb[44].mxu1 %v2389_v56  ;;  %v1709_v8 = vpop.permute.xlu1 %1708 }
 0x302   : > { %v4079_v14 = vpop.eup %4078  ;;  %v1782_v53 = vsub.f32 %v5977_v27, %v1709_v8  ;;  %v1783_v24 = vsub.f32 %v5978_v58, %v1709_v8  ;;  %2016 = vadd.xlane.f32.xlu1 %v5359_v5  ;;  %v2054_v32 = vadd.f32 %v4077_v9, %v4075_v41  ;;  %v5983_v58 = vld [vmem:[#allocation60_spill] sm:$0xff] }
 0x303   : > { %v4081_v15 = vpop.eup %4080  ;;  %v1714_v51 = vpop.permute.xlu0 %1713  ;;  %2025 = vadd.xlane.f32.xlu0 %v5371_v25  ;;  %v2391_v31 = vpack.c.bf16 %v4079_v14, %v4075_v41  ;;  %v5982_v41 = vld [vmem:[#allocation59_spill] sm:$0xff] }
 0x304   : > { %v1902_v2 = vmul.f32 1.442695, %v1782_v53  ;;  %v1904_v1 = vmul.f32 1.442695, %v1783_v24  ;;  %v1784_v62 = vsub.f32 %v5979_v35, %v1714_v51  ;;  %v1785_v56 = vsub.f32 %v5980_v29, %v1714_v51 }
 0x305   : > { %v2392_v50 = vpack.c.bf16 %v4081_v15, %v4077_v9  ;;  %v5427_v44 = vadd.f32 %v4081_v15, %v4079_v14  ;;  %v5984_v15 = vld [vmem:[#allocation61_spill] sm:$0xff] }
 0x306   : > { %4090 = vpow2.f32 %v1902_v2  ;;  %v1906_v54 = vmul.f32 1.442695, %v1784_v62  ;;  %v1908_v33 = vmul.f32 1.442695, %v1785_v56  ;;  %2022 = vadd.xlane.f32.xlu1 %v5367_v16 }
 0x307   : > { %4092 = vpow2.f32 %v1904_v1  ;;  %2655 = vmatprep.mubr.bf16.mxu1 %v2392_v50  ;;  %2031 = vadd.xlane.f32.xlu0 %v5379_v38 }
 0x308   : > { %v4083_v5 = vpop.eup %4082  ;;  %4094 = vpow2.f32 %v1906_v54 }
 0x309   : > { %v4085_v25 = vpop.eup %4084  ;;  %4096 = vpow2.f32 %v1908_v33  ;;  %2656 = vmatmul.mubr.bf16.gmra.mrb[48].mxu1 %v2391_v31  ;;  %v1719_v28 = vpop.permute.xlu1 %1718 }
 0x30a   : > { %v4087_v59 = vpop.eup %4086  ;;  %v1786_v7 = vsub.f32 %v5981_v13, %v1719_v28  ;;  %v1787_v9 = vsub.f32 %v5982_v41, %v1719_v28  ;;  %2028 = vadd.xlane.f32.xlu1 %v5375_v10  ;;  %v2060_v8 = vadd.f32 %v4085_v25, %v4083_v5 }
 0x30b   : > { %v4089_v14 = vpop.eup %4088  ;;  %v1724_v16 = vpop.permute.xlu0 %1723  ;;  %2037 = vadd.xlane.f32.xlu0 %v5388_v21  ;;  %v2393_v27 = vpack.c.bf16 %v4087_v59, %v4083_v5 }
 0x30c   : > { %v1910_v38 = vmul.f32 1.442695, %v1786_v7  ;;  %v1912_v53 = vmul.f32 1.442695, %v1787_v9  ;;  %v1788_v24 = vsub.f32 %v5983_v58, %v1724_v16  ;;  %v1789_v51 = vsub.f32 %v5984_v15, %v1724_v16 }
 0x30d   : > { %v2394_v31 = vpack.c.bf16 %v4089_v14, %v4085_v25  ;;  %v2063_v2 = vadd.f32 %v4089_v14, %v4087_v59  ;;  %v5445_v7 = vpop.permute.xlu1 %2182  ;;  %v5985_v9 = vsub.f32 %v5125_v12, %v5139_v30 }
 0x30e   : > { %4098 = vpow2.f32 %v1910_v38  ;;  %v1914_v1 = vmul.f32 1.442695, %v1788_v24  ;;  %v1916_v35 = vmul.f32 1.442695, %v1789_v51  ;;  %2034 = vadd.xlane.f32.xlu1 %v5383_v63 }
 0x30f   : > { %4100 = vpow2.f32 %v1912_v53  ;;  %2663 = vmatprep.mubr.bf16.mxu1 %v2394_v31  ;;  %2043 = vadd.xlane.f32.xlu0 %v5400_v23  ;;  %v5443_v59 = vpop.permute.xlu0 %2177 }
 0x310   : > { %v4091_v10 = vpop.eup %4090  ;;  %4102 = vpow2.f32 %v1914_v1 }
 0x311   : > { %v4093_v21 = vpop.eup %4092  ;;  %4104 = vpow2.f32 %v1916_v35  ;;  %2664 = vmatmul.mubr.bf16.gmra.mrb[52].mxu1 %v2393_v27 }
 0x312   : > { %v4095_v62 = vpop.eup %4094  ;;  %2040 = vadd.xlane.f32.xlu1 %v5393_v11  ;;  %v2066_v29 = vadd.f32 %v4093_v21, %v4091_v10 }
 0x313   : > { %v4097_v56 = vpop.eup %4096  ;;  %2049 = vadd.xlane.f32.xlu0 %v5412_v40  ;;  %v2395_v50 = vpack.c.bf16 %v4095_v62, %v4091_v10 }
 0x314   : > { %v2396_v54 = vpack.c.bf16 %v4097_v56, %v4093_v21  ;;  %v2069_v33 = vadd.f32 %v4097_v56, %v4095_v62 }
 0x316   : > { %2671 = vmatprep.mubr.bf16.mxu1 %v2396_v54  ;;  %2046 = vadd.xlane.f32.xlu1 %v5405_v39  ;;  %v5448_v39 = vpop.permute.xlu0 %2192 }
 0x317   : > { %2055 = vadd.xlane.f32.xlu0 %v2054_v32  ;;  %v5450_v32 = vpop.permute.xlu1 %2187 }
 0x318   : > { %v4099_v63 = vpop.eup %4098 }
 0x319   : > { %v4101_v23 = vpop.eup %4100  ;;  %2672 = vmatmul.mubr.bf16.gmra.mrb[56].mxu1 %v2395_v50 }
 0x31a   : > { %v4103_v5 = vpop.eup %4102  ;;  %2052 = vadd.xlane.f32.xlu1 %v5417_v52  ;;  %v2072_v25 = vadd.f32 %v4101_v23, %v4099_v63  ;;  %v5452_v52 = vpop.permute.xlu0 %2202 }
 0x31b   : > { %v4105_v28 = vpop.eup %4104  ;;  %2061 = vadd.xlane.f32.xlu0 %v2060_v8  ;;  %v2397_v11 = vpack.c.bf16 %v4103_v5, %v4099_v63  ;;  %v5454_v41 = vpop.permute.xlu1 %2197  ;;  %v1564_v8 = vmul.f32 1.442695, %v5985_v9  ;;  %v1919_v63 = vld [vmem:[#allocation3 + $0x8] sm:$0xff]  ;;  %v1918_v9 = vld [vmem:[#allocation3] sm:$0xff] }
 0x31c   : > { %v2398_v40 = vpack.c.bf16 %v4105_v28, %v4101_v23  ;;  %v2075_v13 = vadd.f32 %v4105_v28, %v4103_v5  ;;  %v1951_v5 = vmul.f32 %v5153_v18, %v1919_v63  ;;  %v1920_v28 = vld [vmem:[#allocation3 + $0x10] sm:$0xff]  ;;  %v1921_v63 = vld [vmem:[#allocation3 + $0x18] sm:$0xff] }
 0x31d   : > { %4106 = vpow2.f32 %v1564_v8 }
 0x31e   : > { %2679 = vmatprep.mubr.bf16.mxu1 %v2398_v40  ;;  %2058 = vadd.xlane.f32.xlu1 %v5427_v44  ;;  %v5459_v44 = vpop.permute.xlu0 %2212 }
 0x31f   : > { %2067 = vadd.xlane.f32.xlu0 %v2066_v29  ;;  %v5461_v14 = vpop.permute.xlu1 %2207 }
 0x321   : > { %2680 = vmatmul.mubr.bf16.gmra.mrb[60].mxu1 %v2397_v11 }
 0x322   : > { %2064 = vadd.xlane.f32.xlu1 %v2063_v2  ;;  %v5463_v16 = vpop.permute.xlu0 %2222 }
 0x323   : > { %2073 = vadd.xlane.f32.xlu0 %v2072_v25  ;;  %v5465_v27 = vpop.permute.xlu1 %2217 }
 0x326   : > { %2070 = vadd.xlane.f32.xlu1 %v2069_v33  ;;  %v5470_v53 = vpop.permute.xlu0 %2232 }
 0x327   : > { %v5467_v38 = vpop.eup %4106  ;;  %v5472_v58 = vpop.permute.xlu1 %2227 }
 0x32a   : > { %2076 = vadd.xlane.f32.xlu1 %v2075_v13  ;;  %v5474_v12 = vpop.permute.xlu0 %2242  ;;  %v1952_v13 = vmul.f32 %v5171_v36, %v1920_v28  ;;  %v2335_v36 = vmul.f32 0.0, %v5443_v59 }
 0x32b   : > { %v5476_v30 = vpop.permute.xlu1 %2237 }
 0x32e   : > { %v5478_v24 = vpop.permute.xlu0 %2252 }
 0x32f   : > { %v5480_v15 = vpop.permute.xlu1 %2247 }
 0x332   : > { %v5482_v51 = vpop.permute.xlu0 %2262 }
 0x333   : > { %v5484_v31 = vpop.permute.xlu1 %2257 }
 0x336   : > { %v5486_v2 = vpop.permute.xlu0 %2272 }
 0x337   : > { %v5488_v1 = vpop.permute.xlu1 %2267 }
 0x339   : > { %2332 = vperm.xlu0 %3866, %v5467_v38  }
 0x33a   : > { %v5490_v35 = vpop.permute.xlu0 %2282 }
 0x33b   : > { %v5492_v10 = vpop.permute.xlu1 %2277 }
 0x33e   : > { %v5494_v21 = vpop.permute.xlu0 %2292 }
 0x33f   : > { %5986 = vst [vmem:[#allocation65_spill] sm:$0xff] %v5494_v21  ;;  %v5496_v62 = vpop.permute.xlu1 %2287 }
 0x342   : > { %v5498_v29 = vpop.permute.xlu0 %2302 }
 0x343   : > { %5987 = vst [vmem:[#allocation69_spill] sm:$0xff] %v5498_v29  ;;  %v5500_v56 = vpop.permute.xlu1 %2297 }
 0x344   : > { %5988 = vst [vmem:[#allocation67_spill] sm:$0xff] %v5500_v56 }
 0x346   : > { %v5502_v50 = vpop.permute.xlu0 %2312 }
 0x347   : > { %5989 = vst [vmem:[#allocation72_spill] sm:$0xff] %v5502_v50  ;;  %v5504_v54 = vpop.permute.xlu1 %2307  ;;  %v1922_v50 = vld [vmem:[#allocation3 + $0x20] sm:$0xff] }
 0x348   : > { %5990 = vst [vmem:[#allocation70_spill] sm:$0xff] %v5504_v54  ;;  %v1954_v18 = vmul.f32 %v5185_v57, %v1922_v50 }
 0x34a   : > { %v5506_v33 = vpop.permute.xlu0 %2322 }
 0x34b   : > { %5991 = vst [vmem:[#allocation10_spill] sm:$0xff] %v5506_v33  ;;  %v5508_v23 = vpop.permute.xlu1 %2317  ;;  %v1950_v33 = vmul.f32 %v5162_v26, %v1918_v9  ;;  %v1953_v26 = vmul.f32 %v5179_v0, %v1921_v63 }
 0x34c   : > { %5992 = vst [vmem:[#allocation11_spill] sm:$0xff] %v5508_v23 }
 0x34f   : > { %v5511_v40 = vpop.permute.xlu1 %2327 }
 0x350   : > { %5993 = vst [vmem:[#allocation73_spill] sm:$0xff] %v5511_v40  ;;  %v1924_v40 = vld [vmem:[#allocation3 + $0x30] sm:$0xff] }
 0x374   : > { %v1987_v25 = vpop.xlane.xlu0 %1986 }
 0x375   : > { %v2079_v11 = vadd.f32 %v1987_v25, %v1951_v5 }
 0x377   : > { %2112 = vst.msk [vmem:[#allocation3 + $0x8] sm:$0xff] %vm764_vm0, %v2079_v11 }
 0x378   : > { %v1990_v8 = vpop.xlane.xlu0 %1989 }
 0x379   : > { %v2080_v54 = vadd.f32 %v1990_v8, %v1952_v13 }
 0x37b   : > { %2113 = vst.msk [vmem:[#allocation3 + $0x10] sm:$0xff] %vm764_vm0, %v2080_v54  ;;  %v1984_v23 = vpop.xlane.xlu1 %1983  ;;  %v1956_v54 = vmul.f32 %v5195_v55, %v1924_v40  ;;  %v1925_v40 = vld [vmem:[#allocation3 + $0x38] sm:$0xff] }
 0x37c   : > { %v3726_v29 = vpop.f32.mrb[0].mxu1  ;;  %v2078_v5 = vadd.f32 %v1984_v23, %v1950_v33  ;;  %v1996_v25 = vpop.xlane.xlu0 %1995  ;;  %v1923_v33 = vld [vmem:[#allocation3 + $0x28] sm:$0xff]  ;;  %v2336_v23 = vmul.f32 0.0, %v5445_v7 }
 0x37d   : > { %v3727_v56 = vpop.f32.mrb[1].mxu1  ;;  %v2082_v11 = vadd.f32 %v1996_v25, %v1954_v18  ;;  %v1926_v25 = vld [vmem:[#allocation3 + $0x40] sm:$0xff]  ;;  %v1955_v0 = vmul.f32 %v5193_v47, %v1923_v33 }
 0x37e   : > { %v2820_v28 = vld [vmem:[#allocation3 + $0x8] sm:$0xff]  ;;  %2111 = vst.msk [vmem:[#allocation3] sm:$0xff] %vm764_vm0, %v2078_v5  ;;  %v3728_v13 = vadd.f32 %v3727_v56, %v3726_v29  ;;  %v3729_v8 = vpop.f32.mrb[2].mxu1  ;;  %v1958_v55 = vmul.f32 %v5206_v22, %v1926_v25 }
 0x37f   : > { %4108 = vrcp.f32 %v2820_v28  ;;  %2115 = vst.msk [vmem:[#allocation3 + $0x20] sm:$0xff] %vm764_vm0, %v2082_v11  ;;  %v3730_v57 = vpop.f32.mrb[3].mxu1  ;;  %v1993_v50 = vpop.xlane.xlu1 %1992  ;;  %v1928_v28 = vld [vmem:[#allocation3 + $0x50] sm:$0xff] }
 0x380   : > { %v3731_v9 = vadd.f32 %v3730_v57, %v3729_v8  ;;  %v2081_v18 = vadd.f32 %v1993_v50, %v1953_v26  ;;  %v2002_v59 = vpop.xlane.xlu0 %2001  ;;  %v5524_v21 = vadd.f32 %v3728_v13, %v2335_v36  ;;  %v2337_v26 = vmul.f32 0.0, %v5450_v32 }
 0x381   : > { %v2084_v29 = vadd.f32 %v2002_v59, %v1956_v54  ;;  %v1957_v54 = vmul.f32 %v5201_v19, %v1925_v40 }
 0x382   : > { %2114 = vst.msk [vmem:[#allocation3 + $0x18] sm:$0xff] %vm764_vm0, %v2081_v18  ;;  %v5528_v56 = vadd.f32 %v3731_v9, %v2336_v23  ;;  %v2821_v57 = vld [vmem:[#allocation3 + $0x10] sm:$0xff]  ;;  %v1960_v23 = vmul.f32 %v5213_v4, %v1928_v28  ;;  %v1927_v9 = vld [vmem:[#allocation3 + $0x48] sm:$0xff]  ;;  %v2338_v18 = vmul.f32 0.0, %v5448_v39 }
 0x383   : > { %2117 = vst.msk [vmem:[#allocation3 + $0x30] sm:$0xff] %vm764_vm0, %v2084_v29  ;;  %v1999_v63 = vpop.xlane.xlu1 %1998  ;;  %v1930_v29 = vld [vmem:[#allocation3 + $0x60] sm:$0xff]  ;;  %v1959_v4 = vmul.f32 %v5211_v49, %v1927_v9 }
 0x384   : > { %v3732_v7 = vpop.f32.mrb[4].mxu1  ;;  %v2083_v5 = vadd.f32 %v1999_v63, %v1955_v0  ;;  %v2008_v11 = vpop.xlane.xlu0 %2007 }
 0x385   : > { %v2819_v8 = vld [vmem:[#allocation3] sm:$0xff]  ;;  %v3733_v36 = vpop.f32.mrb[5].mxu1  ;;  %v2086_v13 = vadd.f32 %v2008_v11, %v1958_v55  ;;  %v1929_v11 = vld [vmem:[#allocation3 + $0x58] sm:$0xff] }
 0x386   : > { %4110 = vrcp.f32 %v2819_v8  ;;  %2116 = vst.msk [vmem:[#allocation3 + $0x28] sm:$0xff] %vm764_vm0, %v2083_v5  ;;  %v3734_v47 = vadd.f32 %v3733_v36, %v3732_v7  ;;  %v3735_v50 = vpop.f32.mrb[6].mxu1  ;;  %v2823_v19 = vld [vmem:[#allocation3 + $0x20] sm:$0xff]  ;;  %v1962_v5 = vmul.f32 %v5224_v48, %v1930_v29 }
 0x387   : > { %2119 = vst.msk [vmem:[#allocation3 + $0x40] sm:$0xff] %vm764_vm0, %v2086_v13  ;;  %v3736_v22 = vpop.f32.mrb[7].mxu1  ;;  %v2005_v33 = vpop.xlane.xlu1 %2004  ;;  %4112 = vrcp.f32 %v2821_v57  ;;  %v1932_v13 = vld [vmem:[#allocation3 + $0x70] sm:$0xff] }
 0x388   : > { %v3737_v59 = vadd.f32 %v3736_v22, %v3735_v50  ;;  %v2085_v25 = vadd.f32 %v2005_v33, %v1957_v54  ;;  %v2014_v32 = vpop.xlane.xlu0 %2013  ;;  %v5538_v0 = vadd.f32 %v3734_v47, %v2337_v26  ;;  %v2339_v50 = vmul.f32 0.0, %v5454_v41 }
 0x389   : > { %v4109_v63 = vpop.eup %4108  ;;  %v2822_v55 = vld [vmem:[#allocation3 + $0x18] sm:$0xff]  ;;  %v2088_v7 = vadd.f32 %v2014_v32, %v1960_v23  ;;  %v1961_v33 = vmul.f32 %v5219_v20, %v1929_v11  ;;  %v1964_v9 = vmul.f32 %v5238_v61, %v1932_v13 }
 0x38a   : > { %4114 = vrcp.f32 %v2822_v55  ;;  %2118 = vst.msk [vmem:[#allocation3 + $0x38] sm:$0xff] %vm764_vm0, %v2085_v25  ;;  %2890 = vperm.xlu0 %3866, %v4109_v63   ;;  %v5542_v40 = vadd.f32 %v3737_v59, %v2338_v18  ;;  %v2825_v54 = vld [vmem:[#allocation3 + $0x30] sm:$0xff]  ;;  %v1931_v18 = vld [vmem:[#allocation3 + $0x68] sm:$0xff]  ;;  %v2340_v25 = vmul.f32 0.0, %v5452_v52  ;;  %v1934_v63 = vld [vmem:[#allocation3 + $0x80] sm:$0xff] }
 0x38b   : > { %2121 = vst.msk [vmem:[#allocation3 + $0x50] sm:$0xff] %vm764_vm0, %v2088_v7  ;;  %v2011_v39 = vpop.xlane.xlu1 %2010  ;;  %4116 = vrcp.f32 %v2823_v19  ;;  %v1963_v61 = vmul.f32 %v5229_v43, %v1931_v18  ;;  %v1933_v11 = vld [vmem:[#allocation3 + $0x78] sm:$0xff]  ;;  %v2341_v43 = vmul.f32 0.0, %v5461_v14  ;;  %v1935_v18 = vld [vmem:[#allocation3 + $0x88] sm:$0xff] }
 0x38c   : > { %v3738_v28 = vpop.f32.mrb[8].mxu1  ;;  %v2087_v8 = vadd.f32 %v2011_v39, %v1959_v4  ;;  %v2020_v36 = vpop.xlane.xlu0 %2019 }
 0x38d   : > { %v2824_v26 = vld [vmem:[#allocation3 + $0x28] sm:$0xff]  ;;  %v3739_v57 = vpop.f32.mrb[9].mxu1  ;;  %v2090_v47 = vadd.f32 %v2020_v36, %v1962_v5  ;;  %v1966_v5 = vmul.f32 %v5253_v3, %v1934_v63 }
 0x38e   : > { %4118 = vrcp.f32 %v2824_v26  ;;  %2120 = vst.msk [vmem:[#allocation3 + $0x48] sm:$0xff] %vm764_vm0, %v2087_v8  ;;  %v3740_v49 = vadd.f32 %v3739_v57, %v3738_v28  ;;  %v3741_v22 = vpop.f32.mrb[10].mxu1  ;;  %v2827_v20 = vld [vmem:[#allocation3 + $0x40] sm:$0xff]  ;;  %v1936_v26 = vld [vmem:[#allocation3 + $0x90] sm:$0xff] }
 0x38f   : > { %2123 = vst.msk [vmem:[#allocation3 + $0x60] sm:$0xff] %vm764_vm0, %v2090_v47  ;;  %v3742_v48 = vpop.f32.mrb[11].mxu1  ;;  %v2017_v23 = vpop.xlane.xlu1 %2016  ;;  %4120 = vrcp.f32 %v2825_v54 }
 0x390   : > { %v4111_v59 = vpop.eup %4110  ;;  %v3743_v32 = vadd.f32 %v3742_v48, %v3741_v22  ;;  %v2089_v41 = vadd.f32 %v2017_v23, %v1961_v33  ;;  %v2026_v29 = vpop.xlane.xlu0 %2025  ;;  %v5552_v55 = vadd.f32 %v3740_v49, %v2339_v50  ;;  %v1965_v22 = vmul.f32 %v5245_v37, %v1933_v11 }
 0x391   : > { %v2826_v7 = vld [vmem:[#allocation3 + $0x38] sm:$0xff]  ;;  %v2092_v19 = vadd.f32 %v2026_v29, %v1964_v9  ;;  %2885 = vperm.xlu1 %3867, %v4111_v59   ;;  %v4113_v39 = vpop.eup %4112  ;;  %v1968_v9 = vmul.f32 %v5270_v42, %v1936_v26  ;;  %v1938_v29 = vld [vmem:[#allocation3 + $0xa0] sm:$0xff]  ;;  %v1967_v42 = vmul.f32 %v5258_v46, %v1935_v18  ;;  %v2343_v46 = vmul.f32 0.0, %v5465_v27 }
 0x392   : > { %4122 = vrcp.f32 %v2826_v7  ;;  %2122 = vst.msk [vmem:[#allocation3 + $0x58] sm:$0xff] %vm764_vm0, %v2089_v41  ;;  %v5556_v4 = vadd.f32 %v3743_v32, %v2340_v25  ;;  %v2829_v54 = vld [vmem:[#allocation3 + $0x50] sm:$0xff]  ;;  %v2342_v25 = vmul.f32 0.0, %v5459_v44 }
 0x393   : > { %2125 = vst.msk [vmem:[#allocation3 + $0x70] sm:$0xff] %vm764_vm0, %v2092_v19  ;;  %v2023_v52 = vpop.xlane.xlu1 %2022  ;;  %4124 = vrcp.f32 %v2827_v20 }
 0x394   : > { %v4115_v28 = vpop.eup %4114  ;;  %v3744_v8 = vpop.f32.mrb[12].mxu1  ;;  %v2091_v36 = vadd.f32 %v2023_v52, %v1963_v61  ;;  %v1937_v52 = vld [vmem:[#allocation3 + $0x98] sm:$0xff] }
 0x395   : > { %v2032_v13 = vpop.xlane.xlu0 %2031  ;;  %v2828_v57 = vld [vmem:[#allocation3 + $0x48] sm:$0xff]  ;;  %v3745_v47 = vpop.f32.mrb[13].mxu1  ;;  %2895 = vperm.xlu1 %3867, %v4113_v39   ;;  %2900 = vperm.xlu0 %3866, %v4115_v28   ;;  %v1970_v39 = vmul.f32 %v5282_v45, %v1938_v29 }
 0x396   : > { %v2094_v50 = vadd.f32 %v2032_v13, %v1966_v5  ;;  %4126 = vrcp.f32 %v2828_v57  ;;  %2124 = vst.msk [vmem:[#allocation3 + $0x68] sm:$0xff] %vm764_vm0, %v2091_v36  ;;  %v3746_v49 = vadd.f32 %v3745_v47, %v3744_v8  ;;  %v3747_v3 = vpop.f32.mrb[14].mxu1  ;;  %v4117_v33 = vpop.eup %4116  ;;  %v2831_v19 = vld [vmem:[#allocation3 + $0x60] sm:$0xff]  ;;  %v1940_v36 = vld [vmem:[#allocation3 + $0xb0] sm:$0xff] }
 0x397   : > { %v3748_v48 = vpop.f32.mrb[15].mxu1  ;;  %v2029_v23 = vpop.xlane.xlu1 %2028  ;;  %4128 = vrcp.f32 %v2829_v54 }
 0x398   : > { %2127 = vst.msk [vmem:[#allocation3 + $0x80] sm:$0xff] %vm764_vm0, %v2094_v50  ;;  %v4119_v59 = vpop.eup %4118  ;;  %v3749_v14 = vadd.f32 %v3748_v48, %v3747_v3  ;;  %v2093_v32 = vadd.f32 %v2029_v23, %v1965_v22  ;;  %v5566_v63 = vadd.f32 %v3746_v49, %v2341_v43  ;;  %v1969_v43 = vmul.f32 %v5277_v60, %v1937_v52 }
 0x399   : > { %v2038_v41 = vpop.xlane.xlu0 %2037  ;;  %v2830_v7 = vld [vmem:[#allocation3 + $0x58] sm:$0xff]  ;;  %2905 = vperm.xlu1 %3867, %v4117_v33   ;;  %2910 = vperm.xlu0 %3866, %v4119_v59   ;;  %v4121_v44 = vpop.eup %4120  ;;  %v1972_v22 = vmul.f32 %v5299_v34, %v1940_v36  ;;  %v1939_v33 = vld [vmem:[#allocation3 + $0xa8] sm:$0xff]  ;;  %v2344_v23 = vmul.f32 0.0, %v5463_v16  ;;  %v1942_v59 = vld [vmem:[#allocation3 + $0xc0] sm:$0xff] }
 0x39a   : > { %v2096_v37 = vadd.f32 %v2038_v41, %v1968_v9  ;;  %4130 = vrcp.f32 %v2830_v7  ;;  %2126 = vst.msk [vmem:[#allocation3 + $0x78] sm:$0xff] %vm764_vm0, %v2093_v32  ;;  %v5570_v20 = vadd.f32 %v3749_v14, %v2342_v25  ;;  %v2833_v47 = vld [vmem:[#allocation3 + $0x70] sm:$0xff]  ;;  %v1971_v34 = vmul.f32 %v5287_v6, %v1939_v33 }
 0x39b   : > { %v2035_v61 = vpop.xlane.xlu1 %2034  ;;  %4132 = vrcp.f32 %v2831_v19  ;;  %v1974_v7 = vmul.f32 %v5311_v17, %v1942_v59  ;;  %v2345_v6 = vmul.f32 0.0, %v5472_v58  ;;  %v5994_v36 = vld [vmem:[#allocation62_spill] sm:$0xff] }
 0x39c   : > { %2129 = vst.msk [vmem:[#allocation3 + $0x90] sm:$0xff] %vm764_vm0, %v2096_v37  ;;  %v4123_v5 = vpop.eup %4122  ;;  %v3750_v11 = vpop.f32.mrb[16].mxu1  ;;  %v2095_v28 = vadd.f32 %v2035_v61, %v1967_v42  ;;  %v1941_v37 = vld [vmem:[#allocation3 + $0xb8] sm:$0xff] }
 0x39d   : > { %v2044_v8 = vpop.xlane.xlu0 %2043  ;;  %v2832_v13 = vld [vmem:[#allocation3 + $0x68] sm:$0xff]  ;;  %v3751_v26 = vpop.f32.mrb[17].mxu1  ;;  %2915 = vperm.xlu1 %3867, %v4121_v44   ;;  %2920 = vperm.xlu0 %3866, %v4123_v5  }
 0x39e   : > { %v2098_v57 = vadd.f32 %v2044_v8, %v1970_v39  ;;  %4134 = vrcp.f32 %v2832_v13  ;;  %2128 = vst.msk [vmem:[#allocation3 + $0x88] sm:$0xff] %vm764_vm0, %v2095_v28  ;;  %v3752_v50 = vadd.f32 %v3751_v26, %v3750_v11  ;;  %v3753_v45 = vpop.f32.mrb[18].mxu1  ;;  %v4125_v54 = vpop.eup %4124  ;;  %v1944_v39 = vld [vmem:[#allocation3 + $0xd0] sm:$0xff]  ;;  %v1973_v13 = vmul.f32 %v5994_v36, %v1941_v37 }
 0x39f   : > { %v3754_v49 = vpop.f32.mrb[19].mxu1  ;;  %v2041_v3 = vpop.xlane.xlu1 %2040  ;;  %4136 = vrcp.f32 %v2833_v47  ;;  %v2835_v32 = vld [vmem:[#allocation3 + $0x80] sm:$0xff] }
 0x3a0   : > { %2131 = vst.msk [vmem:[#allocation3 + $0xa0] sm:$0xff] %vm764_vm0, %v2098_v57  ;;  %v4127_v48 = vpop.eup %4126  ;;  %v3755_v27 = vadd.f32 %v3754_v49, %v3753_v45  ;;  %v2097_v9 = vadd.f32 %v2041_v3, %v1969_v43  ;;  %v5580_v25 = vadd.f32 %v3752_v50, %v2343_v46  ;;  %v5995_v47 = vld [vmem:[#allocation68_spill] sm:$0xff]  ;;  %v1943_v45 = vld [vmem:[#allocation3 + $0xc8] sm:$0xff] }
 0x3a1   : > { %v2050_v18 = vpop.xlane.xlu0 %2049  ;;  %v2834_v14 = vld [vmem:[#allocation3 + $0x78] sm:$0xff]  ;;  %2925 = vperm.xlu1 %3867, %v4125_v54   ;;  %2930 = vperm.xlu0 %3866, %v4127_v48   ;;  %v4129_v16 = vpop.eup %4128  ;;  %v1976_v50 = vmul.f32 %v5995_v47, %v1944_v39  ;;  %v2346_v54 = vmul.f32 0.0, %v5470_v53  ;;  %v2347_v39 = vmul.f32 0.0, %v5476_v30  ;;  %v2348_v47 = vmul.f32 0.0, %v5474_v12 }
 0x3a2   : > { %v2100_v60 = vadd.f32 %v2050_v18, %v1972_v22  ;;  %4138 = vrcp.f32 %v2834_v14  ;;  %2130 = vst.msk [vmem:[#allocation3 + $0x98] sm:$0xff] %vm764_vm0, %v2097_v9  ;;  %v5584_v41 = vadd.f32 %v3755_v27, %v2344_v23  ;;  %v1946_v22 = vld [vmem:[#allocation3 + $0xe0] sm:$0xff] }
 0x3a3   : > { %v2047_v29 = vpop.xlane.xlu1 %2046  ;;  %4140 = vrcp.f32 %v2835_v32  ;;  %v2837_v28 = vld [vmem:[#allocation3 + $0x90] sm:$0xff]  ;;  %v5996_v9 = vld [vmem:[#allocation64_spill] sm:$0xff] }
 0x3a4   : > { %2133 = vst.msk [vmem:[#allocation3 + $0xb0] sm:$0xff] %vm764_vm0, %v2100_v60  ;;  %v4131_v19 = vpop.eup %4130  ;;  %v3756_v42 = vpop.f32.mrb[20].mxu1  ;;  %v2099_v44 = vadd.f32 %v2047_v29, %v1971_v34  ;;  %v1975_v18 = vmul.f32 %v5996_v9, %v1943_v45  ;;  %v5997_v60 = vld [vmem:[#allocation8_spill] sm:$0xff]  ;;  %v1945_v34 = vld [vmem:[#allocation3 + $0xd8] sm:$0xff] }
 0x3a5   : > { %v2056_v61 = vpop.xlane.xlu0 %2055  ;;  %v2836_v52 = vld [vmem:[#allocation3 + $0x88] sm:$0xff]  ;;  %v3757_v5 = vpop.f32.mrb[21].mxu1  ;;  %2935 = vperm.xlu1 %3867, %v4129_v16   ;;  %2940 = vperm.xlu0 %3866, %v4131_v19   ;;  %v1978_v32 = vmul.f32 %v5997_v60, %v1946_v22  ;;  %v1948_v19 = vld [vmem:[#allocation3 + $0xf0] sm:$0xff] }
 0x3a6   : > { %v2102_v11 = vadd.f32 %v2056_v61, %v1974_v7  ;;  %4142 = vrcp.f32 %v2836_v52  ;;  %2132 = vst.msk [vmem:[#allocation3 + $0xa8] sm:$0xff] %vm764_vm0, %v2099_v44  ;;  %v3758_v8 = vadd.f32 %v3757_v5, %v3756_v42  ;;  %v3759_v17 = vpop.f32.mrb[22].mxu1  ;;  %v4133_v26 = vpop.eup %4132 }
 0x3a7   : > { %v3760_v57 = vpop.f32.mrb[23].mxu1  ;;  %v2053_v46 = vpop.xlane.xlu1 %2052  ;;  %4144 = vrcp.f32 %v2837_v28  ;;  %v2839_v27 = vld [vmem:[#allocation3 + $0xa0] sm:$0xff] }
 0x3a8   : > { %2135 = vst.msk [vmem:[#allocation3 + $0xc0] sm:$0xff] %vm764_vm0, %v2102_v11  ;;  %v4135_v43 = vpop.eup %4134  ;;  %v3761_v58 = vadd.f32 %v3760_v57, %v3759_v17  ;;  %v2101_v49 = vadd.f32 %v2053_v46, %v1973_v13  ;;  %v5594_v33 = vadd.f32 %v3758_v8, %v2345_v6  ;;  %v5998_v6 = vld [vmem:[#allocation66_spill] sm:$0xff]  ;;  %v5999_v13 = vld [vmem:[#allocation63_spill] sm:$0xff]  ;;  %v1947_v57 = vld [vmem:[#allocation3 + $0xe8] sm:$0xff] }
 0x3a9   : > { %v2062_v3 = vpop.xlane.xlu0 %2061  ;;  %v2838_v48 = vld [vmem:[#allocation3 + $0x98] sm:$0xff]  ;;  %2945 = vperm.xlu1 %3867, %v4133_v26   ;;  %2950 = vperm.xlu0 %3866, %v4135_v43   ;;  %v4137_v53 = vpop.eup %4136  ;;  %v1977_v28 = vmul.f32 %v5998_v6, %v1945_v34  ;;  %v1980_v26 = vmul.f32 %v5999_v13, %v1948_v19 }
 0x3aa   : > { %v2104_v23 = vadd.f32 %v2062_v3, %v1976_v50  ;;  %4146 = vrcp.f32 %v2838_v48  ;;  %2134 = vst.msk [vmem:[#allocation3 + $0xb8] sm:$0xff] %vm764_vm0, %v2101_v49  ;;  %v5598_v59 = vadd.f32 %v3761_v58, %v2346_v54  ;;  %v6000_v3 = vld [vmem:[#allocation9_spill] sm:$0xff] }
 0x3ab   : > { %v2059_v14 = vpop.xlane.xlu1 %2058  ;;  %4148 = vrcp.f32 %v2839_v27  ;;  %v2841_v52 = vld [vmem:[#allocation3 + $0xb0] sm:$0xff]  ;;  %v1979_v22 = vmul.f32 %v6000_v3, %v1947_v57  ;;  %v1949_v27 = vld [vmem:[#allocation3 + $0xf8] sm:$0xff] }
 0x3ac   : > { %2137 = vst.msk [vmem:[#allocation3 + $0xd0] sm:$0xff] %vm764_vm0, %v2104_v23  ;;  %v4139_v16 = vpop.eup %4138  ;;  %v3762_v29 = vpop.f32.mrb[24].mxu1  ;;  %v2103_v7 = vadd.f32 %v2059_v14, %v1975_v18 }
 0x3ad   : > { %v2068_v37 = vpop.xlane.xlu0 %2067  ;;  %v2840_v42 = vld [vmem:[#allocation3 + $0xa8] sm:$0xff]  ;;  %v3763_v44 = vpop.f32.mrb[25].mxu1  ;;  %2955 = vperm.xlu1 %3867, %v4137_v53   ;;  %2960 = vperm.xlu0 %3866, %v4139_v16  }
 0x3ae   : > { %v2106_v61 = vadd.f32 %v2068_v37, %v1978_v32  ;;  %4150 = vrcp.f32 %v2840_v42  ;;  %2136 = vst.msk [vmem:[#allocation3 + $0xc8] sm:$0xff] %vm764_vm0, %v2103_v7  ;;  %v3764_v5 = vadd.f32 %v3763_v44, %v3762_v29  ;;  %v3765_v11 = vpop.f32.mrb[26].mxu1  ;;  %v4141_v8 = vpop.eup %4140  ;;  %v2349_v32 = vmul.f32 0.0, %v5480_v15 }
 0x3af   : > { %v3766_v17 = vpop.f32.mrb[27].mxu1  ;;  %v2065_v36 = vpop.xlane.xlu1 %2064  ;;  %4152 = vrcp.f32 %v2841_v52  ;;  %v2843_v49 = vld [vmem:[#allocation3 + $0xc0] sm:$0xff]  ;;  %v1981_v7 = vmul.f32 %v5467_v38, %v1949_v27 }
 0x3b0   : > { %2139 = vst.msk [vmem:[#allocation3 + $0xe0] sm:$0xff] %vm764_vm0, %v2106_v61  ;;  %v4143_v46 = vpop.eup %4142  ;;  %v3767_v30 = vadd.f32 %v3766_v17, %v3765_v11  ;;  %v2105_v50 = vadd.f32 %v2065_v36, %v1977_v28  ;;  %v5608_v43 = vadd.f32 %v3764_v5, %v2347_v39  ;;  %v2350_v61 = vmul.f32 0.0, %v5478_v24 }
 0x3b1   : > { %v2074_v45 = vpop.xlane.xlu0 %2073  ;;  %v2842_v54 = vld [vmem:[#allocation3 + $0xb8] sm:$0xff]  ;;  %2965 = vperm.xlu1 %3867, %v4141_v8   ;;  %2970 = vperm.xlu0 %3866, %v4143_v46   ;;  %v4145_v23 = vpop.eup %4144  ;;  %v2351_v36 = vmul.f32 0.0, %v5484_v31 }
 0x3b2   : > { %v2108_v58 = vadd.f32 %v2074_v45, %v1980_v26  ;;  %4154 = vrcp.f32 %v2842_v54  ;;  %2138 = vst.msk [vmem:[#allocation3 + $0xd8] sm:$0xff] %vm764_vm0, %v2105_v50  ;;  %v5612_v48 = vadd.f32 %v3767_v30, %v2348_v47  ;;  %v2352_v50 = vmul.f32 0.0, %v5482_v51 }
 0x3b3   : > { %v2071_v12 = vpop.xlane.xlu1 %2070  ;;  %4156 = vrcp.f32 %v2843_v49  ;;  %v2845_v34 = vld [vmem:[#allocation3 + $0xd0] sm:$0xff] }
 0x3b4   : > { %2141 = vst.msk [vmem:[#allocation3 + $0xf0] sm:$0xff] %vm764_vm0, %v2108_v58  ;;  %v4147_v9 = vpop.eup %4146  ;;  %v3768_v18 = vpop.f32.mrb[28].mxu1  ;;  %v2107_v53 = vadd.f32 %v2071_v12, %v1979_v22  ;;  %v2353_v12 = vmul.f32 0.0, %v5488_v1  ;;  %v2355_v1 = vmul.f32 0.0, %v5492_v10 }
 0x3b5   : > { %v2844_v14 = vld [vmem:[#allocation3 + $0xc8] sm:$0xff]  ;;  %v3769_v60 = vpop.f32.mrb[29].mxu1  ;;  %2975 = vperm.xlu1 %3867, %v4145_v23   ;;  %2980 = vperm.xlu0 %3866, %v4147_v9   ;;  %v4149_v37 = vpop.eup %4148 }
 0x3b6   : > { %4158 = vrcp.f32 %v2844_v14  ;;  %2140 = vst.msk [vmem:[#allocation3 + $0xe8] sm:$0xff] %vm764_vm0, %v2107_v53  ;;  %v3770_v16 = vadd.f32 %v3769_v60, %v3768_v18  ;;  %v3771_v29 = vpop.f32.mrb[30].mxu1  ;;  %v2354_v14 = vmul.f32 0.0, %v5486_v2  ;;  %v2356_v2 = vmul.f32 0.0, %v5490_v35 }
 0x3b7   : > { %v3772_v19 = vpop.f32.mrb[31].mxu1  ;;  %v2077_v42 = vpop.xlane.xlu1 %2076  ;;  %4160 = vrcp.f32 %v2845_v34  ;;  %v2847_v11 = vld [vmem:[#allocation3 + $0xe0] sm:$0xff] }
 0x3b8   : > { %v4151_v44 = vpop.eup %4150  ;;  %v3773_v39 = vadd.f32 %v3772_v19, %v3771_v29  ;;  %v2109_v52 = vadd.f32 %v2077_v42, %v1981_v7  ;;  %v5619_v5 = vadd.f32 %v3770_v16, %v2349_v32 }
 0x3b9   : > { %v2846_v15 = vld [vmem:[#allocation3 + $0xd8] sm:$0xff]  ;;  %2985 = vperm.xlu1 %3867, %v4149_v37   ;;  %2990 = vperm.xlu0 %3866, %v4151_v44   ;;  %v4153_v38 = vpop.eup %4152 }
 0x3ba   : > { %4162 = vrcp.f32 %v2846_v15  ;;  %2142 = vst.msk [vmem:[#allocation3 + $0xf8] sm:$0xff] %vm764_vm0, %v2109_v52  ;;  %v5622_v6 = vadd.f32 %v3773_v39, %v2350_v61 }
 0x3bb   : > { %4164 = vrcp.f32 %v2847_v11  ;;  %v2849_v13 = vld [vmem:[#allocation3 + $0xf0] sm:$0xff] }
 0x3bc   : > { %v4155_v28 = vpop.eup %4154  ;;  %v3774_v8 = vpop.f32.mrb[32].mxu1 }
 0x3bd   : > { %v2848_v17 = vld [vmem:[#allocation3 + $0xe8] sm:$0xff]  ;;  %v3775_v24 = vpop.f32.mrb[33].mxu1  ;;  %2995 = vperm.xlu1 %3867, %v4153_v38   ;;  %3000 = vperm.xlu0 %3866, %v4155_v28   ;;  %v4157_v46 = vpop.eup %4156  ;;  %v2357_v38 = vmul.f32 0.0, %v5496_v62 }
 0x3be   : > { %4166 = vrcp.f32 %v2848_v17  ;;  %v3776_v26 = vadd.f32 %v3775_v24, %v3774_v8  ;;  %v3777_v57 = vpop.f32.mrb[34].mxu1  ;;  %v6001_v24 = vld [vmem:[#allocation65_spill] sm:$0xff] }
 0x3bf   : > { %v3778_v47 = vpop.f32.mrb[35].mxu1  ;;  %4168 = vrcp.f32 %v2849_v13 }
 0x3c0   : > { %v4159_v30 = vpop.eup %4158  ;;  %v3779_v45 = vadd.f32 %v3778_v47, %v3777_v57  ;;  %v5626_v54 = vadd.f32 %v3776_v26, %v2351_v36  ;;  %v2358_v36 = vmul.f32 0.0, %v6001_v24 }
 0x3c1   : > { %v2850_v58 = vld [vmem:[#allocation3 + $0xf8] sm:$0xff]  ;;  %3005 = vperm.xlu1 %3867, %v4157_v46   ;;  %3010 = vperm.xlu0 %3866, %v4159_v30   ;;  %v4161_v31 = vpop.eup %4160 }
 0x3c2   : > { %4170 = vrcp.f32 %v2850_v58  ;;  %v5628_v49 = vadd.f32 %v3779_v45, %v2352_v50  ;;  %v6002_v46 = vld [vmem:[#allocation67_spill] sm:$0xff]  ;;  %v6003_v58 = vld [vmem:[#allocation69_spill] sm:$0xff] }
 0x3c3   : > { %v2359_v47 = vmul.f32 0.0, %v6002_v46 }
 0x3c4   : > { %v4163_v3 = vpop.eup %4162  ;;  %v3780_v22 = vpop.f32.mrb[36].mxu1 }
 0x3c5   : > { %v3781_v23 = vpop.f32.mrb[37].mxu1  ;;  %3015 = vperm.xlu1 %3867, %v4161_v31   ;;  %3020 = vperm.xlu0 %3866, %v4163_v3   ;;  %v4165_v9 = vpop.eup %4164  ;;  %v2360_v31 = vmul.f32 0.0, %v6003_v58 }
 0x3c6   : > { %v3782_v27 = vadd.f32 %v3781_v23, %v3780_v22  ;;  %v3783_v51 = vpop.f32.mrb[38].mxu1 }
 0x3c7   : > { %v3784_v18 = vpop.f32.mrb[39].mxu1 }
 0x3c8   : > { %v4167_v53 = vpop.eup %4166  ;;  %v3785_v60 = vadd.f32 %v3784_v18, %v3783_v51  ;;  %v5632_v32 = vadd.f32 %v3782_v27, %v2353_v12  ;;  %v6004_v27 = vld [vmem:[#allocation70_spill] sm:$0xff] }
 0x3c9   : > { %3025 = vperm.xlu1 %3867, %v4165_v9   ;;  %3030 = vperm.xlu0 %3866, %v4167_v53   ;;  %v4169_v16 = vpop.eup %4168  ;;  %v2361_v51 = vmul.f32 0.0, %v6004_v27 }
 0x3ca   : > { %v5634_v34 = vadd.f32 %v3785_v60, %v2354_v14  ;;  %v6005_v14 = vld [vmem:[#allocation72_spill] sm:$0xff] }
 0x3cb   : > { %v2362_v60 = vmul.f32 0.0, %v6005_v14 }
 0x3cc   : > { %v4171_v29 = vpop.eup %4170  ;;  %v3786_v7 = vpop.f32.mrb[40].mxu1 }
 0x3cd   : > { %v3787_v37 = vpop.f32.mrb[41].mxu1  ;;  %3035 = vperm.xlu1 %3867, %v4169_v16   ;;  %3040 = vperm.xlu0 %3866, %v4171_v29  }
 0x3ce   : > { %v3788_v19 = vadd.f32 %v3787_v37, %v3786_v7  ;;  %v3789_v42 = vpop.f32.mrb[42].mxu1 }
 0x3cf   : > { %v3790_v44 = vpop.f32.mrb[43].mxu1 }
 0x3d0   : > { %v3791_v61 = vadd.f32 %v3790_v44, %v3789_v42  ;;  %v5638_v39 = vadd.f32 %v3788_v19, %v2355_v1  ;;  %v6006_v19 = vld [vmem:[#allocation11_spill] sm:$0xff] }
 0x3d1   : > { %v2363_v42 = vmul.f32 0.0, %v6006_v19 }
 0x3d2   : > { %v5640_v52 = vadd.f32 %v3791_v61, %v2356_v2 }
 0x3d4   : > { %v3792_v15 = vpop.f32.mrb[44].mxu1 }
 0x3d5   : > { %v3793_v11 = vpop.f32.mrb[45].mxu1 }
 0x3d6   : > { %v3794_v28 = vadd.f32 %v3793_v11, %v3792_v15  ;;  %v3795_v8 = vpop.f32.mrb[46].mxu1  ;;  %v6007_v15 = vld [vmem:[#allocation10_spill] sm:$0xff] }
 0x3d7   : > { %v3796_v17 = vpop.f32.mrb[47].mxu1  ;;  %v2364_v11 = vmul.f32 0.0, %v6007_v15 }
 0x3d8   : > { %v3797_v10 = vadd.f32 %v3796_v17, %v3795_v8  ;;  %v5644_v13 = vadd.f32 %v3794_v28, %v2357_v38 }
 0x3da   : > { %v5646_v26 = vadd.f32 %v3797_v10, %v2358_v36  ;;  %v6008_v36 = vld [vmem:[#allocation73_spill] sm:$0xff] }
 0x3db   : > { %v2365_v10 = vmul.f32 0.0, %v6008_v36 }
 0x3dc   : > { %v3798_v35 = vpop.f32.mrb[48].mxu1 }
 0x3dd   : > { %v3799_v57 = vpop.f32.mrb[49].mxu1 }
 0x3de   : > { %v3800_v30 = vadd.f32 %v3799_v57, %v3798_v35  ;;  %v3801_v50 = vpop.f32.mrb[50].mxu1 }
 0x3df   : > { %v3802_v45 = vpop.f32.mrb[51].mxu1 }
 0x3e0   : > { %v3803_v62 = vadd.f32 %v3802_v45, %v3801_v50  ;;  %v5650_v3 = vadd.f32 %v3800_v30, %v2359_v47  ;;  %v5672_v50 = vpop.permute.xlu0 %2332 }
 0x3e2   : > { %v5652_v22 = vadd.f32 %v3803_v62, %v2360_v31 }
 0x3e4   : > { %v3804_v23 = vpop.f32.mrb[52].mxu1 }
 0x3e5   : > { %v3805_v12 = vpop.f32.mrb[53].mxu1 }
 0x3e6   : > { %v3806_v9 = vadd.f32 %v3805_v12, %v3804_v23  ;;  %v3807_v18 = vpop.f32.mrb[54].mxu1 }
 0x3e7   : > { %v3808_v53 = vpop.f32.mrb[55].mxu1 }
 0x3e8   : > { %v3809_v16 = vadd.f32 %v3808_v53, %v3807_v18  ;;  %v5656_v29 = vadd.f32 %v3806_v9, %v2361_v51 }
 0x3ea   : > { %v5658_v7 = vadd.f32 %v3809_v16, %v2362_v60 }
 0x3ec   : > { %v3810_v37 = vpop.f32.mrb[56].mxu1 }
 0x3ed   : > { %v3811_v1 = vpop.f32.mrb[57].mxu1 }
 0x3ee   : > { %v3812_v44 = vadd.f32 %v3811_v1, %v3810_v37  ;;  %v3813_v2 = vpop.f32.mrb[58].mxu1 }
 0x3ef   : > { %v3814_v61 = vpop.f32.mrb[59].mxu1 }
 0x3f0   : > { %v3815_v38 = vadd.f32 %v3814_v61, %v3813_v2  ;;  %v5662_v28 = vadd.f32 %v3812_v44, %v2363_v42 }
 0x3f2   : > { %v5664_v8 = vadd.f32 %v3815_v38, %v2364_v11 }
 0x3f4   : > { %v3816_v17 = vpop.f32.mrb[60].mxu1 }
 0x3f5   : > { %v3817_v24 = vpop.f32.mrb[61].mxu1 }
 0x3f6   : > { %v3818_v35 = vadd.f32 %v3817_v24, %v3816_v17  ;;  %v3819_v57 = vpop.f32.mrb[62].mxu1 }
 0x3f7   : > { %v3820_v46 = vpop.f32.mrb[63].mxu1 }
 0x3f8   : > { %v5667_v47 = vadd.f32 %v3820_v46, %v3819_v57  ;;  %v5669_v30 = vadd.f32 %v3818_v35, %v2365_v10 }
 0x409   : > { %v2891_v45 = vpop.permute.xlu0 %2890 }
 0x40a   : > { %v3044_v31 = vmul.f32 %v2891_v45, %v5528_v56 }
 0x410   : > { %v2886_v58 = vpop.permute.xlu1 %2885 }
 0x411   : > { %v3043_v62 = vmul.f32 %v2886_v58, %v5524_v21 }
 0x413   : > { %v3570_v23 = vpack.c.bf16 %v3044_v31, %v3043_v62 }
 0x414   : > { %v2901_v12 = vpop.permute.xlu0 %2900  ;;  %v2896_v27 = vpop.permute.xlu1 %2895 }
 0x415   : > { %3571 = vst [vmem:[%s5680_s30] sm:$0xff] %v3570_v23   ;;  %v3046_v51 = vmul.f32 %v2901_v12, %v5542_v40  ;;  %v3045_v9 = vmul.f32 %v2896_v27, %v5538_v0 }
 0x417   : > { %v3575_v56 = vpack.c.bf16 %v3046_v51, %v3045_v9 }
 0x418   : > { %v2911_v18 = vpop.permute.xlu0 %2910  ;;  %v2906_v21 = vpop.permute.xlu1 %2905 }
 0x419   : > { %3647 = vst [vmem:[%s5680_s30 + $0x8] sm:$0xff] %v3575_v56   ;;  %v3048_v53 = vmul.f32 %v2911_v18, %v5556_v4  ;;  %v3047_v14 = vmul.f32 %v2906_v21, %v5552_v55 }
 0x41b   : > { %v3580_v60 = vpack.c.bf16 %v3048_v53, %v3047_v14 }
 0x41c   : > { %v2921_v16 = vpop.permute.xlu0 %2920  ;;  %v2916_v37 = vpop.permute.xlu1 %2915 }
 0x41d   : > { %3648 = vst [vmem:[%s5680_s30 + $0x10] sm:$0xff] %v3580_v60   ;;  %v3050_v1 = vmul.f32 %v2921_v16, %v5570_v20  ;;  %v3049_v40 = vmul.f32 %v2916_v37, %v5566_v63 }
 0x41f   : > { %v3585_v0 = vpack.c.bf16 %v3050_v1, %v3049_v40  ;;  %v2366_v1 = vmul.f32 0.0, %v5672_v50 }
 0x420   : > { %v2931_v19 = vpop.permute.xlu0 %2930  ;;  %v2926_v42 = vpop.permute.xlu1 %2925 }
 0x421   : > { %3649 = vst [vmem:[%s5680_s30 + $0x18] sm:$0xff] %v3585_v0   ;;  %v3052_v44 = vmul.f32 %v2931_v19, %v5584_v41  ;;  %v3051_v4 = vmul.f32 %v2926_v42, %v5580_v25  ;;  %v2719_v0 = vadd.f32 %v5667_v47, %v2366_v1 }
 0x423   : > { %v3590_v55 = vpack.c.bf16 %v3052_v44, %v3051_v4 }
 0x424   : > { %v2941_v2 = vpop.permute.xlu0 %2940  ;;  %v2936_v61 = vpop.permute.xlu1 %2935 }
 0x425   : > { %3650 = vst [vmem:[%s5680_s30 + $0x20] sm:$0xff] %v3590_v55   ;;  %v3054_v15 = vmul.f32 %v2941_v2, %v5598_v59  ;;  %v3053_v20 = vmul.f32 %v2936_v61, %v5594_v33 }
 0x427   : > { %v3595_v63 = vpack.c.bf16 %v3054_v15, %v3053_v20 }
 0x428   : > { %v2951_v11 = vpop.permute.xlu0 %2950  ;;  %v2946_v38 = vpop.permute.xlu1 %2945 }
 0x429   : > { %3651 = vst [vmem:[%s5680_s30 + $0x28] sm:$0xff] %v3595_v63   ;;  %v3056_v17 = vmul.f32 %v2951_v11, %v5612_v48  ;;  %v3055_v41 = vmul.f32 %v2946_v38, %v5608_v43 }
 0x42b   : > { %v3600_v25 = vpack.c.bf16 %v3056_v17, %v3055_v41 }
 0x42c   : > { %v2961_v24 = vpop.permute.xlu0 %2960  ;;  %v2956_v36 = vpop.permute.xlu1 %2955 }
 0x42d   : > { %3652 = vst [vmem:[%s5680_s30 + $0x30] sm:$0xff] %v3600_v25   ;;  %v3058_v10 = vmul.f32 %v2961_v24, %v5622_v6  ;;  %v3057_v59 = vmul.f32 %v2956_v36, %v5619_v5 }
 0x42f   : > { %v3605_v33 = vpack.c.bf16 %v3058_v10, %v3057_v59 }
 0x430   : > { %v2971_v35 = vpop.permute.xlu0 %2970  ;;  %v2966_v57 = vpop.permute.xlu1 %2965 }
 0x431   : > { %3653 = vst [vmem:[%s5680_s30 + $0x38] sm:$0xff] %v3605_v33   ;;  %v3060_v46 = vmul.f32 %v2971_v35, %v5628_v49  ;;  %v3059_v48 = vmul.f32 %v2966_v57, %v5626_v54 }
 0x433   : > { %v3610_v43 = vpack.c.bf16 %v3060_v46, %v3059_v48 }
 0x434   : > { %v2981_v45 = vpop.permute.xlu0 %2980  ;;  %v2976_v58 = vpop.permute.xlu1 %2975 }
 0x435   : > { %3654 = vst [vmem:[%s5680_s30 + $0x40] sm:$0xff] %v3610_v43   ;;  %v3062_v31 = vmul.f32 %v2981_v45, %v5634_v34  ;;  %v3061_v6 = vmul.f32 %v2976_v58, %v5632_v32 }
 0x437   : > { %v3615_v5 = vpack.c.bf16 %v3062_v31, %v3061_v6 }
 0x438   : > { %v2991_v62 = vpop.permute.xlu0 %2990  ;;  %v2986_v23 = vpop.permute.xlu1 %2985 }
 0x439   : > { %3655 = vst [vmem:[%s5680_s30 + $0x48] sm:$0xff] %v3615_v5   ;;  %v3064_v12 = vmul.f32 %v2991_v62, %v5640_v52  ;;  %v3063_v49 = vmul.f32 %v2986_v23, %v5638_v39 }
 0x43b   : > { %v3620_v54 = vpack.c.bf16 %v3064_v12, %v3063_v49 }
 0x43c   : > { %v3001_v27 = vpop.permute.xlu0 %3000  ;;  %v2996_v51 = vpop.permute.xlu1 %2995 }
 0x43d   : > { %3656 = vst [vmem:[%s5680_s30 + $0x50] sm:$0xff] %v3620_v54   ;;  %v3066_v9 = vmul.f32 %v3001_v27, %v5646_v26  ;;  %v3065_v34 = vmul.f32 %v2996_v51, %v5644_v13 }
 0x43f   : > { %v3625_v56 = vpack.c.bf16 %v3066_v9, %v3065_v34 }
 0x440   : > { %v3011_v32 = vpop.permute.xlu0 %3010  ;;  %v3006_v18 = vpop.permute.xlu1 %3005 }
 0x441   : > { %3657 = vst [vmem:[%s5680_s30 + $0x58] sm:$0xff] %v3625_v56   ;;  %v3068_v21 = vmul.f32 %v3011_v32, %v5652_v22  ;;  %v3067_v52 = vmul.f32 %v3006_v18, %v5650_v3 }
 0x443   : > { %v3630_v53 = vpack.c.bf16 %v3068_v21, %v3067_v52 }
 0x444   : > { %v3021_v39 = vpop.permute.xlu0 %3020  ;;  %v3016_v14 = vpop.permute.xlu1 %3015 }
 0x445   : > { %3658 = vst [vmem:[%s5680_s30 + $0x60] sm:$0xff] %v3630_v53   ;;  %v3070_v60 = vmul.f32 %v3021_v39, %v5658_v7  ;;  %v3069_v26 = vmul.f32 %v3016_v14, %v5656_v29 }
 0x447   : > { %v3635_v13 = vpack.c.bf16 %v3070_v60, %v3069_v26 }
 0x448   : > { %v3031_v16 = vpop.permute.xlu0 %3030  ;;  %v3026_v37 = vpop.permute.xlu1 %3025 }
 0x449   : > { %3659 = vst [vmem:[%s5680_s30 + $0x68] sm:$0xff] %v3635_v13   ;;  %v3072_v22 = vmul.f32 %v3031_v16, %v5664_v8  ;;  %v3071_v3 = vmul.f32 %v3026_v37, %v5662_v28 }
 0x44b   : > { %v3640_v40 = vpack.c.bf16 %v3072_v22, %v3071_v3 }
 0x44c   : > { %v3041_v19 = vpop.permute.xlu0 %3040  ;;  %v3036_v42 = vpop.permute.xlu1 %3035 }
 0x44d   : > { %3660 = vst [vmem:[%s5680_s30 + $0x70] sm:$0xff] %v3640_v40   ;;  %v3074_v7 = vmul.f32 %v3041_v19, %v2719_v0  ;;  %v3073_v29 = vmul.f32 %v3036_v42, %v5669_v30 }
 0x44f   : > { %v3645_v44 = vpack.c.bf16 %v3074_v7, %v3073_v29 }
 0x451   : > { %3661 = vst [vmem:[%s5680_s30 + $0x78] sm:$0xff] %v3645_v44  }
 0x452 PF: > { %s13_s16 = sadd.s32 1, %s4210_s16   ;;  %s6009_s12 = smov %s4198_s13 }
 0x453   : > { %p10_p10 = scmp.ge.s32.totalorder %s13_s16, 4   ;;  %s6010_s13 = smov %s4274_s21 }
 0x454   : > { %s6011_s14 = smov %s4206_s15  ;;  %s6012_s15 = smov %s6014_s17 }
 0x455   :  { %12 = sbr.rel (!%p10_p10) target bundleno = 3 (0x3), region = 214 }

</bundles_post_ra>
